<compile_context>
chip_gen: v7x
topology: tpu7x:2x2x1
jax: 0.10.0
libtpu: 0.0.40
codegen_flags: <defaults>
</compile_context>

<pallas_src>
from functools import partial

import jax
import jax.numpy as jnp
from jax.experimental import pallas as pl
from jax.experimental.pallas import tpu as pltpu

_LANE = 128

_COMPILER_PARAMS = pltpu.CompilerParams(
    dimension_semantics=("parallel",),
    vmem_limit_bytes=32 * 1024 * 1024,
)


# --------------------------------------------------------------------------
# Kernels
# --------------------------------------------------------------------------
def _make_matmul_stats_kernel(total_rows, apply_affine):
    """Row-tiled matmul (+ optional fused per-channel affine+ReLU on the
    input) that also emits per-tile centered BN partial statistics."""

    def kernel(*refs):
        if apply_affine:
            x_ref, scale_ref, shift_ref, w_ref, o_ref, stats_ref = refs
            x = jnp.maximum(x_ref[...] * scale_ref[...] + shift_ref[...], 0.0)
        else:
            x_ref, w_ref, o_ref, stats_ref = refs
            x = x_ref[...]

        y = jnp.dot(x, w_ref[...], preferred_element_type=jnp.float32)
        o_ref[...] = y.astype(o_ref.dtype)

        # Per-tile centered partial statistics, masked against row padding.
        tr, cp = y.shape
        r0 = pl.program_id(0) * tr
        row_ids = jax.lax.broadcasted_iota(jnp.int32, (tr, 1), 0) + r0
        mask = (row_ids < total_rows).astype(jnp.float32)
        cnt = jnp.maximum(jnp.sum(mask), 1.0)
        mean = jnp.sum(y * mask, axis=0, keepdims=True) / cnt           # [1, cp]
        m2 = jnp.sum(((y - mean) ** 2) * mask, axis=0, keepdims=True)   # [1, cp]
        stats_ref[0] = jnp.concatenate(
            [mean, m2, jnp.zeros((6, cp), jnp.float32)], axis=0)

    return kernel


def _affine_relu_kernel(x_ref, scale_ref, shift_ref, o_ref):
    o_ref[...] = jnp.maximum(x_ref[...] * scale_ref[...] + shift_ref[...], 0.0)


def _affine_add_relu_kernel(x_ref, scale_ref, shift_ref, res_ref, o_ref):
    o_ref[...] = jnp.maximum(
        x_ref[...] * scale_ref[...] + shift_ref[...] + res_ref[...], 0.0)


# --------------------------------------------------------------------------
# Pallas wrappers
# --------------------------------------------------------------------------
def _pallas_matmul_bn_stats(x_rows, w_mat, scale=None, shift=None, *,
                            total_rows, tile_rows):
    rp, k = x_rows.shape
    cp = w_mat.shape[1]
    num_tiles = rp // tile_rows
    apply_affine = scale is not None

    kernel = _make_matmul_stats_kernel(total_rows, apply_affine)

    in_specs = [pl.BlockSpec((tile_rows, k), lambda i: (i, 0))]
    args = [x_rows]
    if apply_affine:
        in_specs += [pl.BlockSpec((1, k), lambda i: (0, 0)),
                     pl.BlockSpec((1, k), lambda i: (0, 0))]
        args += [scale.reshape(1, k), shift.reshape(1, k)]
    in_specs.append(pl.BlockSpec((k, cp), lambda i: (0, 0)))
    args.append(w_mat)

    y, stats = pl.pallas_call(
        kernel,
        grid=(num_tiles,),
        in_specs=in_specs,
        out_specs=(pl.BlockSpec((tile_rows, cp), lambda i: (i, 0)),
                   pl.BlockSpec((1, 8, cp), lambda i: (i, 0, 0))),
        out_shape=(jax.ShapeDtypeStruct((rp, cp), jnp.float32),
                   jax.ShapeDtypeStruct((num_tiles, 8, cp), jnp.float32)),
        compiler_params=_COMPILER_PARAMS,
    )(*args)
    return y, stats


def _pallas_affine_relu(x_rows, scale, shift, *, tile_rows):
    rp, cp = x_rows.shape
    num_tiles = rp // tile_rows
    return pl.pallas_call(
        _affine_relu_kernel,
        grid=(num_tiles,),
        in_specs=[pl.BlockSpec((tile_rows, cp), lambda i: (i, 0)),
                  pl.BlockSpec((1, cp), lambda i: (0, 0)),
                  pl.BlockSpec((1, cp), lambda i: (0, 0))],
        out_specs=pl.BlockSpec((tile_rows, cp), lambda i: (i, 0)),
        out_shape=jax.ShapeDtypeStruct((rp, cp), jnp.float32),
        compiler_params=_COMPILER_PARAMS,
    )(x_rows, scale.reshape(1, cp), shift.reshape(1, cp))


def _pallas_affine_add_relu(x_rows, scale, shift, res_rows, *, tile_rows):
    rp, cp = x_rows.shape
    num_tiles = rp // tile_rows
    return pl.pallas_call(
        _affine_add_relu_kernel,
        grid=(num_tiles,),
        in_specs=[pl.BlockSpec((tile_rows, cp), lambda i: (i, 0)),
                  pl.BlockSpec((1, cp), lambda i: (0, 0)),
                  pl.BlockSpec((1, cp), lambda i: (0, 0)),
                  pl.BlockSpec((tile_rows, cp), lambda i: (i, 0))],
        out_specs=pl.BlockSpec((tile_rows, cp), lambda i: (i, 0)),
        out_shape=jax.ShapeDtypeStruct((rp, cp), jnp.float32),
        compiler_params=_COMPILER_PARAMS,
    )(x_rows, scale.reshape(1, cp), shift.reshape(1, cp), res_rows)


# --------------------------------------------------------------------------
# Glue helpers
# --------------------------------------------------------------------------
def _pad_to(n, m):
    return ((n + m - 1) // m) * m


def _tile_counts(total, tile_rows):
    nt = _pad_to(total, tile_rows) // tile_rows
    return jnp.asarray([min(tile_rows, total - i * tile_rows) for i in range(nt)],
                       jnp.float32)


def _pad_channels_1d(v, cp):
    return jnp.zeros((cp,), jnp.float32).at[:v.shape[0]].set(v.astype(jnp.float32))


def _bn_scale_shift(stats, counts, total, gamma_p, beta_p, eps):
    """Chan's parallel combine of per-tile (mean, M2) -> per-channel scale/shift."""
    mean_k = stats[:, 0, :]                      # [T, CP]
    m2_k = stats[:, 1, :]                        # [T, CP]
    c = counts[:, None]                          # [T, 1]
    mean = jnp.sum(mean_k * c, axis=0) / total
    m2 = jnp.sum(m2_k, axis=0) + jnp.sum(c * (mean_k - mean[None, :]) ** 2, axis=0)
    var = m2 / total                             # biased variance (training BN)
    inv_std = jax.lax.rsqrt(var + eps)
    scale = gamma_p * inv_std
    shift = beta_p - mean * scale
    return scale, shift


def _im2col(a_nhwc, kh, kw, stride, dilation, padding):
    n, h, w, c = a_nhwc.shape
    ho = (h + 2 * padding - dilation * (kh - 1) - 1) // stride + 1
    wo = (w + 2 * padding - dilation * (kw - 1) - 1) // stride + 1
    ap = jnp.pad(a_nhwc, ((0, 0), (padding, padding), (padding, padding), (0, 0)))
    cols = []
    for i in range(kh):
        for j in range(kw):
            h0 = i * dilation
            w0 = j * dilation
            patch = jax.lax.slice(
                ap, (0, h0, w0, 0),
                (n, h0 + (ho - 1) * stride + 1, w0 + (wo - 1) * stride + 1, c),
                (1, stride, stride, 1))
            cols.append(patch.reshape(n * ho * wo, c))
    return jnp.concatenate(cols, axis=1), ho, wo


# --------------------------------------------------------------------------
# Full Bottleneck forward
# --------------------------------------------------------------------------
def bottleneck_forward(x_nchw, w1, g1, b1, w2, g2, b2, w3, g3, b3, *,
                       stride=1, dilation=1, multi_grid=1, eps=1e-5,
                       tile_rows=256):
    """Bottleneck.forward with training-mode BatchNorm (batch statistics,
    biased variance; running stats are NOT used or updated)."""
    n, cin, h, w = x_nchw.shape
    planes = w1.shape[0]
    outplanes = w3.shape[0]
    kh, kw = w2.shape[2], w2.shape[3]
    pad2 = dilation * multi_grid
    dil2 = dilation * multi_grid

    cp_mid = _pad_to(planes, _LANE)
    cp_out = _pad_to(outplanes, _LANE)

    if stride != 1 or cin != outplanes:
        # TODO(synk): downsample branch (Conv+BN on the residual) and a
        # strided identity path are not implemented; only downsample=None.
        raise NotImplementedError(
            "only the identity-residual configuration (downsample=None, "
            "stride=1) is supported")

    # --- layout: NCHW -> NHWC once, stay channels-last until the end ---
    x_nhwc = jnp.transpose(x_nchw, (0, 2, 3, 1)).astype(jnp.float32)

    # ---------------- stage 1: 1x1 conv + BN1 statistics ----------------
    r1 = n * h * w
    r1p = _pad_to(r1, tile_rows)
    x_rows = jnp.pad(x_nhwc.reshape(r1, cin), ((0, r1p - r1), (0, 0)))
    w1_mat = jnp.zeros((cin, cp_mid), jnp.float32).at[:, :planes].set(
        jnp.transpose(w1[:, :, 0, 0], (1, 0)).astype(jnp.float32))
    y1, stats1 = _pallas_matmul_bn_stats(x_rows, w1_mat,
                                         total_rows=r1, tile_rows=tile_rows)
    scale1, shift1 = _bn_scale_shift(stats1, _tile_counts(r1, tile_rows),
                                     float(r1), _pad_channels_1d(g1, cp_mid),
                                     _pad_channels_1d(b1, cp_mid), eps)

    # a1 = relu(bn1(conv1(x)))  (lane-dense, channels-last)
    a1 = _pallas_affine_relu(y1, scale1, shift1, tile_rows=tile_rows)
    a1 = a1[:r1].reshape(n, h, w, cp_mid)

    # ------------- stage 2: 3x3 conv (im2col) + BN2 statistics -----------
    # TODO(synk): im2col is materialized in HBM by the wrapper; an in-kernel
    # halo DMA (manual make_async_copy of overlapping row slabs) would avoid
    # the KH*KW-fold activation blow-up for large feature maps.
    cols, ho2, wo2 = _im2col(a1, kh, kw, stride, dil2, pad2)
    r2 = n * ho2 * wo2
    r2p = _pad_to(r2, tile_rows)
    cols = jnp.pad(cols, ((0, r2p - r2), (0, 0)))
    w2_mat = jnp.zeros((kh, kw, cp_mid, cp_mid), jnp.float32).at[
        :, :, :planes, :planes].set(
            jnp.transpose(w2, (2, 3, 1, 0)).astype(jnp.float32)
        ).reshape(kh * kw * cp_mid, cp_mid)
    y2, stats2 = _pallas_matmul_bn_stats(cols, w2_mat,
                                         total_rows=r2, tile_rows=tile_rows)
    scale2, shift2 = _bn_scale_shift(stats2, _tile_counts(r2, tile_rows),
                                     float(r2), _pad_channels_1d(g2, cp_mid),
                                     _pad_channels_1d(b2, cp_mid), eps)

    # ------ stage 3: fused [affine2 + ReLU] -> 1x1 conv + BN3 stats ------
    w3_mat = jnp.zeros((cp_mid, cp_out), jnp.float32).at[:planes, :outplanes].set(
        jnp.transpose(w3[:, :, 0, 0], (1, 0)).astype(jnp.float32))
    y3, stats3 = _pallas_matmul_bn_stats(y2, w3_mat, scale2, shift2,
                                         total_rows=r2, tile_rows=tile_rows)
    scale3, shift3 = _bn_scale_shift(stats3, _tile_counts(r2, tile_rows),
                                     float(r2), _pad_channels_1d(g3, cp_out),
                                     _pad_channels_1d(b3, cp_out), eps)

    # ---------- fused [affine3 + residual add + ReLU] -> output ----------
    res_rows = jnp.pad(x_nhwc.reshape(r1, cin),
                       ((0, r2p - r1), (0, cp_out - cin)))
    out_rows = _pallas_affine_add_relu(y3, scale3, shift3, res_rows,
                                       tile_rows=tile_rows)
    out_nhwc = out_rows[:r2, :outplanes].reshape(n, ho2, wo2, outplanes)
    return jnp.transpose(out_nhwc, (0, 3, 1, 2)).astype(x_nchw.dtype)


bottleneck_forward = jax.jit(
    bottleneck_forward,
    static_argnames=("stride", "dilation", "multi_grid", "tile_rows"))


# --------------------------------------------------------------------------
# Pure-JAX reference (training-mode BN) for correctness check
# --------------------------------------------------------------------------
def _conv(x, w, stride=1, padding=0, dilation=1):
    return jax.lax.conv_general_dilated(
        x, w, (stride, stride), [(padding, padding)] * 2,
        rhs_dilation=(dilation, dilation),
        dimension_numbers=("NCHW", "OIHW", "NCHW"))


def _bn_train(x, gamma, beta, eps=1e-5):
    mean = jnp.mean(x, axis=(0, 2, 3), keepdims=True)
    var = jnp.mean((x - mean) ** 2, axis=(0, 2, 3), keepdims=True)
    y = (x - mean) * jax.lax.rsqrt(var + eps)
    return y * gamma.reshape(1, -1, 1, 1) + beta.reshape(1, -1, 1, 1)


def _reference_bottleneck(x, w1, g1, b1, w2, g2, b2, w3, g3, b3, *,
                          stride=1, dilation=1, multi_grid=1, eps=1e-5):
    out = jnp.maximum(_bn_train(_conv(x, w1), g1, b1, eps), 0.0)
    p = dilation * multi_grid
    out = jnp.maximum(_bn_train(_conv(out, w2, stride, p, p), g2, b2, eps), 0.0)
    out = _bn_train(_conv(out, w3), g3, b3, eps)
    return jnp.maximum(out + x, 0.0)


if __name__ == "__main__":
    # Bottleneck(inplanes=16, planes=4, stride=1, dilation=1, downsample=None)
    N, PLANES = 2, 4
    INPLANES = PLANES * 4          # identity residual requires inplanes == 4*planes
    H = W = 16

    key = jax.random.PRNGKey(0)
    ks = jax.random.split(key, 10)
    x = jax.random.normal(ks[0], (N, INPLANES, H, W), jnp.float32)
    w1 = jax.random.normal(ks[1], (PLANES, INPLANES, 1, 1), jnp.float32) * 0.2
    g1 = 1.0 + 0.1 * jax.random.normal(ks[2], (PLANES,), jnp.float32)
    b1 = 0.1 * jax.random.normal(ks[3], (PLANES,), jnp.float32)
    w2 = jax.random.normal(ks[4], (PLANES, PLANES, 3, 3), jnp.float32) * 0.2
    g2 = 1.0 + 0.1 * jax.random.normal(ks[5], (PLANES,), jnp.float32)
    b2 = 0.1 * jax.random.normal(ks[6], (PLANES,), jnp.float32)
    w3 = jax.random.normal(ks[7], (PLANES * 4, PLANES, 1, 1), jnp.float32) * 0.2
    g3 = 1.0 + 0.1 * jax.random.normal(ks[8], (PLANES * 4,), jnp.float32)
    b3 = 0.1 * jax.random.normal(ks[9], (PLANES * 4,), jnp.float32)

    out = bottleneck_forward(x, w1, g1, b1, w2, g2, b2, w3, g3, b3,
                             stride=1, dilation=1, multi_grid=1)
    out = jax.block_until_ready(out)

    ref = _reference_bottleneck(x, w1, g1, b1, w2, g2, b2, w3, g3, b3)
    assert out.shape == (N, PLANES * 4, H, W)
    max_err = float(jnp.max(jnp.abs(out - ref)))
    assert jnp.allclose(out, ref, atol=2e-3, rtol=2e-3), f"mismatch: {max_err}"

    print("KERNEL_OK")
</pallas_src>

<mosaic_0001>
module attributes {stable_mosaic.version = 11 : i64} {
  func.func @_affine_relu_kernel(%arg0: i32, %arg1: memref<256x128xf32, #tpu.memory_space<vmem>>, %arg2: memref<1x128xf32, #tpu.memory_space<vmem>>, %arg3: memref<1x128xf32, #tpu.memory_space<vmem>>, %arg4: memref<256x128xf32, #tpu.memory_space<vmem>>) attributes {dimension_semantics = [#tpu.dimension_semantics<parallel>], iteration_bounds = array<i64: 2>, scalar_prefetch = 0 : i64, scratch_operands = 0 : i64, tpu.core_type = #tpu.core_type<tc>, window_params = [{transform_indices = @transform_0, window_bounds = array<i64: 256, 128>}, {pipeline_mode = #tpu.pipeline_mode<synchronous>, transform_indices = @transform_1, window_bounds = array<i64: 1, 128>}, {pipeline_mode = #tpu.pipeline_mode<synchronous>, transform_indices = @transform_2, window_bounds = array<i64: 1, 128>}, {transform_indices = @transform_3, window_bounds = array<i64: 256, 128>}]} {
    %c0 = arith.constant 0 : index
    %c0_0 = arith.constant 0 : index
    %0 = vector.load %arg1[%c0, %c0_0] : memref<256x128xf32, #tpu.memory_space<vmem>>, vector<256x128xf32>
    %c0_1 = arith.constant 0 : index
    %c0_2 = arith.constant 0 : index
    %1 = vector.load %arg2[%c0_1, %c0_2] : memref<1x128xf32, #tpu.memory_space<vmem>>, vector<1x128xf32>
    %2 = vector.broadcast %1 : vector<1x128xf32> to vector<256x128xf32>
    %3 = arith.mulf %0, %2 : vector<256x128xf32>
    %c0_3 = arith.constant 0 : index
    %c0_4 = arith.constant 0 : index
    %4 = vector.load %arg3[%c0_3, %c0_4] : memref<1x128xf32, #tpu.memory_space<vmem>>, vector<1x128xf32>
    %5 = vector.broadcast %4 : vector<1x128xf32> to vector<256x128xf32>
    %6 = arith.addf %3, %5 : vector<256x128xf32>
    %cst = arith.constant 0.000000e+00 : f32
    %7 = vector.broadcast %cst : f32 to vector<256x128xf32>
    %8 = arith.maximumf %6, %7 : vector<256x128xf32>
    %c0_5 = arith.constant 0 : index
    %c0_6 = arith.constant 0 : index
    %9 = vector.load %arg4[%c0_5, %c0_6] : memref<256x128xf32, #tpu.memory_space<vmem>>, vector<256x128xf32>
    tpu.vector_store %arg4[%c0_5, %c0_6], %8 {strides = array<i32>} : memref<256x128xf32, #tpu.memory_space<vmem>>, vector<256x128xf32>,
    return
  }
  func.func @transform_0(%arg0: i32) -> (i32, i32) {
    %c0_i32 = arith.constant 0 : i32
    %c0_i32_0 = arith.constant 0 : i32
    return %arg0, %c0_i32 : i32, i32
  }
  func.func @transform_1(%arg0: i32) -> (i32, i32) {
    %c0_i32 = arith.constant 0 : i32
    %c0_i32_0 = arith.constant 0 : i32
    %c0_i32_1 = arith.constant 0 : i32
    return %c0_i32, %c0_i32_0 : i32, i32
  }
  func.func @transform_2(%arg0: i32) -> (i32, i32) {
    %c0_i32 = arith.constant 0 : i32
    %c0_i32_0 = arith.constant 0 : i32
    %c0_i32_1 = arith.constant 0 : i32
    return %c0_i32, %c0_i32_0 : i32, i32
  }
  func.func @transform_3(%arg0: i32) -> (i32, i32) {
    %c0_i32 = arith.constant 0 : i32
    %c0_i32_0 = arith.constant 0 : i32
    return %arg0, %c0_i32 : i32, i32
  }
}

module attributes {stable_mosaic.version = 11 : i64} {
  func.func @kernel(%arg0: i32, %arg1: memref<256x16xf32, #tpu.memory_space<vmem>>, %arg2: memref<16x128xf32, #tpu.memory_space<vmem>>, %arg3: memref<256x128xf32, #tpu.memory_space<vmem>>, %arg4: memref<1x8x128xf32, #tpu.memory_space<vmem>>) attributes {dimension_semantics = [#tpu.dimension_semantics<parallel>], iteration_bounds = array<i64: 2>, scalar_prefetch = 0 : i64, scratch_operands = 0 : i64, tpu.core_type = #tpu.core_type<tc>, window_params = [{transform_indices = @transform_0, window_bounds = array<i64: 256, 16>}, {pipeline_mode = #tpu.pipeline_mode<synchronous>, transform_indices = @transform_1, window_bounds = array<i64: 16, 128>}, {transform_indices = @transform_2, window_bounds = array<i64: 256, 128>}, {transform_indices = @transform_3, window_bounds = array<i64: 1, 8, 128>}]} {
    %c0 = arith.constant 0 : index
    %c0_0 = arith.constant 0 : index
    %0 = vector.load %arg1[%c0, %c0_0] : memref<256x16xf32, #tpu.memory_space<vmem>>, vector<256x16xf32>
    %c0_1 = arith.constant 0 : index
    %c0_2 = arith.constant 0 : index
    %1 = vector.load %arg2[%c0_1, %c0_2] : memref<16x128xf32, #tpu.memory_space<vmem>>, vector<16x128xf32>
    %cst = arith.constant dense<0.000000e+00> : vector<256x128xf32>
    %2 = tpu.matmul %0, %1, %cst {dimension_numbers = #tpu.dot_dimension_numbers<[1], [0], [0], [1], [0, 0, 1, 1], [], []>} : vector<256x16xf32>, vector<16x128xf32>, vector<256x128xf32> -> vector<256x128xf32>
    %c0_3 = arith.constant 0 : index
    %c0_4 = arith.constant 0 : index
    %3 = vector.load %arg3[%c0_3, %c0_4] : memref<256x128xf32, #tpu.memory_space<vmem>>, vector<256x128xf32>
    tpu.vector_store %arg3[%c0_3, %c0_4], %2 {strides = array<i32>} : memref<256x128xf32, #tpu.memory_space<vmem>>, vector<256x128xf32>,
    %c256_i32 = arith.constant 256 : i32
    %4 = arith.muli %arg0, %c256_i32 : i32
    %5 = tpu.iota {dimensions = array<i32: 0>} : vector<256x1xi32>
    %6 = vector.broadcast %4 : i32 to vector<256x1xi32>
    %7 = arith.addi %5, %6 : vector<256x1xi32>
    %c512_i32 = arith.constant 512 : i32
    %8 = vector.broadcast %c512_i32 : i32 to vector<256x1xi32>
    %9 = arith.cmpi slt, %7, %8 : vector<256x1xi32>
    %10 = arith.extui %9 : vector<256x1xi1> to vector<256x1xi32>
    %11 = arith.sitofp %10 : vector<256x1xi32> to vector<256x1xf32>
    %12 = vector.shape_cast %11 : vector<256x1xf32> to vector<1x256x1xf32>
    %cst_5 = arith.constant dense<0.000000e+00> : vector<1xf32>
    %13 = vector.multi_reduction <add>, %12, %cst_5 [1, 2] : vector<1x256x1xf32> to vector<1xf32>
    %14 = vector.shape_cast %13 : vector<1xf32> to vector<1x1x1xf32>
    %15 = vector.extract %14[0, 0, 0] : f32 from vector<1x1x1xf32>
    %cst_6 = arith.constant 1.000000e+00 : f32
    %16 = arith.maximumf %15, %cst_6 : f32
    %17 = vector.broadcast %11 : vector<256x1xf32> to vector<256x128xf32>
    %18 = arith.mulf %2, %17 : vector<256x128xf32>
    %cst_7 = arith.constant dense<0.000000e+00> : vector<128xf32>
    %19 = vector.multi_reduction <add>, %18, %cst_7 [0] : vector<256x128xf32> to vector<128xf32>
    %20 = vector.shape_cast %19 : vector<128xf32> to vector<1x128xf32>
    %21 = vector.broadcast %16 : f32 to vector<1x128xf32>
    %22 = arith.divf %20, %21 : vector<1x128xf32>
    %23 = vector.broadcast %22 : vector<1x128xf32> to vector<256x128xf32>
    %24 = arith.subf %2, %23 : vector<256x128xf32>
    %25 = arith.mulf %24, %24 : vector<256x128xf32>
    %26 = vector.broadcast %11 : vector<256x1xf32> to vector<256x128xf32>
    %27 = arith.mulf %25, %26 : vector<256x128xf32>
    %cst_8 = arith.constant dense<0.000000e+00> : vector<128xf32>
    %28 = vector.multi_reduction <add>, %27, %cst_8 [0] : vector<256x128xf32> to vector<128xf32>
    %29 = vector.shape_cast %28 : vector<128xf32> to vector<1x128xf32>
    %cst_9 = arith.constant 0.000000e+00 : f32
    %30 = vector.broadcast %cst_9 : f32 to vector<6x128xf32>
    %31 = tpu.concatenate %22, %29, %30 in 0 : vector<1x128xf32>, vector<1x128xf32>, vector<6x128xf32> -> vector<8x128xf32>
    %c0_10 = arith.constant 0 : index
    %c0_11 = arith.constant 0 : index
    %c0_12 = arith.constant 0 : index
    %32 = vector.load %arg4[%c0_10, %c0_11, %c0_12] : memref<1x8x128xf32, #tpu.memory_space<vmem>>, vector<1x8x128xf32>
    %33 = vector.shape_cast %32 : vector<1x8x128xf32> to vector<8x128xf32>
    %34 = vector.shape_cast %31 : vector<8x128xf32> to vector<1x8x128xf32>
    tpu.vector_store %arg4[%c0_10, %c0_11, %c0_12], %34 {strides = array<i32>} : memref<1x8x128xf32, #tpu.memory_space<vmem>>, vector<1x8x128xf32>,
    return
  }
  func.func @transform_0(%arg0: i32) -> (i32, i32) {
    %c0_i32 = arith.constant 0 : i32
    %c0_i32_0 = arith.constant 0 : i32
    return %arg0, %c0_i32 : i32, i32
  }
  func.func @transform_1(%arg0: i32) -> (i32, i32) {
    %c0_i32 = arith.constant 0 : i32
    %c0_i32_0 = arith.constant 0 : i32
    %c0_i32_1 = arith.constant 0 : i32
    return %c0_i32, %c0_i32_0 : i32, i32
  }
  func.func @transform_2(%arg0: i32) -> (i32, i32) {
    %c0_i32 = arith.constant 0 : i32
    %c0_i32_0 = arith.constant 0 : i32
    return %arg0, %c0_i32 : i32, i32
  }
  func.func @transform_3(%arg0: i32) -> (i32, i32, i32) {
    %c0_i32 = arith.constant 0 : i32
    %c0_i32_0 = arith.constant 0 : i32
    %c0_i32_1 = arith.constant 0 : i32
    return %arg0, %c0_i32, %c0_i32_0 : i32, i32, i32
  }
}

module attributes {stable_mosaic.version = 11 : i64} {
  func.func @kernel(%arg0: i32, %arg1: memref<256x1152xf32, #tpu.memory_space<vmem>>, %arg2: memref<1152x128xf32, #tpu.memory_space<vmem>>, %arg3: memref<256x128xf32, #tpu.memory_space<vmem>>, %arg4: memref<1x8x128xf32, #tpu.memory_space<vmem>>) attributes {dimension_semantics = [#tpu.dimension_semantics<parallel>], iteration_bounds = array<i64: 2>, scalar_prefetch = 0 : i64, scratch_operands = 0 : i64, tpu.core_type = #tpu.core_type<tc>, window_params = [{transform_indices = @transform_0, window_bounds = array<i64: 256, 1152>}, {pipeline_mode = #tpu.pipeline_mode<synchronous>, transform_indices = @transform_1, window_bounds = array<i64: 1152, 128>}, {transform_indices = @transform_2, window_bounds = array<i64: 256, 128>}, {transform_indices = @transform_3, window_bounds = array<i64: 1, 8, 128>}]} {
    %c0 = arith.constant 0 : index
    %c0_0 = arith.constant 0 : index
    %0 = vector.load %arg1[%c0, %c0_0] : memref<256x1152xf32, #tpu.memory_space<vmem>>, vector<256x1152xf32>
    %c0_1 = arith.constant 0 : index
    %c0_2 = arith.constant 0 : index
    %1 = vector.load %arg2[%c0_1, %c0_2] : memref<1152x128xf32, #tpu.memory_space<vmem>>, vector<1152x128xf32>
    %cst = arith.constant dense<0.000000e+00> : vector<256x128xf32>
    %2 = tpu.matmul %0, %1, %cst {dimension_numbers = #tpu.dot_dimension_numbers<[1], [0], [0], [1], [0, 0, 1, 1], [], []>} : vector<256x1152xf32>, vector<1152x128xf32>, vector<256x128xf32> -> vector<256x128xf32>
    %c0_3 = arith.constant 0 : index
    %c0_4 = arith.constant 0 : index
    %3 = vector.load %arg3[%c0_3, %c0_4] : memref<256x128xf32, #tpu.memory_space<vmem>>, vector<256x128xf32>
    tpu.vector_store %arg3[%c0_3, %c0_4], %2 {strides = array<i32>} : memref<256x128xf32, #tpu.memory_space<vmem>>, vector<256x128xf32>,
    %c256_i32 = arith.constant 256 : i32
    %4 = arith.muli %arg0, %c256_i32 : i32
    %5 = tpu.iota {dimensions = array<i32: 0>} : vector<256x1xi32>
    %6 = vector.broadcast %4 : i32 to vector<256x1xi32>
    %7 = arith.addi %5, %6 : vector<256x1xi32>
    %c512_i32 = arith.constant 512 : i32
    %8 = vector.broadcast %c512_i32 : i32 to vector<256x1xi32>
    %9 = arith.cmpi slt, %7, %8 : vector<256x1xi32>
    %10 = arith.extui %9 : vector<256x1xi1> to vector<256x1xi32>
    %11 = arith.sitofp %10 : vector<256x1xi32> to vector<256x1xf32>
    %12 = vector.shape_cast %11 : vector<256x1xf32> to vector<1x256x1xf32>
    %cst_5 = arith.constant dense<0.000000e+00> : vector<1xf32>
    %13 = vector.multi_reduction <add>, %12, %cst_5 [1, 2] : vector<1x256x1xf32> to vector<1xf32>
    %14 = vector.shape_cast %13 : vector<1xf32> to vector<1x1x1xf32>
    %15 = vector.extract %14[0, 0, 0] : f32 from vector<1x1x1xf32>
    %cst_6 = arith.constant 1.000000e+00 : f32
    %16 = arith.maximumf %15, %cst_6 : f32
    %17 = vector.broadcast %11 : vector<256x1xf32> to vector<256x128xf32>
    %18 = arith.mulf %2, %17 : vector<256x128xf32>
    %cst_7 = arith.constant dense<0.000000e+00> : vector<128xf32>
    %19 = vector.multi_reduction <add>, %18, %cst_7 [0] : vector<256x128xf32> to vector<128xf32>
    %20 = vector.shape_cast %19 : vector<128xf32> to vector<1x128xf32>
    %21 = vector.broadcast %16 : f32 to vector<1x128xf32>
    %22 = arith.divf %20, %21 : vector<1x128xf32>
    %23 = vector.broadcast %22 : vector<1x128xf32> to vector<256x128xf32>
    %24 = arith.subf %2, %23 : vector<256x128xf32>
    %25 = arith.mulf %24, %24 : vector<256x128xf32>
    %26 = vector.broadcast %11 : vector<256x1xf32> to vector<256x128xf32>
    %27 = arith.mulf %25, %26 : vector<256x128xf32>
    %cst_8 = arith.constant dense<0.000000e+00> : vector<128xf32>
    %28 = vector.multi_reduction <add>, %27, %cst_8 [0] : vector<256x128xf32> to vector<128xf32>
    %29 = vector.shape_cast %28 : vector<128xf32> to vector<1x128xf32>
    %cst_9 = arith.constant 0.000000e+00 : f32
    %30 = vector.broadcast %cst_9 : f32 to vector<6x128xf32>
    %31 = tpu.concatenate %22, %29, %30 in 0 : vector<1x128xf32>, vector<1x128xf32>, vector<6x128xf32> -> vector<8x128xf32>
    %c0_10 = arith.constant 0 : index
    %c0_11 = arith.constant 0 : index
    %c0_12 = arith.constant 0 : index
    %32 = vector.load %arg4[%c0_10, %c0_11, %c0_12] : memref<1x8x128xf32, #tpu.memory_space<vmem>>, vector<1x8x128xf32>
    %33 = vector.shape_cast %32 : vector<1x8x128xf32> to vector<8x128xf32>
    %34 = vector.shape_cast %31 : vector<8x128xf32> to vector<1x8x128xf32>
    tpu.vector_store %arg4[%c0_10, %c0_11, %c0_12], %34 {strides = array<i32>} : memref<1x8x128xf32, #tpu.memory_space<vmem>>, vector<1x8x128xf32>,
    return
  }
  func.func @transform_0(%arg0: i32) -> (i32, i32) {
    %c0_i32 = arith.constant 0 : i32
    %c0_i32_0 = arith.constant 0 : i32
    return %arg0, %c0_i32 : i32, i32
  }
  func.func @transform_1(%arg0: i32) -> (i32, i32) {
    %c0_i32 = arith.constant 0 : i32
    %c0_i32_0 = arith.constant 0 : i32
    %c0_i32_1 = arith.constant 0 : i32
    return %c0_i32, %c0_i32_0 : i32, i32
  }
  func.func @transform_2(%arg0: i32) -> (i32, i32) {
    %c0_i32 = arith.constant 0 : i32
    %c0_i32_0 = arith.constant 0 : i32
    return %arg0, %c0_i32 : i32, i32
  }
  func.func @transform_3(%arg0: i32) -> (i32, i32, i32) {
    %c0_i32 = arith.constant 0 : i32
    %c0_i32_0 = arith.constant 0 : i32
    %c0_i32_1 = arith.constant 0 : i32
    return %arg0, %c0_i32, %c0_i32_0 : i32, i32, i32
  }
}

module attributes {stable_mosaic.version = 11 : i64} {
  func.func @_affine_add_relu_kernel(%arg0: i32, %arg1: memref<256x128xf32, #tpu.memory_space<vmem>>, %arg2: memref<1x128xf32, #tpu.memory_space<vmem>>, %arg3: memref<1x128xf32, #tpu.memory_space<vmem>>, %arg4: memref<256x128xf32, #tpu.memory_space<vmem>>, %arg5: memref<256x128xf32, #tpu.memory_space<vmem>>) attributes {dimension_semantics = [#tpu.dimension_semantics<parallel>], iteration_bounds = array<i64: 2>, scalar_prefetch = 0 : i64, scratch_operands = 0 : i64, tpu.core_type = #tpu.core_type<tc>, window_params = [{transform_indices = @transform_0, window_bounds = array<i64: 256, 128>}, {pipeline_mode = #tpu.pipeline_mode<synchronous>, transform_indices = @transform_1, window_bounds = array<i64: 1, 128>}, {pipeline_mode = #tpu.pipeline_mode<synchronous>, transform_indices = @transform_2, window_bounds = array<i64: 1, 128>}, {transform_indices = @transform_3, window_bounds = array<i64: 256, 128>}, {transform_indices = @transform_4, window_bounds = array<i64: 256, 128>}]} {
    %c0 = arith.constant 0 : index
    %c0_0 = arith.constant 0 : index
    %0 = vector.load %arg1[%c0, %c0_0] : memref<256x128xf32, #tpu.memory_space<vmem>>, vector<256x128xf32>
    %c0_1 = arith.constant 0 : index
    %c0_2 = arith.constant 0 : index
    %1 = vector.load %arg2[%c0_1, %c0_2] : memref<1x128xf32, #tpu.memory_space<vmem>>, vector<1x128xf32>
    %2 = vector.broadcast %1 : vector<1x128xf32> to vector<256x128xf32>
    %3 = arith.mulf %0, %2 : vector<256x128xf32>
    %c0_3 = arith.constant 0 : index
    %c0_4 = arith.constant 0 : index
    %4 = vector.load %arg3[%c0_3, %c0_4] : memref<1x128xf32, #tpu.memory_space<vmem>>, vector<1x128xf32>
    %5 = vector.broadcast %4 : vector<1x128xf32> to vector<256x128xf32>
    %6 = arith.addf %3, %5 : vector<256x128xf32>
    %c0_5 = arith.constant 0 : index
    %c0_6 = arith.constant 0 : index
    %7 = vector.load %arg4[%c0_5, %c0_6] : memref<256x128xf32, #tpu.memory_space<vmem>>, vector<256x128xf32>
    %8 = arith.addf %6, %7 : vector<256x128xf32>
    %cst = arith.constant 0.000000e+00 : f32
    %9 = vector.broadcast %cst : f32 to vector<256x128xf32>
    %10 = arith.maximumf %8, %9 : vector<256x128xf32>
    %c0_7 = arith.constant 0 : index
    %c0_8 = arith.constant 0 : index
    %11 = vector.load %arg5[%c0_7, %c0_8] : memref<256x128xf32, #tpu.memory_space<vmem>>, vector<256x128xf32>
    tpu.vector_store %arg5[%c0_7, %c0_8], %10 {strides = array<i32>} : memref<256x128xf32, #tpu.memory_space<vmem>>, vector<256x128xf32>,
    return
  }
  func.func @transform_0(%arg0: i32) -> (i32, i32) {
    %c0_i32 = arith.constant 0 : i32
    %c0_i32_0 = arith.constant 0 : i32
    return %arg0, %c0_i32 : i32, i32
  }
  func.func @transform_1(%arg0: i32) -> (i32, i32) {
    %c0_i32 = arith.constant 0 : i32
    %c0_i32_0 = arith.constant 0 : i32
    %c0_i32_1 = arith.constant 0 : i32
    return %c0_i32, %c0_i32_0 : i32, i32
  }
  func.func @transform_2(%arg0: i32) -> (i32, i32) {
    %c0_i32 = arith.constant 0 : i32
    %c0_i32_0 = arith.constant 0 : i32
    %c0_i32_1 = arith.constant 0 : i32
    return %c0_i32, %c0_i32_0 : i32, i32
  }
  func.func @transform_3(%arg0: i32) -> (i32, i32) {
    %c0_i32 = arith.constant 0 : i32
    %c0_i32_0 = arith.constant 0 : i32
    return %arg0, %c0_i32 : i32, i32
  }
  func.func @transform_4(%arg0: i32) -> (i32, i32) {
    %c0_i32 = arith.constant 0 : i32
    %c0_i32_0 = arith.constant 0 : i32
    return %arg0, %c0_i32 : i32, i32
  }
}

module attributes {stable_mosaic.version = 11 : i64} {
  func.func @kernel(%arg0: i32, %arg1: memref<256x128xf32, #tpu.memory_space<vmem>>, %arg2: memref<1x128xf32, #tpu.memory_space<vmem>>, %arg3: memref<1x128xf32, #tpu.memory_space<vmem>>, %arg4: memref<128x128xf32, #tpu.memory_space<vmem>>, %arg5: memref<256x128xf32, #tpu.memory_space<vmem>>, %arg6: memref<1x8x128xf32, #tpu.memory_space<vmem>>) attributes {dimension_semantics = [#tpu.dimension_semantics<parallel>], iteration_bounds = array<i64: 2>, scalar_prefetch = 0 : i64, scratch_operands = 0 : i64, tpu.core_type = #tpu.core_type<tc>, window_params = [{transform_indices = @transform_0, window_bounds = array<i64: 256, 128>}, {pipeline_mode = #tpu.pipeline_mode<synchronous>, transform_indices = @transform_1, window_bounds = array<i64: 1, 128>}, {pipeline_mode = #tpu.pipeline_mode<synchronous>, transform_indices = @transform_2, window_bounds = array<i64: 1, 128>}, {pipeline_mode = #tpu.pipeline_mode<synchronous>, transform_indices = @transform_3, window_bounds = array<i64: 128, 128>}, {transform_indices = @transform_4, window_bounds = array<i64: 256, 128>}, {transform_indices = @transform_5, window_bounds = array<i64: 1, 8, 128>}]} {
    %c0 = arith.constant 0 : index
    %c0_0 = arith.constant 0 : index
    %0 = vector.load %arg1[%c0, %c0_0] : memref<256x128xf32, #tpu.memory_space<vmem>>, vector<256x128xf32>
    %c0_1 = arith.constant 0 : index
    %c0_2 = arith.constant 0 : index
    %1 = vector.load %arg2[%c0_1, %c0_2] : memref<1x128xf32, #tpu.memory_space<vmem>>, vector<1x128xf32>
    %2 = vector.broadcast %1 : vector<1x128xf32> to vector<256x128xf32>
    %3 = arith.mulf %0, %2 : vector<256x128xf32>
    %c0_3 = arith.constant 0 : index
    %c0_4 = arith.constant 0 : index
    %4 = vector.load %arg3[%c0_3, %c0_4] : memref<1x128xf32, #tpu.memory_space<vmem>>, vector<1x128xf32>
    %5 = vector.broadcast %4 : vector<1x128xf32> to vector<256x128xf32>
    %6 = arith.addf %3, %5 : vector<256x128xf32>
    %cst = arith.constant 0.000000e+00 : f32
    %7 = vector.broadcast %cst : f32 to vector<256x128xf32>
    %8 = arith.maximumf %6, %7 : vector<256x128xf32>
    %c0_5 = arith.constant 0 : index
    %c0_6 = arith.constant 0 : index
    %9 = vector.load %arg4[%c0_5, %c0_6] : memref<128x128xf32, #tpu.memory_space<vmem>>, vector<128x128xf32>
    %cst_7 = arith.constant dense<0.000000e+00> : vector<256x128xf32>
    %10 = tpu.matmul %8, %9, %cst_7 {dimension_numbers = #tpu.dot_dimension_numbers<[1], [0], [0], [1], [0, 0, 1, 1], [], []>} : vector<256x128xf32>, vector<128x128xf32>, vector<256x128xf32> -> vector<256x128xf32>
    %c0_8 = arith.constant 0 : index
    %c0_9 = arith.constant 0 : index
    %11 = vector.load %arg5[%c0_8, %c0_9] : memref<256x128xf32, #tpu.memory_space<vmem>>, vector<256x128xf32>
    tpu.vector_store %arg5[%c0_8, %c0_9], %10 {strides = array<i32>} : memref<256x128xf32, #tpu.memory_space<vmem>>, vector<256x128xf32>,
    %c256_i32 = arith.constant 256 : i32
    %12 = arith.muli %arg0, %c256_i32 : i32
    %13 = tpu.iota {dimensions = array<i32: 0>} : vector<256x1xi32>
    %14 = vector.broadcast %12 : i32 to vector<256x1xi32>
    %15 = arith.addi %13, %14 : vector<256x1xi32>
    %c512_i32 = arith.constant 512 : i32
    %16 = vector.broadcast %c512_i32 : i32 to vector<256x1xi32>
    %17 = arith.cmpi slt, %15, %16 : vector<256x1xi32>
    %18 = arith.extui %17 : vector<256x1xi1> to vector<256x1xi32>
    %19 = arith.sitofp %18 : vector<256x1xi32> to vector<256x1xf32>
    %20 = vector.shape_cast %19 : vector<256x1xf32> to vector<1x256x1xf32>
    %cst_10 = arith.constant dense<0.000000e+00> : vector<1xf32>
    %21 = vector.multi_reduction <add>, %20, %cst_10 [1, 2] : vector<1x256x1xf32> to vector<1xf32>
    %22 = vector.shape_cast %21 : vector<1xf32> to vector<1x1x1xf32>
    %23 = vector.extract %22[0, 0, 0] : f32 from vector<1x1x1xf32>
    %cst_11 = arith.constant 1.000000e+00 : f32
    %24 = arith.maximumf %23, %cst_11 : f32
    %25 = vector.broadcast %19 : vector<256x1xf32> to vector<256x128xf32>
    %26 = arith.mulf %10, %25 : vector<256x128xf32>
    %cst_12 = arith.constant dense<0.000000e+00> : vector<128xf32>
    %27 = vector.multi_reduction <add>, %26, %cst_12 [0] : vector<256x128xf32> to vector<128xf32>
    %28 = vector.shape_cast %27 : vector<128xf32> to vector<1x128xf32>
    %29 = vector.broadcast %24 : f32 to vector<1x128xf32>
    %30 = arith.divf %28, %29 : vector<1x128xf32>
    %31 = vector.broadcast %30 : vector<1x128xf32> to vector<256x128xf32>
    %32 = arith.subf %10, %31 : vector<256x128xf32>
    %33 = arith.mulf %32, %32 : vector<256x128xf32>
    %34 = vector.broadcast %19 : vector<256x1xf32> to vector<256x128xf32>
    %35 = arith.mulf %33, %34 : vector<256x128xf32>
    %cst_13 = arith.constant dense<0.000000e+00> : vector<128xf32>
    %36 = vector.multi_reduction <add>, %35, %cst_13 [0] : vector<256x128xf32> to vector<128xf32>
    %37 = vector.shape_cast %36 : vector<128xf32> to vector<1x128xf32>
    %cst_14 = arith.constant 0.000000e+00 : f32
    %38 = vector.broadcast %cst_14 : f32 to vector<6x128xf32>
    %39 = tpu.concatenate %30, %37, %38 in 0 : vector<1x128xf32>, vector<1x128xf32>, vector<6x128xf32> -> vector<8x128xf32>
    %c0_15 = arith.constant 0 : index
    %c0_16 = arith.constant 0 : index
    %c0_17 = arith.constant 0 : index
    %40 = vector.load %arg6[%c0_15, %c0_16, %c0_17] : memref<1x8x128xf32, #tpu.memory_space<vmem>>, vector<1x8x128xf32>
    %41 = vector.shape_cast %40 : vector<1x8x128xf32> to vector<8x128xf32>
    %42 = vector.shape_cast %39 : vector<8x128xf32> to vector<1x8x128xf32>
    tpu.vector_store %arg6[%c0_15, %c0_16, %c0_17], %42 {strides = array<i32>} : memref<1x8x128xf32, #tpu.memory_space<vmem>>, vector<1x8x128xf32>,
    return
  }
  func.func @transform_0(%arg0: i32) -> (i32, i32) {
    %c0_i32 = arith.constant 0 : i32
    %c0_i32_0 = arith.constant 0 : i32
    return %arg0, %c0_i32 : i32, i32
  }
  func.func @transform_1(%arg0: i32) -> (i32, i32) {
    %c0_i32 = arith.constant 0 : i32
    %c0_i32_0 = arith.constant 0 : i32
    %c0_i32_1 = arith.constant 0 : i32
    return %c0_i32, %c0_i32_0 : i32, i32
  }
  func.func @transform_2(%arg0: i32) -> (i32, i32) {
    %c0_i32 = arith.constant 0 : i32
    %c0_i32_0 = arith.constant 0 : i32
    %c0_i32_1 = arith.constant 0 : i32
    return %c0_i32, %c0_i32_0 : i32, i32
  }
  func.func @transform_3(%arg0: i32) -> (i32, i32) {
    %c0_i32 = arith.constant 0 : i32
    %c0_i32_0 = arith.constant 0 : i32
    %c0_i32_1 = arith.constant 0 : i32
    return %c0_i32, %c0_i32_0 : i32, i32
  }
  func.func @transform_4(%arg0: i32) -> (i32, i32) {
    %c0_i32 = arith.constant 0 : i32
    %c0_i32_0 = arith.constant 0 : i32
    return %arg0, %c0_i32 : i32, i32
  }
  func.func @transform_5(%arg0: i32) -> (i32, i32, i32) {
    %c0_i32 = arith.constant 0 : i32
    %c0_i32_0 = arith.constant 0 : i32
    %c0_i32_1 = arith.constant 0 : i32
    return %arg0, %c0_i32, %c0_i32_0 : i32, i32, i32
  }
}

</mosaic_0001>

<bundles_post_ra>
// kernel: bottleneck_forward.6
= control target key start
LH: loop header
LB: loop body
LE: loop exit
PB: predicated region body
PF: predicated region fallthrough
CT: control target
= control target key end

     0   :  { %s453_s12 = smov 0   ;;  %s612_s0 = inlined_call_operand.vmem [shape: f32[512,128], index: 0, kind: input, shape index: {}]   ;;  %s613_s1 = inlined_call_operand.vmem [shape: f32[1,128], index: 1, kind: input, shape index: {}]   ;;  %s614_s2 = inlined_call_operand.vmem [shape: f32[1,128], index: 2, kind: input, shape index: {}]   ;;  %s615_s3 = inlined_call_operand.vmem [shape: f32[512,128], index: 3, kind: output, shape index: {}]  }
   0x1 LB: > { %s404_s13 = sadd.s32 4294967295, %s431_s12   ;;  %p408_p0 = scmp.ge.s32.totalorder %s431_s12, 1  ;;  %s431_s12 = sphi %s453_s12, %s13_s12  }
   0x2   : > { %p138_p1 = scmp.lt.s32.totalorder %s431_s12, 3 }
   0x4   : > { %p139_p2 = pnand %p408_p0, %p138_p1 }
   0x5   : > { %s409_s14 = sshll.u32 (!%p139_p2), %s404_s13, 5  ;;  %v464_v0 = vld [vmem:[%s613_s1] ss:$0 sm:$0xff] (!%p139_p2) }
   0x6   : > { %142 = sbr.rel (%p139_p2) target bundleno = 46 (0x2e), region = 32  ;;  %p163_p3 = scmp.lt.s32.totalorder (!%p139_p2), %s409_s14, 63  ;;  %v474_v1 = vld [vmem:[%s614_s2] ss:$0 sm:$0xff] (!%p139_p2) }
   0xd   : > { %s617_s14 = smov (!%p163_p3, %s409_s14), 63 }
   0xe   : > { %s410_s15 = sshll.u32 %s617_s14, 3 }
   0xf   : > { %s469_s20 = scalar_lea.vmem %s612_s0, %s410_s15  ;;  %s497_s25 = scalar_lea.vmem %s615_s3, %s410_s15 }
  0x10   : > { %v174_v2 = vld [vmem:[%s469_s20] sm:$0xff]  ;;  %v175_v3 = vld [vmem:[%s469_s20 + $0x8] sm:$0xff]  ;;  %v176_v4 = vld [vmem:[%s469_s20 + $0x10] sm:$0xff] }
  0x11   : > { %v213_v5 = vmul.f32 %v464_v0, %v174_v2  ;;  %v214_v6 = vmul.f32 %v464_v0, %v175_v3  ;;  %v215_v7 = vmul.f32 %v464_v0, %v176_v4  ;;  %v177_v8 = vld [vmem:[%s469_s20 + $0x18] sm:$0xff]  ;;  %v178_v9 = vld [vmem:[%s469_s20 + $0x20] sm:$0xff]  ;;  %v179_v10 = vld [vmem:[%s469_s20 + $0x28] sm:$0xff] }
  0x12   : > { %v216_v11 = vmul.f32 %v464_v0, %v177_v8  ;;  %v217_v12 = vmul.f32 %v464_v0, %v178_v9  ;;  %v218_v13 = vmul.f32 %v464_v0, %v179_v10  ;;  %v180_v14 = vld [vmem:[%s469_s20 + $0x30] sm:$0xff]  ;;  %v181_v15 = vld [vmem:[%s469_s20 + $0x38] sm:$0xff]  ;;  %v182_v24 = vld [vmem:[%s469_s20 + $0x40] sm:$0xff] }
  0x13   : > { %v252_v16 = vadd.f32 %v474_v1, %v213_v5  ;;  %v253_v17 = vadd.f32 %v474_v1, %v214_v6  ;;  %v254_v18 = vadd.f32 %v474_v1, %v215_v7  ;;  %v219_v19 = vmul.f32 %v464_v0, %v180_v14  ;;  %v183_v25 = vld [vmem:[%s469_s20 + $0x48] sm:$0xff]  ;;  %v184_v26 = vld [vmem:[%s469_s20 + $0x50] sm:$0xff]  ;;  %v185_v31 = vld [vmem:[%s469_s20 + $0x58] sm:$0xff] }
  0x14   : > { %v255_v20 = vadd.f32 %v474_v1, %v216_v11  ;;  %v256_v21 = vadd.f32 %v474_v1, %v217_v12  ;;  %v257_v22 = vadd.f32 %v474_v1, %v218_v13  ;;  %v220_v23 = vmul.f32 %v464_v0, %v181_v15  ;;  %v186_v32 = vld [vmem:[%s469_s20 + $0x60] sm:$0xff]  ;;  %v187_v33 = vld [vmem:[%s469_s20 + $0x68] sm:$0xff]  ;;  %v188_v38 = vld [vmem:[%s469_s20 + $0x70] sm:$0xff] }
  0x15   : > { %v284_v27 = vmax.f32 %v252_v16, 0.0  ;;  %v285_v28 = vmax.f32 %v253_v17, 0.0  ;;  %v286_v29 = vmax.f32 %v254_v18, 0.0  ;;  %v258_v30 = vadd.f32 %v474_v1, %v219_v19  ;;  %v189_v43 = vld [vmem:[%s469_s20 + $0x78] sm:$0xff]  ;;  %v190_v56 = vld [vmem:[%s469_s20 + $0x80] sm:$0xff]  ;;  %v191_v57 = vld [vmem:[%s469_s20 + $0x88] sm:$0xff] }
  0x16   : > { %v287_v34 = vmax.f32 %v255_v20, 0.0  ;;  %v288_v35 = vmax.f32 %v256_v21, 0.0  ;;  %v289_v36 = vmax.f32 %v257_v22, 0.0  ;;  %v259_v37 = vadd.f32 %v474_v1, %v220_v23  ;;  %v192_v58 = vld [vmem:[%s469_s20 + $0x90] sm:$0xff]  ;;  %v193_v63 = vld [vmem:[%s469_s20 + $0x98] sm:$0xff]  ;;  %v194_v2 = vld [vmem:[%s469_s20 + $0xa0] sm:$0xff] }
  0x17   : > { %316 = vst [vmem:[%s497_s25] sm:$0xff] %v284_v27  ;;  %317 = vst [vmem:[%s497_s25 + $0x8] sm:$0xff] %v285_v28  ;;  %v290_v39 = vmax.f32 %v258_v30, 0.0  ;;  %v221_v40 = vmul.f32 %v464_v0, %v182_v24  ;;  %v222_v41 = vmul.f32 %v464_v0, %v183_v25  ;;  %v223_v42 = vmul.f32 %v464_v0, %v184_v26  ;;  %v195_v3 = vld [vmem:[%s469_s20 + $0xa8] sm:$0xff]  ;;  %v196_v8 = vld [vmem:[%s469_s20 + $0xb0] sm:$0xff] }
  0x18   : > { %318 = vst [vmem:[%s497_s25 + $0x10] sm:$0xff] %v286_v29  ;;  %319 = vst [vmem:[%s497_s25 + $0x18] sm:$0xff] %v287_v34  ;;  %v291_v44 = vmax.f32 %v259_v37, 0.0  ;;  %v224_v45 = vmul.f32 %v464_v0, %v185_v31  ;;  %v225_v46 = vmul.f32 %v464_v0, %v186_v32  ;;  %v226_v47 = vmul.f32 %v464_v0, %v187_v33  ;;  %v197_v13 = vld [vmem:[%s469_s20 + $0xb8] sm:$0xff]  ;;  %v198_v26 = vld [vmem:[%s469_s20 + $0xc0] sm:$0xff] }
  0x19   : > { %320 = vst [vmem:[%s497_s25 + $0x20] sm:$0xff] %v288_v35  ;;  %321 = vst [vmem:[%s497_s25 + $0x28] sm:$0xff] %v289_v36  ;;  %v260_v48 = vadd.f32 %v474_v1, %v221_v40  ;;  %v261_v49 = vadd.f32 %v474_v1, %v222_v41  ;;  %v262_v50 = vadd.f32 %v474_v1, %v223_v42  ;;  %v199_v27 = vld [vmem:[%s469_s20 + $0xc8] sm:$0xff]  ;;  %v200_v28 = vld [vmem:[%s469_s20 + $0xd0] sm:$0xff] }
  0x1a   : > { %322 = vst [vmem:[%s497_s25 + $0x30] sm:$0xff] %v290_v39  ;;  %v227_v51 = vmul.f32 %v464_v0, %v188_v38  ;;  %323 = vst [vmem:[%s497_s25 + $0x38] sm:$0xff] %v291_v44  ;;  %v263_v52 = vadd.f32 %v474_v1, %v224_v45  ;;  %v264_v53 = vadd.f32 %v474_v1, %v225_v46  ;;  %v201_v33 = vld [vmem:[%s469_s20 + $0xd8] sm:$0xff]  ;;  %v202_v34 = vld [vmem:[%s469_s20 + $0xe0] sm:$0xff] }
  0x1b   : > { %v265_v54 = vadd.f32 %v474_v1, %v226_v47  ;;  %v228_v55 = vmul.f32 %v464_v0, %v189_v43  ;;  %v292_v59 = vmax.f32 %v260_v48, 0.0  ;;  %v293_v60 = vmax.f32 %v261_v49, 0.0  ;;  %v203_v35 = vld [vmem:[%s469_s20 + $0xe8] sm:$0xff]  ;;  %v204_v40 = vld [vmem:[%s469_s20 + $0xf0] sm:$0xff]  ;;  %v205_v45 = vld [vmem:[%s469_s20 + $0xf8] sm:$0xff] }
  0x1c   : > { %v294_v61 = vmax.f32 %v262_v50, 0.0  ;;  %v266_v62 = vadd.f32 %v474_v1, %v227_v51  ;;  %v295_v4 = vmax.f32 %v263_v52, 0.0  ;;  %v296_v5 = vmax.f32 %v264_v53, 0.0 }
  0x1d   : > { %v297_v6 = vmax.f32 %v265_v54, 0.0  ;;  %v267_v7 = vadd.f32 %v474_v1, %v228_v55  ;;  %324 = vst [vmem:[%s497_s25 + $0x40] sm:$0xff] %v292_v59  ;;  %325 = vst [vmem:[%s497_s25 + $0x48] sm:$0xff] %v293_v60  ;;  %v229_v10 = vmul.f32 %v464_v0, %v190_v56  ;;  %v230_v11 = vmul.f32 %v464_v0, %v191_v57 }
  0x1e   : > { %326 = vst [vmem:[%s497_s25 + $0x50] sm:$0xff] %v294_v61  ;;  %v298_v9 = vmax.f32 %v266_v62, 0.0  ;;  %v231_v12 = vmul.f32 %v464_v0, %v192_v58  ;;  %327 = vst [vmem:[%s497_s25 + $0x58] sm:$0xff] %v295_v4  ;;  %v232_v15 = vmul.f32 %v464_v0, %v193_v63  ;;  %v233_v16 = vmul.f32 %v464_v0, %v194_v2 }
  0x1f   : > { %328 = vst [vmem:[%s497_s25 + $0x60] sm:$0xff] %v296_v5  ;;  %329 = vst [vmem:[%s497_s25 + $0x68] sm:$0xff] %v297_v6  ;;  %v299_v14 = vmax.f32 %v267_v7, 0.0  ;;  %v234_v17 = vmul.f32 %v464_v0, %v195_v3  ;;  %v268_v18 = vadd.f32 %v474_v1, %v229_v10  ;;  %v269_v19 = vadd.f32 %v474_v1, %v230_v11 }
  0x20   : > { %330 = vst [vmem:[%s497_s25 + $0x70] sm:$0xff] %v298_v9  ;;  %v270_v20 = vadd.f32 %v474_v1, %v231_v12  ;;  %v235_v21 = vmul.f32 %v464_v0, %v196_v8  ;;  %v271_v22 = vadd.f32 %v474_v1, %v232_v15  ;;  %v272_v23 = vadd.f32 %v474_v1, %v233_v16 }
  0x21   : > { %331 = vst [vmem:[%s497_s25 + $0x78] sm:$0xff] %v299_v14  ;;  %v273_v24 = vadd.f32 %v474_v1, %v234_v17  ;;  %v236_v25 = vmul.f32 %v464_v0, %v197_v13  ;;  %v300_v29 = vmax.f32 %v268_v18, 0.0  ;;  %v301_v30 = vmax.f32 %v269_v19, 0.0 }
  0x22   : > { %v302_v31 = vmax.f32 %v270_v20, 0.0  ;;  %v274_v32 = vadd.f32 %v474_v1, %v235_v21  ;;  %v303_v36 = vmax.f32 %v271_v22, 0.0  ;;  %v304_v37 = vmax.f32 %v272_v23, 0.0 }
  0x23   : > { %v305_v38 = vmax.f32 %v273_v24, 0.0  ;;  %v275_v39 = vadd.f32 %v474_v1, %v236_v25  ;;  %332 = vst [vmem:[%s497_s25 + $0x80] sm:$0xff] %v300_v29  ;;  %333 = vst [vmem:[%s497_s25 + $0x88] sm:$0xff] %v301_v30  ;;  %v237_v42 = vmul.f32 %v464_v0, %v198_v26  ;;  %v238_v43 = vmul.f32 %v464_v0, %v199_v27 }
  0x24   : > { %334 = vst [vmem:[%s497_s25 + $0x90] sm:$0xff] %v302_v31  ;;  %v306_v41 = vmax.f32 %v274_v32, 0.0  ;;  %v239_v44 = vmul.f32 %v464_v0, %v200_v28  ;;  %335 = vst [vmem:[%s497_s25 + $0x98] sm:$0xff] %v303_v36  ;;  %v240_v47 = vmul.f32 %v464_v0, %v201_v33  ;;  %v241_v48 = vmul.f32 %v464_v0, %v202_v34 }
  0x25   : > { %336 = vst [vmem:[%s497_s25 + $0xa0] sm:$0xff] %v304_v37  ;;  %337 = vst [vmem:[%s497_s25 + $0xa8] sm:$0xff] %v305_v38  ;;  %v307_v46 = vmax.f32 %v275_v39, 0.0  ;;  %v242_v49 = vmul.f32 %v464_v0, %v203_v35  ;;  %v276_v50 = vadd.f32 %v474_v1, %v237_v42  ;;  %v277_v51 = vadd.f32 %v474_v1, %v238_v43 }
  0x26   : > { %338 = vst [vmem:[%s497_s25 + $0xb0] sm:$0xff] %v306_v41  ;;  %v278_v52 = vadd.f32 %v474_v1, %v239_v44  ;;  %v243_v53 = vmul.f32 %v464_v0, %v204_v40  ;;  %v279_v54 = vadd.f32 %v474_v1, %v240_v47  ;;  %v280_v55 = vadd.f32 %v474_v1, %v241_v48 }
  0x27   : > { %339 = vst [vmem:[%s497_s25 + $0xb8] sm:$0xff] %v307_v46  ;;  %v281_v56 = vadd.f32 %v474_v1, %v242_v49  ;;  %v244_v57 = vmul.f32 %v464_v0, %v205_v45  ;;  %v308_v58 = vmax.f32 %v276_v50, 0.0  ;;  %v309_v59 = vmax.f32 %v277_v51, 0.0 }
  0x28   : > { %v310_v60 = vmax.f32 %v278_v52, 0.0  ;;  %v282_v61 = vadd.f32 %v474_v1, %v243_v53  ;;  %v311_v62 = vmax.f32 %v279_v54, 0.0  ;;  %v312_v63 = vmax.f32 %v280_v55, 0.0 }
  0x29   : > { %v313_v2 = vmax.f32 %v281_v56, 0.0  ;;  %v283_v3 = vadd.f32 %v474_v1, %v244_v57  ;;  %340 = vst [vmem:[%s497_s25 + $0xc0] sm:$0xff] %v308_v58  ;;  %341 = vst [vmem:[%s497_s25 + $0xc8] sm:$0xff] %v309_v59 }
  0x2a   : > { %342 = vst [vmem:[%s497_s25 + $0xd0] sm:$0xff] %v310_v60  ;;  %v314_v4 = vmax.f32 %v282_v61, 0.0  ;;  %343 = vst [vmem:[%s497_s25 + $0xd8] sm:$0xff] %v311_v62 }
  0x2b   : > { %344 = vst [vmem:[%s497_s25 + $0xe0] sm:$0xff] %v312_v63  ;;  %345 = vst [vmem:[%s497_s25 + $0xe8] sm:$0xff] %v313_v2  ;;  %v315_v0 = vmax.f32 %v283_v3, 0.0 }
  0x2c   : > { %346 = vst [vmem:[%s497_s25 + $0xf0] sm:$0xff] %v314_v4 }
  0x2d   : > { %347 = vst [vmem:[%s497_s25 + $0xf8] sm:$0xff] %v315_v0 }
  0x2e PF: > { %s13_s12 = sadd.s32 1, %s431_s12  }
  0x2f   : > { %p10_p4 = scmp.ge.s32.totalorder %s13_s12, 4  }
  0x31   :  { %12 = sbr.rel (!%p10_p4) target bundleno = 1 (0x1), region = 62 }

// kernel: bottleneck_forward.5
= control target key start
LH: loop header
LB: loop body
LE: loop exit
PB: predicated region body
PF: predicated region fallthrough
CT: control target
= control target key end

     0   :  { %s1320_s12 = smov 0   ;;  %s1947_s0 = inlined_call_operand.vmem [shape: f32[512,16], index: 0, kind: input, shape index: {}]   ;;  %s1948_s1 = inlined_call_operand.vmem [shape: f32[16,128], index: 1, kind: input, shape index: {}]   ;;  %s1949_s2 = inlined_call_operand.vmem [shape: f32[512,128], index: 2, kind: output, shape index: {0}]   ;;  %s1950_s3 = inlined_call_operand.vmem [shape: f32[2,8,128], index: 3, kind: output, shape index: {1}]  }
   0x1 LB: > { %s1326_s13 = sadd.s32 4294967295, %s1296_s12   ;;  %p1111_p0 = scmp.ge.s32.totalorder %s1296_s12, 1  ;;  %s1296_s12 = sphi %s1320_s12, %s14_s12  }
   0x2   : > { %p141_p1 = scmp.lt.s32.totalorder %s1296_s12, 3 }
   0x4   : > { %p142_p2 = pnand %p1111_p0, %p141_p1 }
   0x6   : > { %145 = sbr.rel (%p142_p2) target bundleno = 410 (0x19a), region = 28 }
   0xd   : > { %v217_v0 = vld [vmem:[%s1948_s1] sm:$0xff]  ;;  %v218_v1 = vld [vmem:[%s1948_s1 + $0x8] sm:$0xff]  ;;  %s1112_s18 = sshll.u32 %s1326_s13, 5  ;;  %vm219_vm0 = vcmask 130048   ;;  %v574_v12 = vlaneseq  ;;  %s1149_s23 = sshll.u32 %s1326_s13, 8  ;;  %vm736_vm4 = vcmask 7168  }
   0xe   : > { %v1270_v2 = vpack.c.bf16 %v218_v1, %v217_v0  ;;  %p170_p3 = scmp.lt.s32.totalorder %s1112_s18, 63  ;;  %v1384_v24 = vstv %s1149_s23  ;;  %v1298_v47 = vmov 0.0   ;;  %s1299_s28 = smov 1.0  }
   0xf   : > { %v1371_v17 = vshrl.u32 %v574_v12, 7  ;;  %p181_p4 = scmp.lt.s32.totalorder %s1326_s13, 1 }
  0x10   : > { %1271 = vmatprep.subr.bf16.mxu0 %v1270_v2  ;;  %s2000_s18 = smov (!%p170_p3, %s1112_s18), 63  ;;  %1274 = vmatprep.subr.bf16.mxu1 %v1270_v2 }
  0x11   : > { %1273 = vmatpush3.bf16.msra.mxu0 %v1270_v2  ;;  %1275 = vmatpush3.bf16.msra.mxu1 %v1270_v2  ;;  %s1113_s19 = sshll.u32 %s2000_s18, 3  ;;  %v576_v22 = vadd.s32 8, %v1371_v17  ;;  %v577_v23 = vadd.s32 16, %v1371_v17  ;;  %v578_v28 = vadd.s32 24, %v1371_v17  ;;  %v608_v29 = vadd.s32 %v1384_v24, %v1371_v17  ;;  %s2002_s13 = smov (!%p181_p4, %s1326_s13), 1 }
  0x12   : > { %s1345_s22 = scalar_lea.vmem %s1947_s0, %s1113_s19  ;;  %v579_v31 = vadd.s32 32, %v1371_v17  ;;  %v580_v37 = vadd.s32 40, %v1371_v17  ;;  %v581_v40 = vadd.s32 48, %v1371_v17  ;;  %v582_v45 = vadd.s32 56, %v1371_v17  ;;  %s1646_s26 = scalar_lea.vmem %s1949_s2, %s1113_s19 }
  0x13   : > { %v185_v3 = vld [vmem:[%s1345_s22] sm:$0xff]  ;;  %v186_v4 = vld [vmem:[%s1345_s22 + $0x8] sm:$0xff]  ;;  %v187_v5 = vld [vmem:[%s1345_s22 + $0x10] sm:$0xff]  ;;  %v609_v32 = vadd.s32 %v1384_v24, %v576_v22  ;;  %v610_v33 = vadd.s32 %v1384_v24, %v577_v23  ;;  %v611_v38 = vadd.s32 %v1384_v24, %v578_v28  ;;  %vm640_vm1 = vcmp.lt.s32.totalorder %v608_v29, 512  ;;  %s1116_s30 = sshll.u32 %s2002_s13, 3 }
  0x14   : > { %1222 = vmatprep.mubr.msk.f32.mxu0 %vm219_vm0, %v185_v3  ;;  %v188_v6 = vld [vmem:[%s1345_s22 + $0x18] sm:$0xff]  ;;  %v189_v7 = vld [vmem:[%s1345_s22 + $0x20] sm:$0xff]  ;;  %v202_v9 = vld [vmem:[%s1345_s22 + $0x88] sm:$0xff]  ;;  %v612_v41 = vadd.s32 %v1384_v24, %v579_v31  ;;  %v613_v46 = vadd.s32 %v1384_v24, %v580_v37  ;;  %v1420_v48 = vsel %vm640_vm1, 1.0, %v1298_v47  ;;  %v583_v52 = vadd.s32 64, %v1371_v17  ;;  %s184_s6 = scalar_lea.vmem %s1950_s3, %s1116_s30 }
  0x15   : > { %1223 = vmatmul.mubr.msk.f32.vlgmr.msra.gmra.mrb[0].mxu0 %vm219_vm0, %v186_v4  ;;  %v201_v8 = vld [vmem:[%s1345_s22 + $0x80] sm:$0xff]  ;;  %v203_v10 = vld [vmem:[%s1345_s22 + $0x90] sm:$0xff]  ;;  %v190_v11 = vld [vmem:[%s1345_s22 + $0x28] sm:$0xff]  ;;  %vm641_vm2 = vcmp.lt.s32.totalorder %v609_v32, 512  ;;  %vm642_vm3 = vcmp.lt.s32.totalorder %v610_v33, 512  ;;  %vm643_vm5 = vcmp.lt.s32.totalorder %v611_v38, 512  ;;  %v614_v53 = vadd.s32 %v1384_v24, %v581_v40 }
  0x16   : > { %1225 = vmatprep.mubr.msk.f32.mxu0 %vm219_vm0, %v187_v5  ;;  %1246 = vmatprep.mubr.msk.f32.mxu1 %vm219_vm0, %v201_v8  ;;  %v191_v13 = vld [vmem:[%s1345_s22 + $0x30] sm:$0xff]  ;;  %v204_v14 = vld [vmem:[%s1345_s22 + $0x98] sm:$0xff]  ;;  %v205_v15 = vld [vmem:[%s1345_s22 + $0xa0] sm:$0xff]  ;;  %v1424_v49 = vsel %vm641_vm2, 1.0, %v1298_v47  ;;  %v1427_v50 = vsel %vm642_vm3, 1.0, %v1298_v47  ;;  %vm644_vm6 = vcmp.lt.s32.totalorder %v612_v41, 512  ;;  %v615_v59 = vadd.s32 %v1384_v24, %v582_v45 }
  0x17   : > { %1247 = vmatmul.mubr.msk.f32.vlgmr.msra.gmra.mrb[0].mxu1 %vm219_vm0, %v202_v9  ;;  %v192_v16 = vld [vmem:[%s1345_s22 + $0x38] sm:$0xff]  ;;  %v193_v18 = vld [vmem:[%s1345_s22 + $0x40] sm:$0xff]  ;;  %v206_v19 = vld [vmem:[%s1345_s22 + $0xa8] sm:$0xff]  ;;  %v584_v55 = vadd.s32 72, %v1371_v17  ;;  %v1438_v56 = vsel %vm643_vm5, 1.0, %v1298_v47  ;;  %v737_v57 = vsel %vm736_vm4, %v1420_v48, 0.0  ;;  %v616_v1 = vadd.s32 %v1384_v24, %v583_v52 }
  0x18   : > { %1249 = vmatprep.mubr.msk.f32.mxu1 %vm219_vm0, %v203_v10  ;;  %v207_v20 = vld [vmem:[%s1345_s22 + $0xb0] sm:$0xff]  ;;  %v194_v21 = vld [vmem:[%s1345_s22 + $0x48] sm:$0xff]  ;;  %v208_v26 = vld [vmem:[%s1345_s22 + $0xb8] sm:$0xff]  ;;  %vm645_vm7 = vcmp.lt.s32.totalorder %v613_v46, 512  ;;  %v738_v60 = vsel %vm736_vm4, %v1424_v49, 0.0  ;;  %v740_v61 = vsel %vm736_vm4, %v1427_v50, 0.0 }
  0x19   : > { %1226 = vmatmul.mubr.msk.f32.gmra.mrb[2].mxu0 %vm219_vm0, %v188_v6  ;;  %v195_v25 = vld [vmem:[%s1345_s22 + $0x50] sm:$0xff]  ;;  %v209_v27 = vld [vmem:[%s1345_s22 + $0xc0] sm:$0xff]  ;;  %v196_v30 = vld [vmem:[%s1345_s22 + $0x58] sm:$0xff]  ;;  %v1450_v62 = vsel %vm644_vm6, 1.0, %v1298_v47  ;;  %v739_v63 = vadd.f32 %v738_v60, %v737_v57  ;;  %v585_v0 = vadd.s32 80, %v1371_v17  ;;  %vm646_vm8 = vcmp.lt.s32.totalorder %v614_v53, 512 }
  0x1a   : > { %1228 = vmatprep.mubr.msk.f32.mxu0 %vm219_vm0, %v189_v7  ;;  %v197_v34 = vld [vmem:[%s1345_s22 + $0x60] sm:$0xff]  ;;  %v210_v35 = vld [vmem:[%s1345_s22 + $0xc8] sm:$0xff]  ;;  %v211_v36 = vld [vmem:[%s1345_s22 + $0xd0] sm:$0xff]  ;;  %v742_v2 = vsel %vm736_vm4, %v1438_v56, 0.0  ;;  %v1460_v4 = vsel %vm645_vm7, 1.0, %v1298_v47  ;;  %v586_v6 = vadd.s32 88, %v1371_v17  ;;  %v617_v7 = vadd.s32 %v1384_v24, %v584_v55 }
  0x1b   : > { %1250 = vmatmul.mubr.msk.f32.gmra.mrb[2].mxu1 %vm219_vm0, %v204_v14  ;;  %v198_v39 = vld [vmem:[%s1345_s22 + $0x68] sm:$0xff]  ;;  %v199_v42 = vld [vmem:[%s1345_s22 + $0x70] sm:$0xff]  ;;  %v212_v43 = vld [vmem:[%s1345_s22 + $0xd8] sm:$0xff]  ;;  %v741_v5 = vadd.f32 %v740_v61, %v739_v63  ;;  %vm647_vm9 = vcmp.lt.s32.totalorder %v615_v59, 512  ;;  %v744_v8 = vsel %vm736_vm4, %v1450_v62, 0.0  ;;  %v1467_v9 = vsel %vm646_vm8, 1.0, %v1298_v47 }
  0x1c   : > { %1252 = vmatprep.mubr.msk.f32.mxu1 %vm219_vm0, %v205_v15  ;;  %v213_v44 = vld [vmem:[%s1345_s22 + $0xe0] sm:$0xff]  ;;  %v200_v51 = vld [vmem:[%s1345_s22 + $0x78] sm:$0xff]  ;;  %v214_v54 = vld [vmem:[%s1345_s22 + $0xe8] sm:$0xff]  ;;  %v618_v12 = vadd.s32 %v1384_v24, %v585_v0  ;;  %vm648_vm10 = vcmp.lt.s32.totalorder %v616_v1, 512  ;;  %v1475_v14 = vsel %vm647_vm9, 1.0, %v1298_v47  ;;  %vm649_vm11 = vcmp.lt.s32.totalorder %v617_v7, 512 }
  0x1d   : > { %1229 = vmatmul.mubr.msk.f32.gmra.mrb[4].mxu0 %vm219_vm0, %v190_v11  ;;  %v215_v58 = vld [vmem:[%s1345_s22 + $0xf0] sm:$0xff]  ;;  %v216_v3 = vld [vmem:[%s1345_s22 + $0xf8] sm:$0xff]  ;;  %v743_v10 = vadd.f32 %v742_v2, %v741_v5  ;;  %v587_v11 = vadd.s32 96, %v1371_v17  ;;  %1967 = vst [vmem:[#allocation2_spill] sm:$0xff] %v1475_v14  ;;  %v589_v22 = vadd.s32 112, %v1371_v17  ;;  %v590_v28 = vadd.s32 120, %v1371_v17 }
  0x1e   : > { %1231 = vmatprep.mubr.msk.f32.mxu0 %vm219_vm0, %v191_v13  ;;  %v746_v13 = vsel %vm736_vm4, %v1460_v4, 0.0  ;;  %vm650_vm12 = vcmp.lt.s32.totalorder %v618_v12, 512  ;;  %v591_v33 = vadd.s32 128, %v1371_v17  ;;  %v592_v38 = vadd.s32 136, %v1371_v17 }
  0x1f   : > { %1253 = vmatmul.mubr.msk.f32.gmra.mrb[4].mxu1 %vm219_vm0, %v206_v19  ;;  %v745_v15 = vadd.f32 %v744_v8, %v743_v10  ;;  %v748_v19 = vsel %vm736_vm4, %v1467_v9, 0.0  ;;  %v620_v23 = vadd.s32 %v1384_v24, %v587_v11  ;;  %v1496_v31 = vsel %vm650_vm12, 1.0, %v1298_v47 }
  0x20   : > { %1255 = vmatprep.mubr.msk.f32.mxu1 %vm219_vm0, %v207_v20  ;;  %v1482_v20 = vsel %vm648_vm10, 1.0, %v1298_v47  ;;  %1970 = vst [vmem:[#allocation5_spill] sm:$0xff] %v1496_v31  ;;  %v756_v40 = vsel %vm736_vm4, %v1496_v31, 0.0  ;;  %v594_v52 = vadd.s32 152, %v1371_v17  ;;  %v625_v53 = vadd.s32 %v1384_v24, %v592_v38 }
  0x21   : > { %1232 = vmatmul.mubr.msk.f32.gmra.mrb[6].mxu0 %vm219_vm0, %v192_v16  ;;  %v588_v16 = vadd.s32 104, %v1371_v17  ;;  %1968 = vst [vmem:[#allocation3_spill] sm:$0xff] %v1482_v20  ;;  %vm652_vm14 = vcmp.lt.s32.totalorder %v620_v23, 512  ;;  %v596_v0 = vadd.s32 168, %v1371_v17  ;;  %v598_v12 = vadd.s32 184, %v1371_v17 }
  0x22   : > { %1234 = vmatprep.mubr.msk.f32.mxu0 %vm219_vm0, %v193_v18  ;;  %v619_v18 = vadd.s32 %v1384_v24, %v586_v6  ;;  %v1510_v41 = vsel %vm652_vm14, 1.0, %v1298_v47  ;;  %v627_v1 = vadd.s32 %v1384_v24, %v594_v52  ;;  %vm657_vm3 = vcmp.lt.s32.totalorder %v625_v53, 512 }
  0x23   : > { %1256 = vmatmul.mubr.msk.f32.gmra.mrb[6].mxu1 %vm219_vm0, %v208_v26  ;;  %v1489_v26 = vsel %vm649_vm11, 1.0, %v1298_v47  ;;  %v621_v29 = vadd.s32 %v1384_v24, %v588_v16  ;;  %1972 = vst [vmem:[#allocation7_spill] sm:$0xff] %v1510_v41  ;;  %v597_v6 = vadd.s32 176, %v1371_v17  ;;  %v1545_v10 = vsel %vm657_vm3, 1.0, %v1298_v47 }
  0x24   : > { %1258 = vmatprep.mubr.msk.f32.mxu1 %vm219_vm0, %v209_v27  ;;  %1969 = vst [vmem:[#allocation4_spill] sm:$0xff] %v1489_v26  ;;  %vm651_vm13 = vcmp.lt.s32.totalorder %v619_v18, 512  ;;  %1976 = vst [vmem:[#allocation11_spill] sm:$0xff] %v1545_v10  ;;  %vm659_vm6 = vcmp.lt.s32.totalorder %v627_v1, 512  ;;  %vm1017_vm3 = vcmask 1041408  }
  0x25   : > { %1235 = vmatmul.mubr.msk.f32.gmra.mrb[8].mxu0 %vm219_vm0, %v194_v21  ;;  %v747_v21 = vadd.f32 %v746_v13, %v745_v15  ;;  %vm653_vm15 = vcmp.lt.s32.totalorder %v621_v29, 512  ;;  %v629_v13 = vadd.s32 %v1384_v24, %v596_v0  ;;  %v1559_v23 = vsel %vm659_vm6, 1.0, %v1298_v47 }
  0x26   : > { %1237 = vmatprep.mubr.msk.f32.mxu0 %vm219_vm0, %v195_v25  ;;  %v750_v25 = vsel %vm736_vm4, %v1475_v14, 0.0  ;;  %v1517_v46 = vsel %vm653_vm15, 1.0, %v1298_v47  ;;  %v605_v0 = vadd.s32 240, %v1371_v17 }
  0x27   : > { %1259 = vmatmul.mubr.msk.f32.gmra.mrb[8].mxu1 %vm219_vm0, %v210_v35  ;;  %v749_v27 = vadd.f32 %v748_v19, %v747_v21  ;;  %v754_v35 = vsel %vm736_vm4, %v1489_v26, 0.0  ;;  %1973 = vst [vmem:[#allocation8_spill] sm:$0xff] %v1517_v46  ;;  %v762_v60 = vsel %vm736_vm4, %v1517_v46, 0.0  ;;  %v599_v19 = vadd.s32 192, %v1371_v17 }
  0x28   : > { %1261 = vmatprep.mubr.msk.f32.mxu1 %vm219_vm0, %v211_v36  ;;  %v1503_v36 = vsel %vm651_vm13, 1.0, %v1298_v47  ;;  %v630_v21 = vadd.s32 %v1384_v24, %v597_v6  ;;  %vm661_vm8 = vcmp.lt.s32.totalorder %v629_v13, 512 }
  0x29   : > { %1238 = vmatmul.mubr.msk.f32.gmra.mrb[10].mxu0 %vm219_vm0, %v196_v30  ;;  %v752_v30 = vsel %vm736_vm4, %v1482_v20, 0.0  ;;  %v751_v32 = vadd.f32 %v750_v25, %v749_v27  ;;  %1971 = vst [vmem:[#allocation6_spill] sm:$0xff] %v1503_v36  ;;  %v758_v45 = vsel %vm736_vm4, %v1503_v36, 0.0  ;;  %v600_v27 = vadd.s32 200, %v1371_v17 }
  0x2a   : > { %1240 = vmatprep.mubr.msk.f32.mxu0 %vm219_vm0, %v197_v34  ;;  %v622_v34 = vadd.s32 %v1384_v24, %v589_v22  ;;  %v770_v22 = vsel %vm736_vm4, %v1545_v10, 0.0  ;;  %vm662_vm9 = vcmp.lt.s32.totalorder %v630_v21, 512 }
  0x2b   : > { %1262 = vmatmul.mubr.msk.f32.gmra.mrb[10].mxu1 %vm219_vm0, %v212_v43  ;;  %v753_v37 = vadd.f32 %v752_v30, %v751_v32  ;;  %v593_v43 = vadd.s32 144, %v1371_v17 }
  0x2c   : > { %1264 = vmatprep.mubr.msk.f32.mxu1 %vm219_vm0, %v213_v44  ;;  %v624_v44 = vadd.s32 %v1384_v24, %v591_v33  ;;  %v601_v33 = vadd.s32 208, %v1371_v17 }
  0x2d   : > { %1241 = vmatmul.mubr.msk.f32.gmra.mrb[12].mxu0 %vm219_vm0, %v198_v39  ;;  %v623_v39 = vadd.s32 %v1384_v24, %v590_v28  ;;  %v626_v59 = vadd.s32 %v1384_v24, %v593_v43  ;;  %v631_v28 = vadd.s32 %v1384_v24, %v598_v12  ;;  %v1580_v43 = vsel %vm662_vm9, 1.0, %v1298_v47 }
  0x2e   : > { %1243 = vmatprep.mubr.msk.f32.mxu0 %vm219_vm0, %v199_v42  ;;  %v755_v42 = vadd.f32 %v754_v35, %v753_v37  ;;  %vm656_vm2 = vcmp.lt.s32.totalorder %v624_v44, 512  ;;  %v774_v35 = vsel %vm736_vm4, %v1559_v23, 0.0  ;;  %v1573_v37 = vsel %vm661_vm8, 1.0, %v1298_v47 }
  0x2f   : > { %1265 = vmatmul.mubr.msk.f32.gmra.mrb[12].mxu1 %vm219_vm0, %v214_v54  ;;  %vm655_vm1 = vcmp.lt.s32.totalorder %v623_v39, 512  ;;  %v760_v54 = vsel %vm736_vm4, %v1510_v41, 0.0  ;;  %vm658_vm5 = vcmp.lt.s32.totalorder %v626_v59, 512  ;;  %v602_v39 = vadd.s32 216, %v1371_v17 }
  0x30   : > { %1267 = vmatprep.mubr.msk.f32.mxu1 %vm219_vm0, %v215_v58  ;;  %v595_v58 = vadd.s32 160, %v1371_v17  ;;  %v1531_v61 = vsel %vm655_vm1, 1.0, %v1298_v47  ;;  %v1552_v16 = vsel %vm658_vm5, 1.0, %v1298_v47  ;;  %vm663_vm10 = vcmp.lt.s32.totalorder %v631_v28, 512 }
  0x31   : > { %1244 = vmatmul.mubr.msk.f32.gmra.mrb[14].mxu0 %vm219_vm0, %v200_v51  ;;  %v757_v51 = vadd.f32 %v756_v40, %v755_v42  ;;  %1974 = vst [vmem:[#allocation9_spill] sm:$0xff] %v1531_v61  ;;  %v766_v8 = vsel %vm736_vm4, %v1531_v61, 0.0  ;;  %v772_v29 = vsel %vm736_vm4, %v1552_v16, 0.0  ;;  %v633_v40 = vadd.s32 %v1384_v24, %v600_v27 }
  0x32   : > { %v628_v7 = vadd.s32 %v1384_v24, %v595_v58  ;;  %v778_v52 = vsel %vm736_vm4, %v1573_v37, 0.0  ;;  %v1587_v53 = vsel %vm663_vm10, 1.0, %v1298_v47  ;;  %v635_v58 = vadd.s32 %v1384_v24, %v602_v39 }
  0x33   : > { %1268 = vmatmul.mubr.msk.f32.gmra.mrb[14].mxu1 %vm219_vm0, %v216_v3  ;;  %vm654_vm0 = vcmp.lt.s32.totalorder %v622_v34, 512  ;;  %v759_v57 = vadd.f32 %v758_v45, %v757_v51  ;;  %v1538_v3 = vsel %vm656_vm2, 1.0, %v1298_v47  ;;  %v632_v34 = vadd.s32 %v1384_v24, %v599_v19 }
  0x34   : > { %v1524_v55 = vsel %vm654_vm0, 1.0, %v1298_v47  ;;  %1975 = vst [vmem:[#allocation10_spill] sm:$0xff] %v1538_v3  ;;  %v768_v15 = vsel %vm736_vm4, %v1538_v3, 0.0  ;;  %vm660_vm7 = vcmp.lt.s32.totalorder %v628_v7, 512  ;;  %v603_v45 = vadd.s32 224, %v1371_v17 }
  0x35   : > { %v761_v63 = vadd.f32 %v760_v54, %v759_v57  ;;  %v764_v2 = vsel %vm736_vm4, %v1524_v55, 0.0  ;;  %v1566_v30 = vsel %vm660_vm7, 1.0, %v1298_v47  ;;  %v634_v51 = vadd.s32 %v1384_v24, %v601_v33 }
  0x36   : > { %v776_v42 = vsel %vm736_vm4, %v1566_v30, 0.0  ;;  %vm664_vm11 = vcmp.lt.s32.totalorder %v632_v34, 512  ;;  %v604_v57 = vadd.s32 232, %v1371_v17  ;;  %vm665_vm12 = vcmp.lt.s32.totalorder %v633_v40, 512 }
  0x37   : > { %v763_v5 = vadd.f32 %v762_v60, %v761_v63  ;;  %v780_v59 = vsel %vm736_vm4, %v1580_v43, 0.0  ;;  %v1594_v60 = vsel %vm664_vm11, 1.0, %v1298_v47  ;;  %v636_v1 = vadd.s32 %v1384_v24, %v603_v45 }
  0x38   : > { %vm666_vm13 = vcmp.lt.s32.totalorder %v634_v51, 512  ;;  %v606_v7 = vadd.s32 248, %v1371_v17  ;;  %vm667_vm14 = vcmp.lt.s32.totalorder %v635_v58, 512 }
  0x39   : > { %v765_v11 = vadd.f32 %v764_v2, %v763_v5  ;;  %v782_v2 = vsel %vm736_vm4, %v1587_v53, 0.0  ;;  %v1601_v5 = vsel %vm665_vm12, 1.0, %v1298_v47  ;;  %v1608_v12 = vsel %vm666_vm13, 1.0, %v1298_v47 }
  0x3a   : > { %1977 = vst [vmem:[#allocation12_spill] sm:$0xff] %v1608_v12  ;;  %vm668_vm15 = vcmp.lt.s32.totalorder %v636_v1, 512  ;;  %v1614_v19 = vsel %vm667_vm14, 1.0, %v1298_v47  ;;  %v639_v21 = vadd.s32 %v1384_v24, %v606_v7 }
  0x3b   : > { %v767_v18 = vadd.f32 %v766_v8, %v765_v11  ;;  %v637_v8 = vadd.s32 %v1384_v24, %v604_v57  ;;  %v784_v11 = vsel %vm736_vm4, %v1594_v60, 0.0  ;;  %1978 = vst [vmem:[#allocation13_spill] sm:$0xff] %v1614_v19  ;;  %v790_v28 = vsel %vm736_vm4, %v1614_v19, 0.0 }
  0x3c   : > { %vm671_vm2 = vcmp.lt.s32.totalorder %v639_v21, 512 }
  0x3d   : > { %v769_v25 = vadd.f32 %v768_v15, %v767_v18  ;;  %v638_v15 = vadd.s32 %v1384_v24, %v605_v0  ;;  %v786_v18 = vsel %vm736_vm4, %v1601_v5, 0.0  ;;  %vm669_vm0 = vcmp.lt.s32.totalorder %v637_v8, 512 }
  0x3f   : > { %v771_v32 = vadd.f32 %v770_v22, %v769_v25  ;;  %v788_v22 = vsel %vm736_vm4, %v1608_v12, 0.0  ;;  %v1620_v25 = vsel %vm668_vm15, 1.0, %v1298_v47  ;;  %vm670_vm1 = vcmp.lt.s32.totalorder %v638_v15, 512 }
  0x40   : > { %v792_v24 = vsel %vm736_vm4, %v1620_v25, 0.0  ;;  %v1630_v33 = vsel %vm670_vm1, 1.0, %v1298_v47 }
  0x41   : > { %v773_v38 = vadd.f32 %v772_v29, %v771_v32  ;;  %v1625_v29 = vsel %vm669_vm0, 1.0, %v1298_v47  ;;  %v796_v40 = vsel %vm736_vm4, %v1630_v33, 0.0 }
  0x42   : > { %1979 = vst [vmem:[#allocation14_spill] sm:$0xff] %v1625_v29 }
  0x43   : > { %v775_v44 = vadd.f32 %v774_v35, %v773_v38  ;;  %v794_v35 = vsel %vm736_vm4, %v1625_v29, 0.0  ;;  %v1635_v38 = vsel %vm671_vm2, 1.0, %v1298_v47 }
  0x45   : > { %v777_v54 = vadd.f32 %v776_v42, %v775_v44  ;;  %v798_v44 = vsel %vm736_vm4, %v1635_v38, 0.0  ;;  %vm1015_vm4 = vcmask 1040384  }
  0x47   : > { %v779_v63 = vadd.f32 %v778_v52, %v777_v54 }
  0x49   : > { %v781_v6 = vadd.f32 %v780_v59, %v779_v63 }
  0x4b   : > { %v783_v13 = vadd.f32 %v782_v2, %v781_v6 }
  0x4d   : > { %v785_v17 = vadd.f32 %v784_v11, %v783_v13 }
  0x4f   : > { %v787_v27 = vadd.f32 %v786_v18, %v785_v17 }
  0x51   : > { %v789_v32 = vadd.f32 %v788_v22, %v787_v27 }
  0x53   : > { %v791_v34 = vadd.f32 %v790_v28, %v789_v32 }
  0x55   : > { %v793_v39 = vadd.f32 %v792_v24, %v791_v34 }
  0x57   : > { %v795_v42 = vadd.f32 %v794_v35, %v793_v39 }
  0x59   : > { %v797_v45 = vadd.f32 %v796_v40, %v795_v42 }
  0x5b   : > { %v799_v51 = vadd.f32 %v798_v44, %v797_v45 }
  0x5d   : > { %800 = vadd.xlane.f32.xlu0 %v799_v51 }
  0xe8   : > { %v1648_v47 = vpop.f32.mrb[0].mxu0 }
  0xe9   : > { %542 = vst [vmem:[%s1646_s26 + $0x8] sm:$0xff] %v1648_v47  ;;  %v811_v52 = vmul.f32 %v1648_v47, %v1424_v49  ;;  %v1654_v54 = vpop.f32.mrb[1].mxu0 }
  0xea   : > { %541 = vst [vmem:[%s1646_s26] sm:$0xff] %v1654_v54  ;;  %v810_v57 = vmul.f32 %v1420_v48, %v1654_v54  ;;  %v1666_v0 = vpop.f32.mrb[0].mxu1 }
  0xeb   : > { %558 = vst [vmem:[%s1646_s26 + $0x88] sm:$0xff] %v1666_v0  ;;  %v1674_v2 = vpop.f32.mrb[1].mxu1 }
  0xec   : > { %v842_v58 = vadd.f32 %v811_v52, %v810_v57  ;;  %v1660_v59 = vpop.f32.mrb[2].mxu0  ;;  %557 = vst [vmem:[%s1646_s26 + $0x80] sm:$0xff] %v1674_v2 }
  0xed   : > { %544 = vst [vmem:[%s1646_s26 + $0x18] sm:$0xff] %v1660_v59  ;;  %v1664_v63 = vpop.f32.mrb[3].mxu0  ;;  %v813_v6 = vmul.f32 %v1660_v59, %v1438_v56 }
  0xee   : > { %543 = vst [vmem:[%s1646_s26 + $0x10] sm:$0xff] %v1664_v63  ;;  %v812_v1 = vmul.f32 %v1427_v50, %v1664_v63  ;;  %v1686_v13 = vpop.f32.mrb[2].mxu1 }
  0xef   : > { %560 = vst [vmem:[%s1646_s26 + $0x98] sm:$0xff] %v1686_v13  ;;  %v1694_v17 = vpop.f32.mrb[3].mxu1 }
  0xf0   : > { %v843_v7 = vadd.f32 %v842_v58, %v812_v1  ;;  %v1680_v8 = vpop.f32.mrb[4].mxu0  ;;  %559 = vst [vmem:[%s1646_s26 + $0x90] sm:$0xff] %v1694_v17  ;;  %v801_v58 = vpop.xlane.xlu0 %800 }
  0xf1   : > { %546 = vst [vmem:[%s1646_s26 + $0x28] sm:$0xff] %v1680_v8  ;;  %v1684_v11 = vpop.f32.mrb[5].mxu0  ;;  %v815_v21 = vmul.f32 %v1680_v8, %v1460_v4 }
  0xf2   : > { %545 = vst [vmem:[%s1646_s26 + $0x20] sm:$0xff] %v1684_v11  ;;  %v814_v15 = vmul.f32 %v1450_v62, %v1684_v11  ;;  %v844_v18 = vadd.f32 %v843_v7, %v813_v6  ;;  %v1706_v32 = vpop.f32.mrb[4].mxu1 }
  0xf3   : > { %562 = vst [vmem:[%s1646_s26 + $0xa8] sm:$0xff] %v1706_v32  ;;  %v1714_v35 = vpop.f32.mrb[5].mxu1 }
  0xf4   : > { %v845_v22 = vadd.f32 %v844_v18, %v814_v15  ;;  %v1700_v27 = vpop.f32.mrb[6].mxu0  ;;  %561 = vst [vmem:[%s1646_s26 + $0xa0] sm:$0xff] %v1714_v35  ;;  %v802_v15 = vrot.slane %v801_v58, 4 }
  0xf5   : > { %548 = vst [vmem:[%s1646_s26 + $0x38] sm:$0xff] %v1700_v27  ;;  %v1704_v28 = vpop.f32.mrb[7].mxu0  ;;  %v817_v39 = vmul.f32 %v1700_v27, %v1475_v14 }
  0xf6   : > { %547 = vst [vmem:[%s1646_s26 + $0x30] sm:$0xff] %v1704_v28  ;;  %v816_v24 = vmul.f32 %v1467_v9, %v1704_v28  ;;  %v846_v34 = vadd.f32 %v845_v22, %v815_v21  ;;  %v1726_v45 = vpop.f32.mrb[6].mxu1 }
  0xf7   : > { %564 = vst [vmem:[%s1646_s26 + $0xb8] sm:$0xff] %v1726_v45  ;;  %v1734_v57 = vpop.f32.mrb[7].mxu1 }
  0xf8   : > { %v847_v40 = vadd.f32 %v846_v34, %v816_v24  ;;  %v1720_v42 = vpop.f32.mrb[8].mxu0  ;;  %563 = vst [vmem:[%s1646_s26 + $0xb0] sm:$0xff] %v1734_v57 }
  0xf9   : > { %550 = vst [vmem:[%s1646_s26 + $0x48] sm:$0xff] %v1720_v42  ;;  %v1724_v44 = vpop.f32.mrb[9].mxu0  ;;  %v819_v1 = vmul.f32 %v1720_v42, %v1489_v26 }
  0xfa   : > { %549 = vst [vmem:[%s1646_s26 + $0x40] sm:$0xff] %v1724_v44  ;;  %v818_v51 = vmul.f32 %v1482_v20, %v1724_v44  ;;  %v848_v52 = vadd.f32 %v847_v40, %v817_v39  ;;  %v1746_v21 = vpop.f32.mrb[8].mxu1  ;;  %v803_v39 = vadd.f32 %v802_v15, %v801_v58 }
  0xfb   : > { %566 = vst [vmem:[%s1646_s26 + $0xc8] sm:$0xff] %v1746_v21  ;;  %v1754_v34 = vpop.f32.mrb[9].mxu1 }
  0xfc   : > { %v849_v6 = vadd.f32 %v848_v52, %v818_v51  ;;  %v1740_v7 = vpop.f32.mrb[10].mxu0  ;;  %565 = vst [vmem:[%s1646_s26 + $0xc0] sm:$0xff] %v1754_v34  ;;  %v804_v26 = vrot.slane %v803_v39, 2 }
  0xfd   : > { %1980 = vst [vmem:[#allocation15_spill] sm:$0xff] %v1740_v7  ;;  %552 = vst [vmem:[%s1646_s26 + $0x58] sm:$0xff] %v1740_v7  ;;  %v1744_v18 = vpop.f32.mrb[11].mxu0  ;;  %v821_v40 = vmul.f32 %v1740_v7, %v1503_v36 }
  0xfe   : > { %551 = vst [vmem:[%s1646_s26 + $0x50] sm:$0xff] %v1744_v18  ;;  %v820_v22 = vmul.f32 %v1496_v31, %v1744_v18  ;;  %v850_v24 = vadd.f32 %v849_v6, %v819_v1  ;;  %v1766_v1 = vpop.f32.mrb[10].mxu1 }
  0xff   : > { %568 = vst [vmem:[%s1646_s26 + $0xd8] sm:$0xff] %v1766_v1  ;;  %v1774_v15 = vpop.f32.mrb[11].mxu1 }
 0x100   : > { %v851_v51 = vadd.f32 %v850_v24, %v820_v22  ;;  %v1760_v52 = vpop.f32.mrb[12].mxu0  ;;  %v805_v22 = vadd.f32 %v804_v26, %v803_v39  ;;  %567 = vst [vmem:[%s1646_s26 + $0xd0] sm:$0xff] %v1774_v15 }
 0x101   : > { %1981 = vst [vmem:[#allocation16_spill] sm:$0xff] %v1760_v52  ;;  %554 = vst [vmem:[%s1646_s26 + $0x68] sm:$0xff] %v1760_v52  ;;  %v1764_v31 = vpop.f32.mrb[13].mxu0  ;;  %v823_v24 = vmul.f32 %v1760_v52, %v1517_v46  ;;  %v826_v52 = vmul.f32 %v1538_v3, %v1674_v2  ;;  %v831_v3 = vmul.f32 %v1706_v32, %v1573_v37 }
 0x102   : > { %1982 = vst [vmem:[#allocation17_spill] sm:$0xff] %v1764_v31  ;;  %553 = vst [vmem:[%s1646_s26 + $0x60] sm:$0xff] %v1764_v31  ;;  %v822_v58 = vmul.f32 %v1510_v41, %v1764_v31  ;;  %v852_v6 = vadd.f32 %v851_v51, %v821_v40  ;;  %v806_v14 = vrot.slane %v805_v22, 1  ;;  %v1786_v40 = vpop.f32.mrb[12].mxu1 }
 0x103   : > { %570 = vst [vmem:[%s1646_s26 + $0xe8] sm:$0xff] %v1786_v40  ;;  %v1794_v51 = vpop.f32.mrb[13].mxu1 }
 0x104   : > { %v853_v36 = vadd.f32 %v852_v6, %v822_v58  ;;  %v1780_v20 = vpop.f32.mrb[14].mxu0  ;;  %v807_v58 = vadd.f32 %v806_v14, %v805_v22  ;;  %569 = vst [vmem:[%s1646_s26 + $0xe0] sm:$0xff] %v1794_v51  ;;  %v827_v14 = vmul.f32 %v1666_v0, %v1545_v10  ;;  %v832_v10 = vmul.f32 %v1580_v43, %v1734_v57 }
 0x105   : > { %556 = vst [vmem:[%s1646_s26 + $0x78] sm:$0xff] %v1780_v20  ;;  %v1784_v41 = vpop.f32.mrb[15].mxu0  ;;  %v825_v6 = vmul.f32 %v1780_v20, %v1531_v61 }
 0x106   : > { %555 = vst [vmem:[%s1646_s26 + $0x70] sm:$0xff] %v1784_v41  ;;  %v824_v26 = vmul.f32 %v1524_v55, %v1784_v41  ;;  %v854_v39 = vadd.f32 %v853_v36, %v823_v24  ;;  %1276 = vpush %v807_v58  ;;  %v1802_v31 = vpop.f32.mrb[14].mxu1  ;;  %v828_v24 = vmul.f32 %v1552_v16, %v1694_v17 }
 0x107   : > { %572 = vst [vmem:[%s1646_s26 + $0xf8] sm:$0xff] %v1802_v31  ;;  %v1806_v36 = vpop.f32.mrb[15].mxu1 }
 0x108   : > { %v855_v46 = vadd.f32 %v854_v39, %v824_v26  ;;  %571 = vst [vmem:[%s1646_s26 + $0xf0] sm:$0xff] %v1806_v36  ;;  %v829_v39 = vmul.f32 %v1686_v13, %v1559_v23 }
 0x10a   : > { %v856_v7 = vadd.f32 %v855_v46, %v825_v6  ;;  %v830_v46 = vmul.f32 %v1566_v30, %v1714_v35 }
 0x10c   : > { %v857_v22 = vadd.f32 %v856_v7, %v826_v52  ;;  %v833_v52 = vmul.f32 %v1726_v45, %v1587_v53 }
 0x10e   : > { %v858_v26 = vadd.f32 %v857_v22, %v827_v14  ;;  %v834_v22 = vmul.f32 %v1594_v60, %v1754_v34 }
 0x110   : > { %v859_v58 = vadd.f32 %v858_v26, %v828_v24  ;;  %v835_v26 = vmul.f32 %v1746_v21, %v1601_v5 }
 0x112   : > { %v860_v6 = vadd.f32 %v859_v58, %v829_v39  ;;  %v836_v58 = vmul.f32 %v1608_v12, %v1774_v15 }
 0x114   : > { %v861_v61 = vadd.f32 %v860_v6, %v830_v46  ;;  %v837_v6 = vmul.f32 %v1766_v1, %v1614_v19 }
 0x116   : > { %v862_v7 = vadd.f32 %v861_v61, %v831_v3  ;;  %v838_v3 = vmul.f32 %v1620_v25, %v1794_v51 }
 0x118   : > { %v863_v14 = vadd.f32 %v862_v7, %v832_v10  ;;  %v839_v7 = vmul.f32 %v1786_v40, %v1625_v29 }
 0x11a   : > { %v864_v24 = vadd.f32 %v863_v14, %v833_v52  ;;  %v840_v14 = vmul.f32 %v1630_v33, %v1806_v36 }
 0x11c   : > { %v865_v39 = vadd.f32 %v864_v24, %v834_v22  ;;  %v841_v24 = vmul.f32 %v1802_v31, %v1635_v38 }
 0x11e   : > { %v866_v46 = vadd.f32 %v865_v39, %v835_v26 }
 0x120   : > { %v867_v61 = vadd.f32 %v866_v46, %v836_v58 }
 0x122   : > { %v868_v10 = vadd.f32 %v867_v61, %v837_v6 }
 0x124   : > { %v869_v52 = vadd.f32 %v868_v10, %v838_v3 }
 0x126   : > { %v870_v22 = vadd.f32 %v869_v52, %v839_v7 }
 0x128   : > { %v871_v26 = vadd.f32 %v870_v22, %v840_v14 }
 0x12a   : > { %v872_v39 = vadd.f32 %v871_v26, %v841_v24 }
 0x12c   : > { %v873_v12 = vrot.slane %v872_v39, 4 }
 0x12e   : > { %v874_v19 = vadd.f32 %v873_v12, %v872_v39 }
 0x130   : > { %v875_v58 = vrot.slane %v874_v19, 2 }
 0x132   : > { %v876_v6 = vadd.f32 %v875_v58, %v874_v19 }
 0x134   : > { %v877_v61 = vrot.slane %v876_v6, 1 }
 0x136   : > { %v878_v3 = vadd.f32 %v877_v61, %v876_v6 }
 0x137   : > { %s1277_s27 = spop %1276 }
 0x138   : > { %s809_s29 = smax.f32 %s1299_s28, %s1277_s27 }
 0x139   : > { %v879_v46 = vstv %s809_s29 }
 0x13a   : > { %1288 = vrcp.f32 %v879_v46 }
 0x144   : > { %v1289_v10 = vpop.eup %1288 }
 0x145   : > { %v1840_v29 = vmul.f32 %v1289_v10, %v878_v3 }
 0x147   : > { %v882_v7 = vsub.f32 %v1654_v54, %v1840_v29  ;;  %v883_v52 = vsub.f32 %v1648_v47, %v1840_v29  ;;  %v884_v12 = vsub.f32 %v1664_v63, %v1840_v29  ;;  %v885_v19 = vsub.f32 %v1660_v59, %v1840_v29 }
 0x148   : > { %v886_v24 = vsub.f32 %v1684_v11, %v1840_v29  ;;  %v887_v54 = vsub.f32 %v1680_v8, %v1840_v29  ;;  %v888_v63 = vsub.f32 %v1704_v28, %v1840_v29  ;;  %v889_v59 = vsub.f32 %v1700_v27, %v1840_v29 }
 0x149   : > { %v914_v14 = vmul.f32 %v882_v7, %v882_v7  ;;  %v915_v22 = vmul.f32 %v883_v52, %v883_v52  ;;  %v916_v26 = vmul.f32 %v884_v12, %v884_v12  ;;  %v917_v47 = vmul.f32 %v885_v19, %v885_v19 }
 0x14a   : > { %v918_v46 = vmul.f32 %v886_v24, %v886_v24  ;;  %v919_v11 = vmul.f32 %v887_v54, %v887_v54  ;;  %v920_v10 = vmul.f32 %v888_v63, %v888_v63  ;;  %v891_v28 = vsub.f32 %v1720_v42, %v1840_v29  ;;  %v1985_v42 = vld [vmem:[#allocation17_spill] sm:$0xff] }
 0x14b   : > { %v946_v39 = vmul.f32 %v1420_v48, %v914_v14  ;;  %v947_v58 = vmul.f32 %v1424_v49, %v915_v22  ;;  %v948_v6 = vmul.f32 %v1427_v50, %v916_v26  ;;  %v949_v3 = vmul.f32 %v1438_v56, %v917_v47 }
 0x14c   : > { %v890_v49 = vsub.f32 %v1724_v44, %v1840_v29  ;;  %v950_v8 = vmul.f32 %v1450_v62, %v918_v46  ;;  %v921_v52 = vmul.f32 %v889_v59, %v889_v59  ;;  %v951_v50 = vmul.f32 %v1460_v4, %v919_v11  ;;  %v1983_v44 = vld [vmem:[#allocation15_spill] sm:$0xff]  ;;  %v1984_v62 = vld [vmem:[#allocation2_spill] sm:$0xff] }
 0x14d   : > { %v978_v61 = vadd.f32 %v947_v58, %v946_v39  ;;  %v892_v27 = vsub.f32 %v1744_v18, %v1840_v29  ;;  %v952_v56 = vmul.f32 %v1467_v9, %v920_v10  ;;  %v893_v19 = vsub.f32 %v1983_v44, %v1840_v29  ;;  %v1986_v4 = vld [vmem:[#allocation3_spill] sm:$0xff]  ;;  %v1987_v18 = vld [vmem:[#allocation16_spill] sm:$0xff] }
 0x14e   : > { %v922_v14 = vmul.f32 %v890_v49, %v890_v49  ;;  %v923_v24 = vmul.f32 %v891_v28, %v891_v28  ;;  %v953_v26 = vmul.f32 %v1984_v62, %v921_v52  ;;  %v894_v58 = vsub.f32 %v1985_v42, %v1840_v29  ;;  %v1988_v9 = vld [vmem:[#allocation4_spill] sm:$0xff]  ;;  %v1990_v28 = vld [vmem:[#allocation6_spill] sm:$0xff] }
 0x14f   : > { %v979_v48 = vadd.f32 %v978_v61, %v948_v6  ;;  %v924_v54 = vmul.f32 %v892_v27, %v892_v27  ;;  %v895_v46 = vsub.f32 %v1987_v18, %v1840_v29  ;;  %v925_v6 = vmul.f32 %v893_v19, %v893_v19  ;;  %v1992_v19 = vld [vmem:[#allocation8_spill] sm:$0xff]  ;;  %v1994_v18 = vld [vmem:[#allocation10_spill] sm:$0xff] }
 0x150   : > { %v954_v47 = vmul.f32 %v1986_v4, %v922_v14  ;;  %v955_v61 = vmul.f32 %v1988_v9, %v923_v24  ;;  %v896_v11 = vsub.f32 %v1784_v41, %v1840_v29  ;;  %v1991_v14 = vld [vmem:[#allocation7_spill] sm:$0xff]  ;;  %v899_v41 = vsub.f32 %v1666_v0, %v1840_v29 }
 0x151   : > { %v980_v7 = vadd.f32 %v979_v48, %v949_v3  ;;  %v926_v3 = vmul.f32 %v894_v58, %v894_v58  ;;  %v1989_v48 = vld [vmem:[#allocation5_spill] sm:$0xff]  ;;  %v957_v52 = vmul.f32 %v1990_v28, %v925_v6  ;;  %v902_v0 = vsub.f32 %v1714_v35, %v1840_v29 }
 0x152   : > { %v956_v49 = vmul.f32 %v1989_v48, %v924_v54  ;;  %v928_v27 = vmul.f32 %v896_v11, %v896_v11  ;;  %v931_v58 = vmul.f32 %v899_v41, %v899_v41  ;;  %v1993_v54 = vld [vmem:[#allocation9_spill] sm:$0xff]  ;;  %v905_v35 = vsub.f32 %v1726_v45, %v1840_v29 }
 0x153   : > { %v981_v12 = vadd.f32 %v980_v7, %v950_v8  ;;  %v897_v8 = vsub.f32 %v1780_v20, %v1840_v29  ;;  %v927_v7 = vmul.f32 %v895_v46, %v895_v46  ;;  %v900_v20 = vsub.f32 %v1694_v17, %v1840_v29 }
 0x154   : > { %v903_v17 = vsub.f32 %v1706_v32, %v1840_v29  ;;  %v934_v11 = vmul.f32 %v902_v0, %v902_v0  ;;  %v906_v32 = vsub.f32 %v1754_v34, %v1840_v29  ;;  %v908_v45 = vsub.f32 %v1774_v15, %v1840_v29 }
 0x155   : > { %v982_v22 = vadd.f32 %v981_v12, %v951_v50  ;;  %v898_v12 = vsub.f32 %v1674_v2, %v1840_v29  ;;  %v929_v44 = vmul.f32 %v897_v8, %v897_v8  ;;  %v959_v24 = vmul.f32 %v1992_v19, %v927_v7 }
 0x156   : > { %v901_v2 = vsub.f32 %v1686_v13, %v1840_v29  ;;  %v904_v13 = vsub.f32 %v1734_v57, %v1840_v29  ;;  %v966_v28 = vmul.f32 %v1566_v30, %v934_v11  ;;  %v907_v57 = vsub.f32 %v1746_v21, %v1840_v29 }
 0x157   : > { %v983_v39 = vadd.f32 %v982_v22, %v952_v56  ;;  %v958_v56 = vmul.f32 %v1991_v14, %v926_v3  ;;  %v961_v4 = vmul.f32 %v1993_v54, %v929_v44  ;;  %v909_v34 = vsub.f32 %v1766_v1, %v1840_v29 }
 0x158   : > { %v933_v9 = vmul.f32 %v901_v2, %v901_v2  ;;  %v936_v7 = vmul.f32 %v904_v13, %v904_v13  ;;  %v910_v21 = vsub.f32 %v1794_v51, %v1840_v29  ;;  %v940_v41 = vmul.f32 %v908_v45, %v908_v45 }
 0x159   : > { %v984_v63 = vadd.f32 %v983_v39, %v953_v26  ;;  %v930_v26 = vmul.f32 %v898_v12, %v898_v12  ;;  %v960_v39 = vmul.f32 %v1524_v55, %v928_v27  ;;  %v1995_v55 = vld [vmem:[#allocation11_spill] sm:$0xff]  ;;  %v938_v27 = vmul.f32 %v906_v32, %v906_v32 }
 0x15a   : > { %v911_v15 = vsub.f32 %v1786_v40, %v1840_v29  ;;  %v941_v19 = vmul.f32 %v909_v34, %v909_v34  ;;  %v912_v1 = vsub.f32 %v1806_v36, %v1840_v29  ;;  %v913_v51 = vsub.f32 %v1802_v31, %v1840_v29 }
 0x15b   : > { %v985_v59 = vadd.f32 %v984_v63, %v954_v47  ;;  %v932_v63 = vmul.f32 %v900_v20, %v900_v20  ;;  %v962_v46 = vmul.f32 %v1994_v18, %v930_v26 }
 0x15c   : > { %v944_v2 = vmul.f32 %v912_v1, %v912_v1  ;;  %v945_v54 = vmul.f32 %v913_v51, %v913_v51 }
 0x15d   : > { %v986_v10 = vadd.f32 %v985_v59, %v955_v61  ;;  %v963_v61 = vmul.f32 %v1995_v55, %v931_v58  ;;  %v964_v3 = vmul.f32 %v1552_v16, %v932_v63 }
 0x15e   : > { %v976_v0 = vmul.f32 %v1630_v33, %v944_v2  ;;  %v977_v18 = vmul.f32 %v1635_v38, %v945_v54 }
 0x15f   : > { %v987_v50 = vadd.f32 %v986_v10, %v956_v49  ;;  %v935_v49 = vmul.f32 %v903_v17, %v903_v17  ;;  %v965_v10 = vmul.f32 %v1559_v23, %v933_v9  ;;  %v968_v23 = vmul.f32 %v1580_v43, %v936_v7 }
 0x161   : > { %v988_v22 = vadd.f32 %v987_v50, %v957_v52  ;;  %v937_v50 = vmul.f32 %v905_v35, %v905_v35  ;;  %v967_v16 = vmul.f32 %v1573_v37, %v935_v49  ;;  %v970_v37 = vmul.f32 %v1594_v60, %v938_v27 }
 0x162   : > { %v943_v60 = vmul.f32 %v911_v15, %v911_v15 }
 0x163   : > { %v989_v62 = vadd.f32 %v988_v22, %v958_v56  ;;  %v939_v56 = vmul.f32 %v907_v57, %v907_v57  ;;  %v969_v30 = vmul.f32 %v1587_v53, %v937_v50  ;;  %v1996_v53 = vld [vmem:[#allocation12_spill] sm:$0xff] }
 0x164   : > { %v972_v20 = vmul.f32 %v1996_v53, %v940_v41 }
 0x165   : > { %v990_v42 = vadd.f32 %v989_v62, %v959_v24  ;;  %v971_v43 = vmul.f32 %v1601_v5, %v939_v56  ;;  %v942_v62 = vmul.f32 %v910_v21, %v910_v21 }
 0x167   : > { %v991_v47 = vadd.f32 %v990_v42, %v960_v39  ;;  %v1997_v39 = vld [vmem:[#allocation13_spill] sm:$0xff]  ;;  %v974_v5 = vmul.f32 %v1620_v25, %v942_v62 }
 0x168   : > { %v973_v42 = vmul.f32 %v1997_v39, %v941_v19 }
 0x169   : > { %v992_v6 = vadd.f32 %v991_v47, %v961_v4  ;;  %v1998_v4 = vld [vmem:[#allocation14_spill] sm:$0xff] }
 0x16a   : > { %v975_v36 = vmul.f32 %v1998_v4, %v943_v60 }
 0x16b   : > { %v993_v59 = vadd.f32 %v992_v6, %v962_v46 }
 0x16d   : > { %v994_v48 = vadd.f32 %v993_v59, %v963_v61 }
 0x16f   : > { %v995_v8 = vadd.f32 %v994_v48, %v964_v3 }
 0x171   : > { %v996_v52 = vadd.f32 %v995_v8, %v965_v10 }
 0x173   : > { %v997_v12 = vadd.f32 %v996_v52, %v966_v28 }
 0x175   : > { %v998_v14 = vadd.f32 %v997_v12, %v967_v16 }
 0x177   : > { %v999_v22 = vadd.f32 %v998_v14, %v968_v23 }
 0x179   : > { %v1000_v44 = vadd.f32 %v999_v22, %v969_v30 }
 0x17b   : > { %v1001_v24 = vadd.f32 %v1000_v44, %v970_v37 }
 0x17d   : > { %v1002_v26 = vadd.f32 %v1001_v24, %v971_v43 }
 0x17f   : > { %v1003_v40 = vadd.f32 %v1002_v26, %v972_v20 }
 0x181   : > { %v1004_v58 = vadd.f32 %v1003_v40, %v973_v42 }
 0x183   : > { %v1005_v47 = vadd.f32 %v1004_v58, %v974_v5 }
 0x185   : > { %v1006_v63 = vadd.f32 %v1005_v47, %v975_v36 }
 0x187   : > { %v1007_v46 = vadd.f32 %v1006_v63, %v976_v0 }
 0x189   : > { %v1008_v31 = vadd.f32 %v1007_v46, %v977_v18 }
 0x18b   : > { %v1009_v6 = vrot.slane %v1008_v31, 4 }
 0x18d   : > { %v1010_v17 = vadd.f32 %v1009_v6, %v1008_v31 }
 0x18f   : > { %v1011_v9 = vrot.slane %v1010_v17, 2 }
 0x191   : > { %v1012_v55 = vadd.f32 %v1011_v9, %v1010_v17 }
 0x193   : > { %v1013_v25 = vrot.slane %v1012_v55, 1 }
 0x195   : > { %v1014_v61 = vadd.f32 %v1013_v25, %v1012_v55 }
 0x197   : > { %v1016_v33 = vsel %vm1015_vm4, %v1840_v29, %v1014_v61 }
 0x198   : > { %v1018_v38 = vsel %vm1017_vm3, %v1016_v33, 0.0 }
 0x199   : > { %1019 = vst [vmem:[%s184_s6] sm:$0xff] %v1018_v38 }
 0x19a PF: > { %s14_s12 = sadd.s32 1, %s1296_s12  }
 0x19b   : > { %p11_p5 = scmp.ge.s32.totalorder %s14_s12, 4  }
 0x19d   :  { %13 = sbr.rel (!%p11_p5) target bundleno = 1 (0x1), region = 70 }

// kernel: bottleneck_forward.9
= control target key start
LH: loop header
LB: loop body
LE: loop exit
PB: predicated region body
PF: predicated region fallthrough
CT: control target
= control target key end

     0   :  { %s585_s15 = smov 0   ;;  %s786_s0 = inlined_call_operand.vmem [shape: f32[512,128], index: 0, kind: input, shape index: {}]   ;;  %s787_s1 = inlined_call_operand.vmem [shape: f32[1,128], index: 1, kind: input, shape index: {}]   ;;  %s788_s2 = inlined_call_operand.vmem [shape: f32[1,128], index: 2, kind: input, shape index: {}]   ;;  %s789_s3 = inlined_call_operand.vmem [shape: f32[512,128], index: 3, kind: input, shape index: {}]   ;;  %s790_s4 = inlined_call_operand.vmem [shape: f32[512,128], index: 4, kind: output, shape index: {}]  }
   0x1 LB: > { %s529_s16 = sadd.s32 4294967295, %s558_s15   ;;  %p533_p0 = scmp.ge.s32.totalorder %s558_s15, 1  ;;  %s558_s15 = sphi %s585_s15, %s14_s15  }
   0x2   : > { %p174_p1 = scmp.lt.s32.totalorder %s558_s15, 3 }
   0x4   : > { %p175_p2 = pnand %p533_p0, %p174_p1 }
   0x5   : > { %s534_s17 = sshll.u32 (!%p175_p2), %s529_s16, 5  ;;  %v598_v0 = vld [vmem:[%s787_s1] ss:$0 sm:$0xff] (!%p175_p2) }
   0x6   : > { %178 = sbr.rel (%p175_p2) target bundleno = 55 (0x37), region = 36  ;;  %p206_p3 = scmp.lt.s32.totalorder (!%p175_p2), %s534_s17, 63  ;;  %v616_v2 = vld [vmem:[%s788_s2] ss:$0 sm:$0xff] (!%p175_p2) }
   0xd   : > { %s792_s17 = smov (!%p206_p3, %s534_s17), 63 }
   0xe   : > { %s593_s18 = sshll.u32 %s792_s17, 3 }
   0xf   : > { %s604_s23 = scalar_lea.vmem %s786_s0, %s593_s18  ;;  %s610_s26 = scalar_lea.vmem %s789_s3, %s593_s18 }
  0x10   : > { %v223_v1 = vld [vmem:[%s604_s23] sm:$0xff]  ;;  %v224_v3 = vld [vmem:[%s604_s23 + $0x8] sm:$0xff]  ;;  %v225_v7 = vld [vmem:[%s604_s23 + $0x10] sm:$0xff]  ;;  %s646_s5 = scalar_lea.vmem %s790_s4, %s593_s18 }
  0x11   : > { %v262_v4 = vmul.f32 %v598_v0, %v223_v1  ;;  %v333_v5 = vld [vmem:[%s610_s26] sm:$0xff]  ;;  %v263_v6 = vmul.f32 %v598_v0, %v224_v3  ;;  %v334_v8 = vld [vmem:[%s610_s26 + $0x8] sm:$0xff]  ;;  %v264_v9 = vmul.f32 %v598_v0, %v225_v7  ;;  %v226_v10 = vld [vmem:[%s604_s23 + $0x18] sm:$0xff] }
  0x12   : > { %v227_v11 = vld [vmem:[%s604_s23 + $0x20] sm:$0xff]  ;;  %v335_v14 = vld [vmem:[%s610_s26 + $0x10] sm:$0xff]  ;;  %v265_v15 = vmul.f32 %v598_v0, %v226_v10  ;;  %v336_v16 = vld [vmem:[%s610_s26 + $0x18] sm:$0xff] }
  0x13   : > { %v301_v12 = vadd.f32 %v616_v2, %v262_v4  ;;  %v302_v13 = vadd.f32 %v616_v2, %v263_v6  ;;  %v266_v17 = vmul.f32 %v598_v0, %v227_v11  ;;  %v228_v18 = vld [vmem:[%s604_s23 + $0x28] sm:$0xff]  ;;  %v303_v19 = vadd.f32 %v616_v2, %v264_v9  ;;  %v337_v20 = vld [vmem:[%s610_s26 + $0x20] sm:$0xff]  ;;  %v229_v22 = vld [vmem:[%s604_s23 + $0x30] sm:$0xff] }
  0x14   : > { %v267_v21 = vmul.f32 %v598_v0, %v228_v18  ;;  %v230_v23 = vld [vmem:[%s604_s23 + $0x38] sm:$0xff]  ;;  %v304_v26 = vadd.f32 %v616_v2, %v265_v15  ;;  %v338_v28 = vld [vmem:[%s610_s26 + $0x28] sm:$0xff]  ;;  %v268_v31 = vmul.f32 %v598_v0, %v229_v22  ;;  %v231_v33 = vld [vmem:[%s604_s23 + $0x40] sm:$0xff] }
  0x15   : > { %v365_v24 = vadd.f32 %v333_v5, %v301_v12  ;;  %v366_v25 = vadd.f32 %v334_v8, %v302_v13  ;;  %v305_v27 = vadd.f32 %v616_v2, %v266_v17  ;;  %v367_v29 = vadd.f32 %v335_v14, %v303_v19  ;;  %v232_v34 = vld [vmem:[%s604_s23 + $0x48] sm:$0xff]  ;;  %v339_v39 = vld [vmem:[%s610_s26 + $0x30] sm:$0xff]  ;;  %v340_v40 = vld [vmem:[%s610_s26 + $0x38] sm:$0xff] }
  0x16   : > { %v306_v30 = vadd.f32 %v616_v2, %v267_v21  ;;  %v269_v32 = vmul.f32 %v598_v0, %v230_v23  ;;  %v368_v37 = vadd.f32 %v336_v16, %v304_v26  ;;  %v233_v41 = vld [vmem:[%s604_s23 + $0x50] sm:$0xff]  ;;  %v307_v44 = vadd.f32 %v616_v2, %v268_v31  ;;  %v234_v46 = vld [vmem:[%s604_s23 + $0x58] sm:$0xff]  ;;  %v235_v47 = vld [vmem:[%s604_s23 + $0x60] sm:$0xff] }
  0x17   : > { %v397_v35 = vmax.f32 %v365_v24, 0.0  ;;  %v398_v36 = vmax.f32 %v366_v25, 0.0  ;;  %v369_v38 = vadd.f32 %v337_v20, %v305_v27  ;;  %v399_v42 = vmax.f32 %v367_v29, 0.0  ;;  %v236_v52 = vld [vmem:[%s604_s23 + $0x68] sm:$0xff]  ;;  %v341_v56 = vld [vmem:[%s610_s26 + $0x40] sm:$0xff]  ;;  %v343_v61 = vld [vmem:[%s610_s26 + $0x50] sm:$0xff] }
  0x18   : > { %v370_v43 = vadd.f32 %v338_v28, %v306_v30  ;;  %v308_v45 = vadd.f32 %v616_v2, %v269_v32  ;;  %v400_v48 = vmax.f32 %v368_v37, 0.0  ;;  %v270_v50 = vmul.f32 %v598_v0, %v231_v33  ;;  %v342_v57 = vld [vmem:[%s610_s26 + $0x48] sm:$0xff]  ;;  %v237_v1 = vld [vmem:[%s604_s23 + $0x70] sm:$0xff]  ;;  %v238_v3 = vld [vmem:[%s604_s23 + $0x78] sm:$0xff] }
  0x19   : > { %429 = vst [vmem:[%s646_s5] sm:$0xff] %v397_v35  ;;  %430 = vst [vmem:[%s646_s5 + $0x8] sm:$0xff] %v398_v36  ;;  %v401_v49 = vmax.f32 %v369_v38, 0.0  ;;  %v271_v51 = vmul.f32 %v598_v0, %v232_v34  ;;  %v371_v54 = vadd.f32 %v339_v39, %v307_v44  ;;  %v272_v58 = vmul.f32 %v598_v0, %v233_v41  ;;  %v344_v7 = vld [vmem:[%s610_s26 + $0x58] sm:$0xff]  ;;  %v345_v8 = vld [vmem:[%s610_s26 + $0x60] sm:$0xff] }
  0x1a   : > { %431 = vst [vmem:[%s646_s5 + $0x10] sm:$0xff] %v399_v42  ;;  %v402_v53 = vmax.f32 %v370_v43, 0.0  ;;  %v372_v55 = vadd.f32 %v340_v40, %v308_v45  ;;  %432 = vst [vmem:[%s646_s5 + $0x18] sm:$0xff] %v400_v48  ;;  %v309_v59 = vadd.f32 %v616_v2, %v270_v50  ;;  %v273_v62 = vmul.f32 %v598_v0, %v234_v46  ;;  %v346_v14 = vld [vmem:[%s610_s26 + $0x68] sm:$0xff]  ;;  %v239_v19 = vld [vmem:[%s604_s23 + $0x80] sm:$0xff] }
  0x1b   : > { %433 = vst [vmem:[%s646_s5 + $0x20] sm:$0xff] %v401_v49  ;;  %v310_v60 = vadd.f32 %v616_v2, %v271_v51  ;;  %v274_v63 = vmul.f32 %v598_v0, %v235_v47  ;;  %v403_v4 = vmax.f32 %v371_v54, 0.0  ;;  %v311_v6 = vadd.f32 %v616_v2, %v272_v58  ;;  %v240_v20 = vld [vmem:[%s604_s23 + $0x88] sm:$0xff]  ;;  %v347_v25 = vld [vmem:[%s610_s26 + $0x70] sm:$0xff]  ;;  %v348_v26 = vld [vmem:[%s610_s26 + $0x78] sm:$0xff] }
  0x1c   : > { %434 = vst [vmem:[%s646_s5 + $0x28] sm:$0xff] %v402_v53  ;;  %v404_v5 = vmax.f32 %v372_v55, 0.0  ;;  %v275_v9 = vmul.f32 %v598_v0, %v236_v52  ;;  %v373_v10 = vadd.f32 %v341_v56, %v309_v59  ;;  %v312_v12 = vadd.f32 %v616_v2, %v273_v62  ;;  %v241_v27 = vld [vmem:[%s604_s23 + $0x90] sm:$0xff]  ;;  %v242_v32 = vld [vmem:[%s604_s23 + $0x98] sm:$0xff]  ;;  %v243_v33 = vld [vmem:[%s604_s23 + $0xa0] sm:$0xff] }
  0x1d   : > { %v374_v11 = vadd.f32 %v342_v57, %v310_v60  ;;  %v313_v13 = vadd.f32 %v616_v2, %v274_v63  ;;  %435 = vst [vmem:[%s646_s5 + $0x30] sm:$0xff] %v403_v4  ;;  %v375_v15 = vadd.f32 %v343_v61, %v311_v6  ;;  %v276_v17 = vmul.f32 %v598_v0, %v237_v1  ;;  %v244_v38 = vld [vmem:[%s604_s23 + $0xa8] sm:$0xff]  ;;  %v349_v42 = vld [vmem:[%s610_s26 + $0x80] sm:$0xff]  ;;  %v351_v47 = vld [vmem:[%s610_s26 + $0x90] sm:$0xff] }
  0x1e   : > { %436 = vst [vmem:[%s646_s5 + $0x38] sm:$0xff] %v404_v5  ;;  %v314_v16 = vadd.f32 %v616_v2, %v275_v9  ;;  %v277_v18 = vmul.f32 %v598_v0, %v238_v3  ;;  %v405_v21 = vmax.f32 %v373_v10, 0.0  ;;  %v376_v23 = vadd.f32 %v344_v7, %v312_v12  ;;  %v350_v43 = vld [vmem:[%s610_s26 + $0x88] sm:$0xff]  ;;  %v245_v50 = vld [vmem:[%s604_s23 + $0xb0] sm:$0xff]  ;;  %v246_v51 = vld [vmem:[%s604_s23 + $0xb8] sm:$0xff] }
  0x1f   : > { %v406_v22 = vmax.f32 %v374_v11, 0.0  ;;  %v377_v24 = vadd.f32 %v345_v8, %v313_v13  ;;  %v407_v28 = vmax.f32 %v375_v15, 0.0  ;;  %v315_v30 = vadd.f32 %v616_v2, %v276_v17  ;;  %v352_v55 = vld [vmem:[%s610_s26 + $0x98] sm:$0xff]  ;;  %v353_v56 = vld [vmem:[%s610_s26 + $0xa0] sm:$0xff]  ;;  %v354_v62 = vld [vmem:[%s610_s26 + $0xa8] sm:$0xff] }
  0x20   : > { %v378_v29 = vadd.f32 %v346_v14, %v314_v16  ;;  %v316_v31 = vadd.f32 %v616_v2, %v277_v18  ;;  %437 = vst [vmem:[%s646_s5 + $0x40] sm:$0xff] %v405_v21  ;;  %v408_v34 = vmax.f32 %v376_v23, 0.0  ;;  %v278_v36 = vmul.f32 %v598_v0, %v239_v19  ;;  %v247_v5 = vld [vmem:[%s604_s23 + $0xc0] sm:$0xff]  ;;  %v248_v6 = vld [vmem:[%s604_s23 + $0xc8] sm:$0xff]  ;;  %v355_v11 = vld [vmem:[%s610_s26 + $0xb0] sm:$0xff] }
  0x21   : > { %438 = vst [vmem:[%s646_s5 + $0x48] sm:$0xff] %v406_v22  ;;  %v409_v35 = vmax.f32 %v377_v24, 0.0  ;;  %v279_v37 = vmul.f32 %v598_v0, %v240_v20  ;;  %439 = vst [vmem:[%s646_s5 + $0x50] sm:$0xff] %v407_v28  ;;  %v379_v40 = vadd.f32 %v347_v25, %v315_v30  ;;  %v280_v44 = vmul.f32 %v598_v0, %v241_v27  ;;  %v356_v12 = vld [vmem:[%s610_s26 + $0xb8] sm:$0xff]  ;;  %v249_v13 = vld [vmem:[%s604_s23 + $0xd0] sm:$0xff] }
  0x22   : > { %v410_v39 = vmax.f32 %v378_v29, 0.0  ;;  %v380_v41 = vadd.f32 %v348_v26, %v316_v31  ;;  %440 = vst [vmem:[%s646_s5 + $0x58] sm:$0xff] %v408_v34  ;;  %v317_v45 = vadd.f32 %v616_v2, %v278_v36  ;;  %v281_v48 = vmul.f32 %v598_v0, %v242_v32  ;;  %v250_v18 = vld [vmem:[%s604_s23 + $0xd8] sm:$0xff]  ;;  %v251_v19 = vld [vmem:[%s604_s23 + $0xe0] sm:$0xff]  ;;  %v252_v24 = vld [vmem:[%s604_s23 + $0xe8] sm:$0xff] }
  0x23   : > { %441 = vst [vmem:[%s646_s5 + $0x60] sm:$0xff] %v409_v35  ;;  %v318_v46 = vadd.f32 %v616_v2, %v279_v37  ;;  %v282_v49 = vmul.f32 %v598_v0, %v243_v33  ;;  %v411_v52 = vmax.f32 %v379_v40, 0.0  ;;  %v319_v54 = vadd.f32 %v616_v2, %v280_v44  ;;  %v357_v28 = vld [vmem:[%s610_s26 + $0xc0] sm:$0xff]  ;;  %v358_v29 = vld [vmem:[%s610_s26 + $0xc8] sm:$0xff]  ;;  %v359_v33 = vld [vmem:[%s610_s26 + $0xd0] sm:$0xff] }
  0x24   : > { %442 = vst [vmem:[%s646_s5 + $0x68] sm:$0xff] %v410_v39  ;;  %v412_v53 = vmax.f32 %v380_v41, 0.0  ;;  %v283_v57 = vmul.f32 %v598_v0, %v244_v38  ;;  %v381_v58 = vadd.f32 %v349_v42, %v317_v45  ;;  %v320_v60 = vadd.f32 %v616_v2, %v281_v48  ;;  %v253_v36 = vld [vmem:[%s604_s23 + $0xf0] sm:$0xff]  ;;  %v254_v37 = vld [vmem:[%s604_s23 + $0xf8] sm:$0xff]  ;;  %v361_v42 = vld [vmem:[%s610_s26 + $0xe0] sm:$0xff] }
  0x25   : > { %v382_v59 = vadd.f32 %v350_v43, %v318_v46  ;;  %v321_v61 = vadd.f32 %v616_v2, %v282_v49  ;;  %443 = vst [vmem:[%s646_s5 + $0x70] sm:$0xff] %v411_v52  ;;  %v383_v63 = vadd.f32 %v351_v47, %v319_v54  ;;  %v284_v3 = vmul.f32 %v598_v0, %v245_v50  ;;  %v360_v41 = vld [vmem:[%s610_s26 + $0xd8] sm:$0xff]  ;;  %v362_v48 = vld [vmem:[%s610_s26 + $0xe8] sm:$0xff] }
  0x26   : > { %444 = vst [vmem:[%s646_s5 + $0x78] sm:$0xff] %v412_v53  ;;  %v322_v1 = vadd.f32 %v616_v2, %v283_v57  ;;  %v285_v4 = vmul.f32 %v598_v0, %v246_v51  ;;  %v413_v7 = vmax.f32 %v381_v58, 0.0  ;;  %v384_v9 = vadd.f32 %v352_v55, %v320_v60  ;;  %v363_v57 = vld [vmem:[%s610_s26 + $0xf0] sm:$0xff]  ;;  %v364_v58 = vld [vmem:[%s610_s26 + $0xf8] sm:$0xff] }
  0x27   : > { %v414_v8 = vmax.f32 %v382_v59, 0.0  ;;  %v385_v10 = vadd.f32 %v353_v56, %v321_v61  ;;  %v415_v14 = vmax.f32 %v383_v63, 0.0  ;;  %v323_v16 = vadd.f32 %v616_v2, %v284_v3 }
  0x28   : > { %v386_v15 = vadd.f32 %v354_v62, %v322_v1  ;;  %v324_v17 = vadd.f32 %v616_v2, %v285_v4  ;;  %445 = vst [vmem:[%s646_s5 + $0x80] sm:$0xff] %v413_v7  ;;  %v416_v20 = vmax.f32 %v384_v9, 0.0  ;;  %v286_v22 = vmul.f32 %v598_v0, %v247_v5 }
  0x29   : > { %446 = vst [vmem:[%s646_s5 + $0x88] sm:$0xff] %v414_v8  ;;  %v417_v21 = vmax.f32 %v385_v10, 0.0  ;;  %v287_v23 = vmul.f32 %v598_v0, %v248_v6  ;;  %447 = vst [vmem:[%s646_s5 + $0x90] sm:$0xff] %v415_v14  ;;  %v387_v26 = vadd.f32 %v355_v11, %v323_v16  ;;  %v288_v30 = vmul.f32 %v598_v0, %v249_v13 }
  0x2a   : > { %v418_v25 = vmax.f32 %v386_v15, 0.0  ;;  %v388_v27 = vadd.f32 %v356_v12, %v324_v17  ;;  %448 = vst [vmem:[%s646_s5 + $0x98] sm:$0xff] %v416_v20  ;;  %v325_v31 = vadd.f32 %v616_v2, %v286_v22  ;;  %v289_v34 = vmul.f32 %v598_v0, %v250_v18 }
  0x2b   : > { %449 = vst [vmem:[%s646_s5 + $0xa0] sm:$0xff] %v417_v21  ;;  %v326_v32 = vadd.f32 %v616_v2, %v287_v23  ;;  %v290_v35 = vmul.f32 %v598_v0, %v251_v19  ;;  %v419_v38 = vmax.f32 %v387_v26, 0.0  ;;  %v327_v40 = vadd.f32 %v616_v2, %v288_v30 }
  0x2c   : > { %450 = vst [vmem:[%s646_s5 + $0xa8] sm:$0xff] %v418_v25  ;;  %v420_v39 = vmax.f32 %v388_v27, 0.0  ;;  %v291_v43 = vmul.f32 %v598_v0, %v252_v24  ;;  %v389_v44 = vadd.f32 %v357_v28, %v325_v31  ;;  %v328_v46 = vadd.f32 %v616_v2, %v289_v34 }
  0x2d   : > { %v390_v45 = vadd.f32 %v358_v29, %v326_v32  ;;  %v329_v47 = vadd.f32 %v616_v2, %v290_v35  ;;  %451 = vst [vmem:[%s646_s5 + $0xb0] sm:$0xff] %v419_v38  ;;  %v391_v49 = vadd.f32 %v359_v33, %v327_v40  ;;  %v292_v51 = vmul.f32 %v598_v0, %v253_v36 }
  0x2e   : > { %452 = vst [vmem:[%s646_s5 + $0xb8] sm:$0xff] %v420_v39  ;;  %v330_v50 = vadd.f32 %v616_v2, %v291_v43  ;;  %v293_v52 = vmul.f32 %v598_v0, %v254_v37  ;;  %v421_v53 = vmax.f32 %v389_v44, 0.0  ;;  %v392_v55 = vadd.f32 %v360_v41, %v328_v46 }
  0x2f   : > { %v422_v54 = vmax.f32 %v390_v45, 0.0  ;;  %v393_v56 = vadd.f32 %v361_v42, %v329_v47  ;;  %v423_v59 = vmax.f32 %v391_v49, 0.0  ;;  %v331_v61 = vadd.f32 %v616_v2, %v292_v51 }
  0x30   : > { %v394_v60 = vadd.f32 %v362_v48, %v330_v50  ;;  %v332_v62 = vadd.f32 %v616_v2, %v293_v52  ;;  %453 = vst [vmem:[%s646_s5 + $0xc0] sm:$0xff] %v421_v53  ;;  %v424_v0 = vmax.f32 %v392_v55, 0.0 }
  0x31   : > { %454 = vst [vmem:[%s646_s5 + $0xc8] sm:$0xff] %v422_v54  ;;  %v425_v63 = vmax.f32 %v393_v56, 0.0  ;;  %455 = vst [vmem:[%s646_s5 + $0xd0] sm:$0xff] %v423_v59  ;;  %v395_v3 = vadd.f32 %v363_v57, %v331_v61 }
  0x32   : > { %v426_v1 = vmax.f32 %v394_v60, 0.0  ;;  %v396_v4 = vadd.f32 %v364_v58, %v332_v62  ;;  %456 = vst [vmem:[%s646_s5 + $0xd8] sm:$0xff] %v424_v0 }
  0x33   : > { %457 = vst [vmem:[%s646_s5 + $0xe0] sm:$0xff] %v425_v63  ;;  %v427_v5 = vmax.f32 %v395_v3, 0.0 }
  0x34   : > { %458 = vst [vmem:[%s646_s5 + $0xe8] sm:$0xff] %v426_v1  ;;  %v428_v6 = vmax.f32 %v396_v4, 0.0 }
  0x35   : > { %459 = vst [vmem:[%s646_s5 + $0xf0] sm:$0xff] %v427_v5 }
  0x36   : > { %460 = vst [vmem:[%s646_s5 + $0xf8] sm:$0xff] %v428_v6 }
  0x37 PF: > { %s14_s15 = sadd.s32 1, %s558_s15  }
  0x38   : > { %p11_p4 = scmp.ge.s32.totalorder %s14_s15, 4  }
  0x3a   :  { %13 = sbr.rel (!%p11_p4) target bundleno = 1 (0x1), region = 69 }

// kernel: bottleneck_forward.7
= control target key start
LH: loop header
LB: loop body
LE: loop exit
PB: predicated region body
PF: predicated region fallthrough
CT: control target
= control target key end

     0   :  { %s2923_s12 = smov 0   ;;  %s4548_s0 = inlined_call_operand.vmem [shape: f32[512,1152], index: 0, kind: input, shape index: {}]   ;;  %s4549_s1 = inlined_call_operand.vmem [shape: f32[1152,128], index: 1, kind: input, shape index: {}]   ;;  %s4550_s2 = inlined_call_operand.vmem [shape: f32[512,128], index: 2, kind: output, shape index: {0}]   ;;  %s4551_s3 = inlined_call_operand.vmem [shape: f32[2,8,128], index: 3, kind: output, shape index: {1}]  }
   0x1 LB: > { %s2929_s13 = sadd.s32 4294967295, %s2898_s12   ;;  %p2315_p0 = scmp.ge.s32.totalorder %s2898_s12, 1  ;;  %s2898_s12 = sphi %s2923_s12, %s14_s12  }
   0x2   : > { %p142_p1 = scmp.lt.s32.totalorder %s2898_s12, 3 }
   0x4   : > { %p143_p2 = pnand %p2315_p0, %p142_p1 }
   0x6   : > { %146 = sbr.rel (%p143_p2) target bundleno = 729 (0x2d9), region = 28 }
   0xd   : > { %v476_v0 = vld [vmem:[%s4549_s1] sm:$0xff]  ;;  %v477_v1 = vld [vmem:[%s4549_s1 + $0x8] sm:$0xff]  ;;  %v2900_v3 = vmov 0.0|0.0   ;;  %v478_v6 = vld [vmem:[%s4549_s1 + $0x10] sm:$0xff]  ;;  %s2316_s30 = sshll.u32 %s2929_s13, 5  ;;  %s2321_s24 = sshll.u32 %s2929_s13, 8 }
   0xe   : > { %v508_v2 = vld [vmem:[%s4549_s1 + $0x100] sm:$0xff]  ;;  %2484 = vmatprep.subr.bf16.mxu1 %v2900_v3  ;;  %2532 = vmatprep.subr.bf16.mxu0 %v2900_v3  ;;  %v2485_v4 = vpack.c.bf16 %v477_v1, %v476_v0  ;;  %v509_v5 = vld [vmem:[%s4549_s1 + $0x108] sm:$0xff]  ;;  %v479_v7 = vld [vmem:[%s4549_s1 + $0x18] sm:$0xff]  ;;  %p172_p3 = scmp.lt.s32.totalorder %s2316_s30, 63  ;;  %vm1940_vm2 = vcmask 7168   ;;  %s2902_s6 = smov 1.0  }
   0xf   : > { %v2533_v8 = vpack.c.bf16 %v509_v5, %v508_v2  ;;  %v510_v9 = vld [vmem:[%s4549_s1 + $0x110] sm:$0xff]  ;;  %v511_v10 = vld [vmem:[%s4549_s1 + $0x118] sm:$0xff]  ;;  %v2488_v11 = vpack.c.bf16 %v479_v7, %v478_v6  ;;  %v480_v13 = vld [vmem:[%s4549_s1 + $0x20] sm:$0xff]  ;;  %p184_p4 = scmp.lt.s32.totalorder %s2929_s13, 1 }
  0x10   : > { %2486 = vmatpush1.bf16.msra.mxu1 %v2485_v4  ;;  %v2536_v12 = vpack.c.bf16 %v511_v10, %v510_v9  ;;  %v481_v14 = vld [vmem:[%s4549_s1 + $0x28] sm:$0xff]  ;;  %v512_v15 = vld [vmem:[%s4549_s1 + $0x120] sm:$0xff]  ;;  %v482_v19 = vld [vmem:[%s4549_s1 + $0x30] sm:$0xff]  ;;  %s4681_s30 = smov (!%p172_p3, %s2316_s30), 63 }
  0x11   : > { %2534 = vmatpush1.bf16.msra.mxu0 %v2533_v8  ;;  %2487 = vmatprep.subr.bf16.mxu1 %v2900_v3  ;;  %v513_v16 = vld [vmem:[%s4549_s1 + $0x128] sm:$0xff]  ;;  %v2491_v17 = vpack.c.bf16 %v481_v14, %v480_v13  ;;  %v483_v20 = vld [vmem:[%s4549_s1 + $0x38] sm:$0xff]  ;;  %v514_v21 = vld [vmem:[%s4549_s1 + $0x130] sm:$0xff]  ;;  %s2876_s4 = smul.u32 72, %s4681_s30  ;;  %s4683_s13 = smov (!%p184_p4, %s2929_s13), 1 }
  0x12   : > { %2535 = vmatprep.subr.bf16.mxu0 %v2900_v3  ;;  %v2539_v18 = vpack.c.bf16 %v513_v16, %v512_v15  ;;  %v515_v22 = vld [vmem:[%s4549_s1 + $0x138] sm:$0xff]  ;;  %v2494_v23 = vpack.c.bf16 %v483_v20, %v482_v19  ;;  %v484_v25 = vld [vmem:[%s4549_s1 + $0x40] sm:$0xff]  ;;  %v485_v26 = vld [vmem:[%s4549_s1 + $0x48] sm:$0xff]  ;;  %s2320_s8 = sshll.u32 %s4683_s13, 3 }
  0x13   : > { %v2542_v24 = vpack.c.bf16 %v515_v22, %v514_v21  ;;  %v516_v27 = vld [vmem:[%s4549_s1 + $0x140] sm:$0xff]  ;;  %v517_v28 = vld [vmem:[%s4549_s1 + $0x148] sm:$0xff]  ;;  %v2497_v29 = vpack.c.bf16 %v485_v26, %v484_v25  ;;  %v486_v31 = vld [vmem:[%s4549_s1 + $0x50] sm:$0xff]  ;;  %s3022_s17 = scalar_lea.vmem %s4548_s0, %s2876_s4  ;;  %s187_s11 = scalar_lea.vmem %s4551_s3, %s2320_s8 }
  0x14   : > { %2489 = vmatpush1.bf16.msra.mxu1 %v2488_v11  ;;  %v2545_v30 = vpack.c.bf16 %v517_v28, %v516_v27  ;;  %v487_v32 = vld [vmem:[%s4549_s1 + $0x58] sm:$0xff]  ;;  %v518_v33 = vld [vmem:[%s4549_s1 + $0x150] sm:$0xff]  ;;  %v488_v37 = vld [vmem:[%s4549_s1 + $0x60] sm:$0xff] }
  0x15   : > { %2537 = vmatpush1.bf16.msra.mxu0 %v2536_v12  ;;  %2490 = vmatprep.subr.bf16.mxu1 %v2900_v3  ;;  %v519_v34 = vld [vmem:[%s4549_s1 + $0x158] sm:$0xff]  ;;  %v2500_v35 = vpack.c.bf16 %v487_v32, %v486_v31  ;;  %v489_v38 = vld [vmem:[%s4549_s1 + $0x68] sm:$0xff]  ;;  %v520_v39 = vld [vmem:[%s4549_s1 + $0x160] sm:$0xff] }
  0x16   : > { %2538 = vmatprep.subr.bf16.mxu0 %v2900_v3  ;;  %v2548_v36 = vpack.c.bf16 %v519_v34, %v518_v33  ;;  %v521_v40 = vld [vmem:[%s4549_s1 + $0x168] sm:$0xff]  ;;  %v191_v42 = vld [vmem:[%s3022_s17 + $0x18] sm:$0xff]  ;;  %v2503_v43 = vpack.c.bf16 %v489_v38, %v488_v37  ;;  %v490_v45 = vld [vmem:[%s4549_s1 + $0x70] sm:$0xff] }
  0x17   : > { %v189_v41 = vld [vmem:[%s3022_s17 + $0x8] sm:$0xff]  ;;  %909 = vmatprep.mubr.f32.mxu0 %v191_v42  ;;  %v2551_v44 = vpack.c.bf16 %v521_v40, %v520_v39  ;;  %v491_v46 = vld [vmem:[%s4549_s1 + $0x78] sm:$0xff]  ;;  %v522_v47 = vld [vmem:[%s4549_s1 + $0x170] sm:$0xff] }
  0x18   : > { %2492 = vmatpush1.bf16.msra.mxu1 %v2491_v17  ;;  %684 = vmatprep.mubr.f32.mxu1 %v189_v41  ;;  %v523_v48 = vld [vmem:[%s4549_s1 + $0x178] sm:$0xff]  ;;  %v2506_v49 = vpack.c.bf16 %v491_v46, %v490_v45  ;;  %v492_v51 = vld [vmem:[%s4549_s1 + $0x80] sm:$0xff]  ;;  %v493_v52 = vld [vmem:[%s4549_s1 + $0x88] sm:$0xff] }
  0x19   : > { %2540 = vmatpush1.bf16.msra.mxu0 %v2539_v18  ;;  %2493 = vmatprep.subr.bf16.mxu1 %v2900_v3  ;;  %v2554_v50 = vpack.c.bf16 %v523_v48, %v522_v47  ;;  %v524_v53 = vld [vmem:[%s4549_s1 + $0x180] sm:$0xff]  ;;  %v525_v54 = vld [vmem:[%s4549_s1 + $0x188] sm:$0xff]  ;;  %v2509_v55 = vpack.c.bf16 %v493_v52, %v492_v51  ;;  %v494_v57 = vld [vmem:[%s4549_s1 + $0x90] sm:$0xff] }
  0x1a   : > { %2541 = vmatprep.subr.bf16.mxu0 %v2900_v3  ;;  %v2557_v56 = vpack.c.bf16 %v525_v54, %v524_v53  ;;  %v495_v58 = vld [vmem:[%s4549_s1 + $0x98] sm:$0xff]  ;;  %v526_v59 = vld [vmem:[%s4549_s1 + $0x190] sm:$0xff]  ;;  %v496_v63 = vld [vmem:[%s4549_s1 + $0xa0] sm:$0xff] }
  0x1b   : > { %v527_v60 = vld [vmem:[%s4549_s1 + $0x198] sm:$0xff]  ;;  %v2512_v61 = vpack.c.bf16 %v495_v58, %v494_v57  ;;  %v497_v0 = vld [vmem:[%s4549_s1 + $0xa8] sm:$0xff]  ;;  %v528_v1 = vld [vmem:[%s4549_s1 + $0x1a0] sm:$0xff] }
  0x1c   : > { %2495 = vmatpush1.bf16.msra.mxu1 %v2494_v23  ;;  %v2560_v62 = vpack.c.bf16 %v527_v60, %v526_v59  ;;  %v529_v2 = vld [vmem:[%s4549_s1 + $0x1a8] sm:$0xff]  ;;  %v2515_v4 = vpack.c.bf16 %v497_v0, %v496_v63  ;;  %v498_v6 = vld [vmem:[%s4549_s1 + $0xb0] sm:$0xff]  ;;  %v499_v7 = vld [vmem:[%s4549_s1 + $0xb8] sm:$0xff] }
  0x1d   : > { %2543 = vmatpush1.bf16.msra.mxu0 %v2542_v24  ;;  %2496 = vmatprep.subr.bf16.mxu1 %v2900_v3  ;;  %v2563_v5 = vpack.c.bf16 %v529_v2, %v528_v1  ;;  %v530_v8 = vld [vmem:[%s4549_s1 + $0x1b0] sm:$0xff]  ;;  %v531_v9 = vld [vmem:[%s4549_s1 + $0x1b8] sm:$0xff]  ;;  %v2518_v10 = vpack.c.bf16 %v499_v7, %v498_v6  ;;  %v500_v12 = vld [vmem:[%s4549_s1 + $0xc0] sm:$0xff] }
  0x1e   : > { %2544 = vmatprep.subr.bf16.mxu0 %v2900_v3  ;;  %v2566_v11 = vpack.c.bf16 %v531_v9, %v530_v8  ;;  %v501_v13 = vld [vmem:[%s4549_s1 + $0xc8] sm:$0xff]  ;;  %v532_v14 = vld [vmem:[%s4549_s1 + $0x1c0] sm:$0xff]  ;;  %v502_v18 = vld [vmem:[%s4549_s1 + $0xd0] sm:$0xff] }
  0x1f   : > { %v533_v15 = vld [vmem:[%s4549_s1 + $0x1c8] sm:$0xff]  ;;  %v2521_v16 = vpack.c.bf16 %v501_v13, %v500_v12  ;;  %v503_v19 = vld [vmem:[%s4549_s1 + $0xd8] sm:$0xff]  ;;  %v534_v20 = vld [vmem:[%s4549_s1 + $0x1d0] sm:$0xff] }
  0x20   : > { %2498 = vmatpush1.bf16.msra.mxu1 %v2497_v29  ;;  %v2569_v17 = vpack.c.bf16 %v533_v15, %v532_v14  ;;  %v535_v21 = vld [vmem:[%s4549_s1 + $0x1d8] sm:$0xff]  ;;  %v2524_v22 = vpack.c.bf16 %v503_v19, %v502_v18  ;;  %v504_v24 = vld [vmem:[%s4549_s1 + $0xe0] sm:$0xff]  ;;  %v505_v25 = vld [vmem:[%s4549_s1 + $0xe8] sm:$0xff] }
  0x21   : > { %2546 = vmatpush1.bf16.msra.mxu0 %v2545_v30  ;;  %2499 = vmatprep.subr.bf16.mxu1 %v2900_v3  ;;  %v2572_v23 = vpack.c.bf16 %v535_v21, %v534_v20  ;;  %v536_v26 = vld [vmem:[%s4549_s1 + $0x1e0] sm:$0xff]  ;;  %v537_v27 = vld [vmem:[%s4549_s1 + $0x1e8] sm:$0xff]  ;;  %v2527_v28 = vpack.c.bf16 %v505_v25, %v504_v24  ;;  %v506_v30 = vld [vmem:[%s4549_s1 + $0xf0] sm:$0xff] }
  0x22   : > { %2547 = vmatprep.subr.bf16.mxu0 %v2900_v3  ;;  %v2575_v29 = vpack.c.bf16 %v537_v27, %v536_v26  ;;  %v507_v31 = vld [vmem:[%s4549_s1 + $0xf8] sm:$0xff]  ;;  %v538_v32 = vld [vmem:[%s4549_s1 + $0x1f0] sm:$0xff]  ;;  %v541_v37 = vld [vmem:[%s4549_s1 + $0x208] sm:$0xff] }
  0x23   : > { %v539_v33 = vld [vmem:[%s4549_s1 + $0x1f8] sm:$0xff]  ;;  %v2530_v34 = vpack.c.bf16 %v507_v31, %v506_v30  ;;  %v572_v38 = vld [vmem:[%s4549_s1 + $0x300] sm:$0xff]  ;;  %v573_v39 = vld [vmem:[%s4549_s1 + $0x308] sm:$0xff] }
  0x24   : > { %2501 = vmatpush1.bf16.msra.mxu1 %v2500_v35  ;;  %v2578_v35 = vpack.c.bf16 %v539_v33, %v538_v32  ;;  %v188_v40 = vld [vmem:[%s3022_s17] sm:$0xff]  ;;  %v190_v41 = vld [vmem:[%s3022_s17 + $0x10] sm:$0xff]  ;;  %v543_v46 = vld [vmem:[%s4549_s1 + $0x218] sm:$0xff]  ;;  %v3192_v47 = vpack.c.bf16 %v573_v39, %v572_v38 }
  0x25   : > { %2549 = vmatpush1.bf16.msra.mxu0 %v2548_v36  ;;  %2502 = vmatprep.subr.bf16.mxu1 %v2900_v3  ;;  %v540_v36 = vld [vmem:[%s4549_s1 + $0x200] sm:$0xff]  ;;  %v542_v45 = vld [vmem:[%s4549_s1 + $0x210] sm:$0xff]  ;;  %v199_v51 = vld [vmem:[%s3022_s17 + $0x58] sm:$0xff] }
  0x26   : > { %2550 = vmatprep.subr.bf16.mxu0 %v2900_v3  ;;  %v2581_v42 = vpack.c.bf16 %v541_v37, %v540_v36  ;;  %v574_v48 = vld [vmem:[%s4549_s1 + $0x310] sm:$0xff]  ;;  %v207_v52 = vld [vmem:[%s3022_s17 + $0x98] sm:$0xff]  ;;  %v2584_v53 = vpack.c.bf16 %v543_v46, %v542_v45  ;;  %v209_v54 = vld [vmem:[%s3022_s17 + $0xa8] sm:$0xff] }
  0x27   : > { %v576_v58 = vld [vmem:[%s4549_s1 + $0x320] sm:$0xff]  ;;  %v577_v59 = vld [vmem:[%s4549_s1 + $0x328] sm:$0xff]  ;;  %v206_v60 = vld [vmem:[%s3022_s17 + $0x90] sm:$0xff] }
  0x28   : > { %2504 = vmatpush1.bf16.msra.mxu1 %v2503_v43  ;;  %v198_v43 = vld [vmem:[%s3022_s17 + $0x50] sm:$0xff]  ;;  %v547_v2 = vld [vmem:[%s4549_s1 + $0x238] sm:$0xff]  ;;  %v217_v8 = vld [vmem:[%s3022_s17 + $0xe8] sm:$0xff] }
  0x29   : > { %2552 = vmatpush1.bf16.msra.mxu0 %v2551_v44  ;;  %2505 = vmatprep.subr.bf16.mxu1 %v2900_v3  ;;  %v200_v44 = vld [vmem:[%s3022_s17 + $0x60] sm:$0xff]  ;;  %v218_v0 = vld [vmem:[%s3022_s17 + $0xf0] sm:$0xff]  ;;  %v579_v6 = vld [vmem:[%s4549_s1 + $0x338] sm:$0xff] }
  0x2a   : > { %2553 = vmatprep.subr.bf16.mxu0 %v2900_v3  ;;  %v546_v1 = vld [vmem:[%s4549_s1 + $0x230] sm:$0xff]  ;;  %v215_v7 = vld [vmem:[%s3022_s17 + $0xd8] sm:$0xff]  ;;  %v225_v9 = vld [vmem:[%s3022_s17 + $0x128] sm:$0xff] }
  0x2b   : > { %v548_v12 = vld [vmem:[%s4549_s1 + $0x240] sm:$0xff]  ;;  %v549_v13 = vld [vmem:[%s4549_s1 + $0x248] sm:$0xff]  ;;  %v226_v18 = vld [vmem:[%s3022_s17 + $0x130] sm:$0xff] }
  0x2c   : > { %2507 = vmatpush1.bf16.msra.mxu1 %v2506_v49  ;;  %v575_v49 = vld [vmem:[%s4549_s1 + $0x318] sm:$0xff]  ;;  %v580_v15 = vld [vmem:[%s4549_s1 + $0x340] sm:$0xff]  ;;  %v234_v19 = vld [vmem:[%s3022_s17 + $0x170] sm:$0xff]  ;;  %v2593_v20 = vpack.c.bf16 %v549_v13, %v548_v12 }
  0x2d   : > { %2555 = vmatpush1.bf16.msra.mxu0 %v2554_v50  ;;  %2508 = vmatprep.subr.bf16.mxu1 %v2900_v3  ;;  %v197_v50 = vld [vmem:[%s3022_s17 + $0x48] sm:$0xff]  ;;  %v3212_v57 = vpack.c.bf16 %v575_v49, %v574_v48  ;;  %v236_v21 = vld [vmem:[%s3022_s17 + $0x180] sm:$0xff]  ;;  %v582_v25 = vld [vmem:[%s4549_s1 + $0x350] sm:$0xff] }
  0x2e   : > { %2556 = vmatprep.subr.bf16.mxu0 %v2900_v3  ;;  %v583_v26 = vld [vmem:[%s4549_s1 + $0x358] sm:$0xff]  ;;  %v233_v27 = vld [vmem:[%s3022_s17 + $0x168] sm:$0xff]  ;;  %v552_v32 = vld [vmem:[%s4549_s1 + $0x260] sm:$0xff] }
  0x2f   : > { %v245_v31 = vld [vmem:[%s3022_s17 + $0x1c8] sm:$0xff]  ;;  %v242_v37 = vld [vmem:[%s3022_s17 + $0x1b0] sm:$0xff]  ;;  %v244_v38 = vld [vmem:[%s3022_s17 + $0x1c0] sm:$0xff] }
  0x30   : > { %2510 = vmatpush1.bf16.msra.mxu1 %v2509_v55  ;;  %v544_v55 = vld [vmem:[%s4549_s1 + $0x220] sm:$0xff]  ;;  %v553_v33 = vld [vmem:[%s4549_s1 + $0x268] sm:$0xff]  ;;  %v586_v45 = vld [vmem:[%s4549_s1 + $0x370] sm:$0xff] }
  0x31   : > { %2558 = vmatpush1.bf16.msra.mxu0 %v2557_v56  ;;  %2511 = vmatprep.subr.bf16.mxu1 %v2900_v3  ;;  %v545_v56 = vld [vmem:[%s4549_s1 + $0x228] sm:$0xff]  ;;  %v252_v39 = vld [vmem:[%s3022_s17 + $0x200] sm:$0xff]  ;;  %v587_v46 = vld [vmem:[%s4549_s1 + $0x378] sm:$0xff] }
  0x32   : > { %2559 = vmatprep.subr.bf16.mxu0 %v2900_v3  ;;  %v2587_v63 = vpack.c.bf16 %v545_v56, %v544_v55  ;;  %v585_v36 = vld [vmem:[%s4549_s1 + $0x368] sm:$0xff]  ;;  %v251_v48 = vld [vmem:[%s3022_s17 + $0x1f8] sm:$0xff]  ;;  %v3338_v55 = vpack.c.bf16 %v587_v46, %v586_v45  ;;  %v588_v56 = vld [vmem:[%s4549_s1 + $0x380] sm:$0xff] }
  0x33   : > { %v253_v49 = vld [vmem:[%s3022_s17 + $0x208] sm:$0xff]  ;;  %v560_v12 = vld [vmem:[%s4549_s1 + $0x2a0] sm:$0xff]  ;;  %v566_v46 = vld [vmem:[%s4549_s1 + $0x2d0] sm:$0xff] }
  0x34   : > { %2513 = vmatpush1.bf16.msra.mxu1 %v2512_v61  ;;  %v208_v61 = vld [vmem:[%s3022_s17 + $0xa0] sm:$0xff]  ;;  %v561_v13 = vld [vmem:[%s4549_s1 + $0x2a8] sm:$0xff] }
  0x35   : > { %2561 = vmatpush1.bf16.msra.mxu0 %v2560_v62  ;;  %2514 = vmatprep.subr.bf16.mxu1 %v2900_v3  ;;  %v216_v62 = vld [vmem:[%s3022_s17 + $0xe0] sm:$0xff] }
  0x36   : > { %2562 = vmatprep.subr.bf16.mxu0 %v2900_v3  ;;  %v308_v45 = vld [vmem:[%s3022_s17 + $0x3c0] sm:$0xff] }
  0x38   : > { %2516 = vmatpush1.bf16.msra.mxu1 %v2515_v4  ;;  %v3233_v4 = vpack.c.bf16 %v577_v59, %v576_v58  ;;  %v589_v58 = vld [vmem:[%s4549_s1 + $0x388] sm:$0xff]  ;;  %v260_v59 = vld [vmem:[%s3022_s17 + $0x240] sm:$0xff] }
  0x39   : > { %2564 = vmatpush1.bf16.msra.mxu0 %v2563_v5  ;;  %2517 = vmatprep.subr.bf16.mxu1 %v2900_v3  ;;  %v578_v5 = vld [vmem:[%s4549_s1 + $0x330] sm:$0xff] }
  0x3a   : > { %2565 = vmatprep.subr.bf16.mxu0 %v2900_v3  ;;  %v3254_v14 = vpack.c.bf16 %v579_v6, %v578_v5  ;;  %v590_v5 = vld [vmem:[%s4549_s1 + $0x390] sm:$0xff]  ;;  %v591_v6 = vld [vmem:[%s4549_s1 + $0x398] sm:$0xff] }
  0x3c   : > { %2519 = vmatpush1.bf16.msra.mxu1 %v2518_v10  ;;  %v2590_v10 = vpack.c.bf16 %v547_v2, %v546_v1  ;;  %v559_v1 = vld [vmem:[%s4549_s1 + $0x298] sm:$0xff]  ;;  %v3359_v2 = vpack.c.bf16 %v589_v58, %v588_v56  ;;  %v317_v58 = vld [vmem:[%s3022_s17 + $0x408] sm:$0xff] }
  0x3d   : > { %2567 = vmatpush1.bf16.msra.mxu0 %v2566_v11  ;;  %2520 = vmatprep.subr.bf16.mxu1 %v2900_v3  ;;  %v227_v11 = vld [vmem:[%s3022_s17 + $0x138] sm:$0xff] }
  0x3e   : > { %2568 = vmatprep.subr.bf16.mxu0 %v2900_v3 }
  0x40   : > { %2522 = vmatpush1.bf16.msra.mxu1 %v2521_v16  ;;  %v581_v16 = vld [vmem:[%s4549_s1 + $0x348] sm:$0xff] }
  0x41   : > { %2570 = vmatpush1.bf16.msra.mxu0 %v2569_v17  ;;  %2523 = vmatprep.subr.bf16.mxu1 %v2900_v3  ;;  %v224_v17 = vld [vmem:[%s3022_s17 + $0x120] sm:$0xff]  ;;  %v3275_v24 = vpack.c.bf16 %v581_v16, %v580_v15  ;;  %v3380_v15 = vpack.c.bf16 %v591_v6, %v590_v5 }
  0x42   : > { %2571 = vmatprep.subr.bf16.mxu0 %v2900_v3  ;;  %v592_v16 = vld [vmem:[%s4549_s1 + $0x3a0] sm:$0xff] }
  0x43   : > { %v324_v5 = vld [vmem:[%s3022_s17 + $0x440] sm:$0xff] }
  0x44   : > { %2525 = vmatpush1.bf16.msra.mxu1 %v2524_v22  ;;  %v550_v22 = vld [vmem:[%s4549_s1 + $0x250] sm:$0xff] }
  0x45   : > { %2573 = vmatpush1.bf16.msra.mxu0 %v2572_v23  ;;  %2526 = vmatprep.subr.bf16.mxu1 %v2900_v3  ;;  %v551_v23 = vld [vmem:[%s4549_s1 + $0x258] sm:$0xff] }
  0x46   : > { %2574 = vmatprep.subr.bf16.mxu0 %v2900_v3  ;;  %v2596_v30 = vpack.c.bf16 %v551_v23, %v550_v22  ;;  %v290_v22 = vld [vmem:[%s3022_s17 + $0x330] sm:$0xff] }
  0x47   : > { %v562_v23 = vld [vmem:[%s4549_s1 + $0x2b0] sm:$0xff] }
  0x48   : > { %2528 = vmatpush1.bf16.msra.mxu1 %v2527_v28  ;;  %v235_v28 = vld [vmem:[%s3022_s17 + $0x178] sm:$0xff] }
  0x49   : > { %2576 = vmatpush1.bf16.msra.mxu0 %v2575_v29  ;;  %2529 = vmatprep.subr.bf16.mxu1 %v2900_v3  ;;  %v243_v29 = vld [vmem:[%s3022_s17 + $0x1b8] sm:$0xff] }
  0x4a   : > { %2577 = vmatprep.subr.bf16.mxu0 %v2900_v3 }
  0x4c   : > { %2531 = vmatpush1.bf16.msra.mxu1 %v2530_v34  ;;  %v3296_v34 = vpack.c.bf16 %v583_v26, %v582_v25  ;;  %v563_v25 = vld [vmem:[%s4549_s1 + $0x2b8] sm:$0xff] }
  0x4d   : > { %2579 = vmatpush1.bf16.msra.mxu0 %v2578_v35  ;;  %2708 = vmatprep.subr.bf16.mxu1 %v2900_v3  ;;  %v584_v35 = vld [vmem:[%s4549_s1 + $0x360] sm:$0xff] }
  0x4e   : > { %2580 = vmatprep.subr.bf16.mxu0 %v2900_v3 }
  0x4f   : > { %685 = vmatmul.mubr.f32.vlgmr.msra.gmra.mrb[0].mxu1 %v188_v40  ;;  %v2599_v40 = vpack.c.bf16 %v553_v33, %v552_v32  ;;  %v2614_v32 = vpack.c.bf16 %v563_v25, %v562_v23  ;;  %v299_v33 = vld [vmem:[%s3022_s17 + $0x378] sm:$0xff]  ;;  %v332_v25 = vld [vmem:[%s3022_s17 + $0x480] sm:$0xff] }
  0x50   : > { %910 = vmatmul.mubr.f32.vlgmr.msra.gmra.mrb[0].mxu0 %v190_v41  ;;  %689 = vmatprep.mubr.f32.mxu1 %v198_v43  ;;  %v254_v41 = vld [vmem:[%s3022_s17 + $0x210] sm:$0xff]  ;;  %v555_v43 = vld [vmem:[%s4549_s1 + $0x278] sm:$0xff] }
  0x51   : > { %2582 = vmatpush1.bf16.msra.mxu0 %v2581_v42  ;;  %914 = vmatprep.mubr.f32.mxu0 %v200_v44  ;;  %v554_v42 = vld [vmem:[%s4549_s1 + $0x270] sm:$0xff]  ;;  %v3317_v44 = vpack.c.bf16 %v585_v36, %v584_v35  ;;  %v564_v35 = vld [vmem:[%s4549_s1 + $0x2c0] sm:$0xff]  ;;  %v565_v36 = vld [vmem:[%s4549_s1 + $0x2c8] sm:$0xff] }
  0x52   : > { %2583 = vmatprep.subr.bf16.mxu0 %v2900_v3  ;;  %2724 = vmatpush1.bf16.msra.mxu1 %v3192_v47 }
  0x53   : > { %690 = vmatmul.mubr.f32.gmra.mrb[2].mxu1 %v197_v50  ;;  %2709 = vmatprep.subr.bf16.mxu1 %v2900_v3  ;;  %v261_v50 = vld [vmem:[%s3022_s17 + $0x248] sm:$0xff] }
  0x54   : > { %915 = vmatmul.mubr.f32.gmra.mrb[2].mxu0 %v199_v51  ;;  %694 = vmatprep.mubr.f32.mxu1 %v207_v52  ;;  %v2602_v51 = vpack.c.bf16 %v555_v43, %v554_v42  ;;  %v263_v52 = vld [vmem:[%s3022_s17 + $0x258] sm:$0xff]  ;;  %v306_v42 = vld [vmem:[%s3022_s17 + $0x3b0] sm:$0xff]  ;;  %v2617_v43 = vpack.c.bf16 %v565_v36, %v564_v35  ;;  %v352_v36 = vld [vmem:[%s3022_s17 + $0x520] sm:$0xff] }
  0x55   : > { %919 = vmatprep.mubr.f32.mxu0 %v209_v54  ;;  %2585 = vmatpush1.bf16.msra.mxu0 %v2584_v53  ;;  %v556_v53 = vld [vmem:[%s4549_s1 + $0x280] sm:$0xff]  ;;  %v557_v54 = vld [vmem:[%s4549_s1 + $0x288] sm:$0xff]  ;;  %v350_v35 = vld [vmem:[%s3022_s17 + $0x510] sm:$0xff] }
  0x56   : > { %2586 = vmatprep.subr.bf16.mxu0 %v2900_v3  ;;  %2725 = vmatpush1.bf16.msra.mxu1 %v3212_v57 }
  0x57   : > { %695 = vmatmul.mubr.f32.gmra.mrb[4].mxu1 %v206_v60  ;;  %2710 = vmatprep.subr.bf16.mxu1 %v2900_v3  ;;  %v262_v60 = vld [vmem:[%s3022_s17 + $0x250] sm:$0xff] }
  0x58   : > { %920 = vmatmul.mubr.f32.gmra.mrb[4].mxu0 %v208_v61  ;;  %699 = vmatprep.mubr.f32.mxu1 %v216_v62  ;;  %v270_v61 = vld [vmem:[%s3022_s17 + $0x290] sm:$0xff]  ;;  %v2605_v62 = vpack.c.bf16 %v557_v54, %v556_v53  ;;  %v307_v53 = vld [vmem:[%s3022_s17 + $0x3b8] sm:$0xff] }
  0x59   : > { %924 = vmatprep.mubr.f32.mxu0 %v218_v0  ;;  %2588 = vmatpush1.bf16.msra.mxu0 %v2587_v63  ;;  %v272_v63 = vld [vmem:[%s3022_s17 + $0x2a0] sm:$0xff]  ;;  %v558_v0 = vld [vmem:[%s4549_s1 + $0x290] sm:$0xff]  ;;  %v315_v54 = vld [vmem:[%s3022_s17 + $0x3f8] sm:$0xff] }
  0x5a   : > { %2589 = vmatprep.subr.bf16.mxu0 %v2900_v3  ;;  %2726 = vmatpush1.bf16.msra.mxu1 %v3233_v4 }
  0x5b   : > { %700 = vmatmul.mubr.f32.gmra.mrb[6].mxu1 %v215_v7  ;;  %2711 = vmatprep.subr.bf16.mxu1 %v2900_v3  ;;  %v269_v7 = vld [vmem:[%s3022_s17 + $0x288] sm:$0xff] }
  0x5c   : > { %925 = vmatmul.mubr.f32.gmra.mrb[6].mxu0 %v217_v8  ;;  %704 = vmatprep.mubr.f32.mxu1 %v225_v9  ;;  %v271_v8 = vld [vmem:[%s3022_s17 + $0x298] sm:$0xff] }
  0x5d   : > { %929 = vmatprep.mubr.f32.mxu0 %v227_v11  ;;  %2591 = vmatpush1.bf16.msra.mxu0 %v2590_v10  ;;  %v279_v9 = vld [vmem:[%s3022_s17 + $0x2d8] sm:$0xff]  ;;  %v2608_v10 = vpack.c.bf16 %v559_v1, %v558_v0  ;;  %v281_v11 = vld [vmem:[%s3022_s17 + $0x2e8] sm:$0xff]  ;;  %v314_v0 = vld [vmem:[%s3022_s17 + $0x3f0] sm:$0xff] }
  0x5e   : > { %2592 = vmatprep.subr.bf16.mxu0 %v2900_v3  ;;  %2727 = vmatpush1.bf16.msra.mxu1 %v3254_v14  ;;  %v316_v1 = vld [vmem:[%s3022_s17 + $0x400] sm:$0xff] }
  0x5f   : > { %705 = vmatmul.mubr.f32.gmra.mrb[8].mxu1 %v224_v17  ;;  %2712 = vmatprep.subr.bf16.mxu1 %v2900_v3  ;;  %v593_v17 = vld [vmem:[%s4549_s1 + $0x3a8] sm:$0xff] }
  0x60   : > { %930 = vmatmul.mubr.f32.gmra.mrb[8].mxu0 %v226_v18  ;;  %709 = vmatprep.mubr.f32.mxu1 %v234_v19  ;;  %v278_v18 = vld [vmem:[%s3022_s17 + $0x2d0] sm:$0xff]  ;;  %v280_v19 = vld [vmem:[%s3022_s17 + $0x2e0] sm:$0xff]  ;;  %v3401_v26 = vpack.c.bf16 %v593_v17, %v592_v16  ;;  %v605_v17 = vld [vmem:[%s4549_s1 + $0x408] sm:$0xff] }
  0x61   : > { %934 = vmatprep.mubr.f32.mxu0 %v236_v21  ;;  %2594 = vmatpush1.bf16.msra.mxu0 %v2593_v20  ;;  %v288_v20 = vld [vmem:[%s3022_s17 + $0x320] sm:$0xff]  ;;  %v2611_v21 = vpack.c.bf16 %v561_v13, %v560_v12  ;;  %v603_v12 = vld [vmem:[%s4549_s1 + $0x3f8] sm:$0xff] }
  0x62   : > { %2595 = vmatprep.subr.bf16.mxu0 %v2900_v3  ;;  %2728 = vmatpush1.bf16.msra.mxu1 %v3275_v24  ;;  %v323_v13 = vld [vmem:[%s3022_s17 + $0x438] sm:$0xff]  ;;  %v604_v16 = vld [vmem:[%s4549_s1 + $0x400] sm:$0xff] }
  0x63   : > { %710 = vmatmul.mubr.f32.gmra.mrb[10].mxu1 %v233_v27  ;;  %2713 = vmatprep.subr.bf16.mxu1 %v2900_v3  ;;  %v594_v27 = vld [vmem:[%s4549_s1 + $0x3b0] sm:$0xff]  ;;  %v3509_v23 = vpack.c.bf16 %v605_v17, %v604_v16  ;;  %v424_v17 = vld [vmem:[%s3022_s17 + $0x760] sm:$0xff] }
  0x64   : > { %935 = vmatmul.mubr.f32.gmra.mrb[10].mxu0 %v235_v28  ;;  %714 = vmatprep.mubr.f32.mxu1 %v243_v29  ;;  %v595_v28 = vld [vmem:[%s4549_s1 + $0x3b8] sm:$0xff]  ;;  %v422_v16 = vld [vmem:[%s3022_s17 + $0x750] sm:$0xff] }
  0x65   : > { %939 = vmatprep.mubr.f32.mxu0 %v245_v31  ;;  %2597 = vmatpush1.bf16.msra.mxu0 %v2596_v30  ;;  %v287_v29 = vld [vmem:[%s3022_s17 + $0x318] sm:$0xff]  ;;  %v289_v30 = vld [vmem:[%s3022_s17 + $0x328] sm:$0xff] }
  0x66   : > { %2598 = vmatprep.subr.bf16.mxu0 %v2900_v3  ;;  %2729 = vmatpush1.bf16.msra.mxu1 %v3296_v34  ;;  %v297_v31 = vld [vmem:[%s3022_s17 + $0x368] sm:$0xff] }
  0x67   : > { %715 = vmatmul.mubr.f32.gmra.mrb[12].mxu1 %v242_v37  ;;  %2714 = vmatprep.subr.bf16.mxu1 %v2900_v3  ;;  %v3422_v37 = vpack.c.bf16 %v595_v28, %v594_v27  ;;  %v334_v27 = vld [vmem:[%s3022_s17 + $0x490] sm:$0xff] }
  0x68   : > { %940 = vmatmul.mubr.f32.gmra.mrb[12].mxu0 %v244_v38  ;;  %719 = vmatprep.mubr.f32.mxu1 %v252_v39  ;;  %v596_v38 = vld [vmem:[%s4549_s1 + $0x3c0] sm:$0xff]  ;;  %v597_v39 = vld [vmem:[%s4549_s1 + $0x3c8] sm:$0xff]  ;;  %v342_v28 = vld [vmem:[%s3022_s17 + $0x4d0] sm:$0xff] }
  0x69   : > { %944 = vmatprep.mubr.f32.mxu0 %v254_v41  ;;  %2600 = vmatpush1.bf16.msra.mxu0 %v2599_v40  ;;  %v296_v40 = vld [vmem:[%s3022_s17 + $0x360] sm:$0xff]  ;;  %v298_v41 = vld [vmem:[%s3022_s17 + $0x370] sm:$0xff] }
  0x6a   : > { %2601 = vmatprep.subr.bf16.mxu0 %v2900_v3  ;;  %2730 = vmatpush1.bf16.msra.mxu1 %v3317_v44 }
  0x6b   : > { %720 = vmatmul.mubr.f32.gmra.mrb[14].mxu1 %v251_v48  ;;  %2715 = vmatprep.subr.bf16.mxu1 %v2900_v3  ;;  %v567_v48 = vld [vmem:[%s4549_s1 + $0x2d8] sm:$0xff] }
  0x6c   : > { %945 = vmatmul.mubr.f32.gmra.mrb[14].mxu0 %v253_v49  ;;  %724 = vmatprep.mubr.f32.mxu1 %v261_v50  ;;  %v3443_v49 = vpack.c.bf16 %v597_v39, %v596_v38  ;;  %v598_v50 = vld [vmem:[%s4549_s1 + $0x3d0] sm:$0xff]  ;;  %v2620_v56 = vpack.c.bf16 %v567_v48, %v566_v46  ;;  %v360_v38 = vld [vmem:[%s3022_s17 + $0x560] sm:$0xff] }
  0x6d   : > { %949 = vmatprep.mubr.f32.mxu0 %v263_v52  ;;  %2603 = vmatpush1.bf16.msra.mxu0 %v2602_v51  ;;  %v599_v51 = vld [vmem:[%s4549_s1 + $0x3d8] sm:$0xff]  ;;  %v305_v52 = vld [vmem:[%s3022_s17 + $0x3a8] sm:$0xff]  ;;  %v362_v39 = vld [vmem:[%s3022_s17 + $0x570] sm:$0xff] }
  0x6e   : > { %2604 = vmatprep.subr.bf16.mxu0 %v2900_v3  ;;  %2731 = vmatpush1.bf16.msra.mxu1 %v3338_v55  ;;  %v370_v46 = vld [vmem:[%s3022_s17 + $0x5b0] sm:$0xff] }
  0x6f   : > { %725 = vmatmul.mubr.f32.gmra.mrb[16].mxu1 %v260_v59  ;;  %2716 = vmatprep.subr.bf16.mxu1 %v2900_v3  ;;  %v568_v59 = vld [vmem:[%s4549_s1 + $0x2e0] sm:$0xff]  ;;  %v378_v48 = vld [vmem:[%s3022_s17 + $0x5f0] sm:$0xff] }
  0x70   : > { %950 = vmatmul.mubr.f32.gmra.mrb[16].mxu0 %v262_v60  ;;  %729 = vmatprep.mubr.f32.mxu1 %v270_v61  ;;  %v569_v60 = vld [vmem:[%s4549_s1 + $0x2e8] sm:$0xff]  ;;  %v3464_v61 = vpack.c.bf16 %v599_v51, %v598_v50  ;;  %v380_v50 = vld [vmem:[%s3022_s17 + $0x600] sm:$0xff] }
  0x71   : > { %954 = vmatprep.mubr.f32.mxu0 %v272_v63  ;;  %2606 = vmatpush1.bf16.msra.mxu0 %v2605_v62  ;;  %v600_v62 = vld [vmem:[%s4549_s1 + $0x3e0] sm:$0xff]  ;;  %v601_v63 = vld [vmem:[%s4549_s1 + $0x3e8] sm:$0xff]  ;;  %v2623_v6 = vpack.c.bf16 %v569_v60, %v568_v59  ;;  %v398_v60 = vld [vmem:[%s3022_s17 + $0x690] sm:$0xff] }
  0x72   : > { %2607 = vmatprep.subr.bf16.mxu0 %v2900_v3  ;;  %2732 = vmatpush1.bf16.msra.mxu1 %v3359_v2  ;;  %v377_v51 = vld [vmem:[%s3022_s17 + $0x5e8] sm:$0xff]  ;;  %v396_v59 = vld [vmem:[%s3022_s17 + $0x680] sm:$0xff] }
  0x73   : > { %730 = vmatmul.mubr.f32.gmra.mrb[18].mxu1 %v269_v7  ;;  %2717 = vmatprep.subr.bf16.mxu1 %v2900_v3  ;;  %v326_v7 = vld [vmem:[%s3022_s17 + $0x450] sm:$0xff] }
  0x74   : > { %955 = vmatmul.mubr.f32.gmra.mrb[18].mxu0 %v271_v8  ;;  %734 = vmatprep.mubr.f32.mxu1 %v279_v9  ;;  %v570_v8 = vld [vmem:[%s4549_s1 + $0x2f0] sm:$0xff]  ;;  %v571_v9 = vld [vmem:[%s4549_s1 + $0x2f8] sm:$0xff] }
  0x75   : > { %959 = vmatprep.mubr.f32.mxu0 %v281_v11  ;;  %2609 = vmatpush1.bf16.msra.mxu0 %v2608_v10  ;;  %v3485_v10 = vpack.c.bf16 %v601_v63, %v600_v62  ;;  %v602_v11 = vld [vmem:[%s4549_s1 + $0x3f0] sm:$0xff]  ;;  %v395_v62 = vld [vmem:[%s3022_s17 + $0x678] sm:$0xff]  ;;  %v397_v63 = vld [vmem:[%s3022_s17 + $0x688] sm:$0xff] }
  0x76   : > { %2610 = vmatprep.subr.bf16.mxu0 %v2900_v3  ;;  %2733 = vmatpush1.bf16.msra.mxu1 %v3380_v15 }
  0x77   : > { %735 = vmatmul.mubr.f32.gmra.mrb[20].mxu1 %v278_v18  ;;  %2718 = vmatprep.subr.bf16.mxu1 %v2900_v3  ;;  %v325_v18 = vld [vmem:[%s3022_s17 + $0x448] sm:$0xff] }
  0x78   : > { %960 = vmatmul.mubr.f32.gmra.mrb[20].mxu0 %v280_v19  ;;  %739 = vmatprep.mubr.f32.mxu1 %v288_v20  ;;  %v333_v19 = vld [vmem:[%s3022_s17 + $0x488] sm:$0xff]  ;;  %v2626_v20 = vpack.c.bf16 %v571_v9, %v570_v8  ;;  %v416_v8 = vld [vmem:[%s3022_s17 + $0x720] sm:$0xff] }
  0x79   : > { %964 = vmatprep.mubr.f32.mxu0 %v290_v22  ;;  %2612 = vmatpush1.bf16.msra.mxu0 %v2611_v21  ;;  %v335_v21 = vld [vmem:[%s3022_s17 + $0x498] sm:$0xff]  ;;  %v3506_v22 = vpack.c.bf16 %v603_v12, %v602_v11  ;;  %v413_v9 = vld [vmem:[%s3022_s17 + $0x708] sm:$0xff] }
  0x7a   : > { %2613 = vmatprep.subr.bf16.mxu0 %v2900_v3  ;;  %2734 = vmatpush1.bf16.msra.mxu1 %v3401_v26  ;;  %v415_v11 = vld [vmem:[%s3022_s17 + $0x718] sm:$0xff] }
  0x7b   : > { %740 = vmatmul.mubr.f32.gmra.mrb[22].mxu1 %v287_v29  ;;  %2719 = vmatprep.subr.bf16.mxu1 %v2900_v3  ;;  %v344_v29 = vld [vmem:[%s3022_s17 + $0x4e0] sm:$0xff]  ;;  %v423_v12 = vld [vmem:[%s3022_s17 + $0x758] sm:$0xff] }
  0x7c   : > { %965 = vmatmul.mubr.f32.gmra.mrb[22].mxu0 %v289_v30  ;;  %744 = vmatprep.mubr.f32.mxu1 %v297_v31  ;;  %v341_v30 = vld [vmem:[%s3022_s17 + $0x4c8] sm:$0xff]  ;;  %v343_v31 = vld [vmem:[%s3022_s17 + $0x4d8] sm:$0xff] }
  0x7d   : > { %969 = vmatprep.mubr.f32.mxu0 %v299_v33  ;;  %2615 = vmatpush1.bf16.msra.mxu0 %v2614_v32  ;;  %v351_v32 = vld [vmem:[%s3022_s17 + $0x518] sm:$0xff]  ;;  %v353_v33 = vld [vmem:[%s3022_s17 + $0x528] sm:$0xff] }
  0x7e   : > { %2616 = vmatprep.subr.bf16.mxu0 %v2900_v3  ;;  %2735 = vmatpush1.bf16.msra.mxu1 %v3422_v37 }
  0x7f   : > { %745 = vmatmul.mubr.f32.gmra.mrb[24].mxu1 %v296_v40  ;;  %2720 = vmatprep.subr.bf16.mxu1 %v2900_v3  ;;  %v359_v40 = vld [vmem:[%s3022_s17 + $0x558] sm:$0xff] }
  0x80   : > { %970 = vmatmul.mubr.f32.gmra.mrb[24].mxu0 %v298_v41  ;;  %749 = vmatprep.mubr.f32.mxu1 %v306_v42  ;;  %v361_v41 = vld [vmem:[%s3022_s17 + $0x568] sm:$0xff] }
  0x81   : > { %974 = vmatprep.mubr.f32.mxu0 %v308_v45  ;;  %2618 = vmatpush1.bf16.msra.mxu0 %v2617_v43  ;;  %v369_v42 = vld [vmem:[%s3022_s17 + $0x5a8] sm:$0xff]  ;;  %v371_v43 = vld [vmem:[%s3022_s17 + $0x5b8] sm:$0xff]  ;;  %v368_v45 = vld [vmem:[%s3022_s17 + $0x5a0] sm:$0xff] }
  0x82   : > { %2619 = vmatprep.subr.bf16.mxu0 %v2900_v3  ;;  %2736 = vmatpush1.bf16.msra.mxu1 %v3443_v49 }
  0x83   : > { %750 = vmatmul.mubr.f32.gmra.mrb[26].mxu1 %v305_v52  ;;  %2721 = vmatprep.subr.bf16.mxu1 %v2900_v3  ;;  %v379_v52 = vld [vmem:[%s3022_s17 + $0x5f8] sm:$0xff] }
  0x84   : > { %975 = vmatmul.mubr.f32.gmra.mrb[26].mxu0 %v307_v53  ;;  %754 = vmatprep.mubr.f32.mxu1 %v315_v54  ;;  %v387_v53 = vld [vmem:[%s3022_s17 + $0x638] sm:$0xff]  ;;  %v389_v54 = vld [vmem:[%s3022_s17 + $0x648] sm:$0xff] }
  0x85   : > { %979 = vmatprep.mubr.f32.mxu0 %v317_v58  ;;  %2621 = vmatpush1.bf16.msra.mxu0 %v2620_v56  ;;  %v386_v56 = vld [vmem:[%s3022_s17 + $0x630] sm:$0xff]  ;;  %v388_v58 = vld [vmem:[%s3022_s17 + $0x640] sm:$0xff] }
  0x86   : > { %2622 = vmatprep.subr.bf16.mxu0 %v2900_v3  ;;  %2737 = vmatpush1.bf16.msra.mxu1 %v3464_v61 }
  0x87   : > { %755 = vmatmul.mubr.f32.gmra.mrb[28].mxu1 %v314_v0  ;;  %2722 = vmatprep.subr.bf16.mxu1 %v2900_v3  ;;  %v405_v0 = vld [vmem:[%s3022_s17 + $0x6c8] sm:$0xff] }
  0x88   : > { %980 = vmatmul.mubr.f32.gmra.mrb[28].mxu0 %v316_v1  ;;  %759 = vmatprep.mubr.f32.mxu1 %v324_v5  ;;  %v407_v1 = vld [vmem:[%s3022_s17 + $0x6d8] sm:$0xff]  ;;  %v404_v5 = vld [vmem:[%s3022_s17 + $0x6c0] sm:$0xff] }
  0x89   : > { %984 = vmatprep.mubr.f32.mxu0 %v326_v7  ;;  %2624 = vmatpush1.bf16.msra.mxu0 %v2623_v6  ;;  %v406_v6 = vld [vmem:[%s3022_s17 + $0x6d0] sm:$0xff] }
  0x8a   : > { %2625 = vmatprep.subr.bf16.mxu0 %v2900_v3  ;;  %2738 = vmatpush1.bf16.msra.mxu1 %v3485_v10  ;;  %v414_v7 = vld [vmem:[%s3022_s17 + $0x710] sm:$0xff] }
  0x8b   : > { %760 = vmatmul.mubr.f32.gmra.mrb[30].mxu1 %v323_v13  ;;  %2723 = vmatprep.subr.bf16.mxu1 %v2900_v3  ;;  %v425_v13 = vld [vmem:[%s3022_s17 + $0x768] sm:$0xff] }
  0x8c   : > { %985 = vmatmul.mubr.f32.gmra.mrb[30].mxu0 %v325_v18  ;;  %764 = vmatprep.mubr.f32.mxu1 %v333_v19  ;;  %v432_v18 = vld [vmem:[%s3022_s17 + $0x7a0] sm:$0xff]  ;;  %v434_v19 = vld [vmem:[%s3022_s17 + $0x7b0] sm:$0xff] }
  0x8d   : > { %989 = vmatprep.mubr.f32.mxu0 %v335_v21  ;;  %2627 = vmatpush1.bf16.msra.mxu0 %v2626_v20  ;;  %v431_v20 = vld [vmem:[%s3022_s17 + $0x798] sm:$0xff]  ;;  %v433_v21 = vld [vmem:[%s3022_s17 + $0x7a8] sm:$0xff] }
  0x8e   : > { %2739 = vmatpush1.bf16.msra.mxu1 %v3506_v22  ;;  %2628 = vmatprep.subr.bf16.mxu0 %v2900_v3 }
  0x8f   : > { %765 = vmatmul.mubr.f32.gmra.mrb[32].mxu1 %v332_v25  ;;  %2677 = vmatprep.subr.bf16.mxu1 %v3509_v23  ;;  %v441_v25 = vld [vmem:[%s3022_s17 + $0x7e8] sm:$0xff] }
  0x90   : > { %990 = vmatmul.mubr.f32.gmra.mrb[32].mxu0 %v334_v27  ;;  %769 = vmatprep.mubr.f32.mxu1 %v342_v28  ;;  %v443_v27 = vld [vmem:[%s3022_s17 + $0x7f8] sm:$0xff]  ;;  %v440_v28 = vld [vmem:[%s3022_s17 + $0x7e0] sm:$0xff] }
  0x91   : > { %994 = vmatprep.mubr.f32.mxu0 %v344_v29  ;;  %v442_v29 = vld [vmem:[%s3022_s17 + $0x7f0] sm:$0xff] }
  0x93   : > { %770 = vmatmul.mubr.f32.gmra.mrb[34].mxu1 %v341_v30  ;;  %v450_v30 = vld [vmem:[%s3022_s17 + $0x830] sm:$0xff] }
  0x94   : > { %995 = vmatmul.mubr.f32.gmra.mrb[34].mxu0 %v343_v31  ;;  %774 = vmatprep.mubr.f32.mxu1 %v351_v32  ;;  %v452_v31 = vld [vmem:[%s3022_s17 + $0x840] sm:$0xff]  ;;  %v449_v32 = vld [vmem:[%s3022_s17 + $0x828] sm:$0xff] }
  0x95   : > { %999 = vmatprep.mubr.f32.mxu0 %v353_v33  ;;  %v451_v33 = vld [vmem:[%s3022_s17 + $0x838] sm:$0xff] }
  0x97   : > { %775 = vmatmul.mubr.f32.gmra.mrb[36].mxu1 %v350_v35  ;;  %v459_v35 = vld [vmem:[%s3022_s17 + $0x878] sm:$0xff] }
  0x98   : > { %1000 = vmatmul.mubr.f32.gmra.mrb[36].mxu0 %v352_v36  ;;  %779 = vmatprep.mubr.f32.mxu1 %v360_v38  ;;  %v461_v36 = vld [vmem:[%s3022_s17 + $0x888] sm:$0xff]  ;;  %v458_v38 = vld [vmem:[%s3022_s17 + $0x870] sm:$0xff] }
  0x99   : > { %1004 = vmatprep.mubr.f32.mxu0 %v362_v39  ;;  %v460_v39 = vld [vmem:[%s3022_s17 + $0x880] sm:$0xff] }
  0x9b   : > { %780 = vmatmul.mubr.f32.gmra.mrb[38].mxu1 %v359_v40  ;;  %v468_v40 = vld [vmem:[%s3022_s17 + $0x8c0] sm:$0xff] }
  0x9c   : > { %1005 = vmatmul.mubr.f32.gmra.mrb[38].mxu0 %v361_v41  ;;  %784 = vmatprep.mubr.f32.mxu1 %v369_v42  ;;  %v470_v41 = vld [vmem:[%s3022_s17 + $0x8d0] sm:$0xff]  ;;  %v467_v42 = vld [vmem:[%s3022_s17 + $0x8b8] sm:$0xff] }
  0x9d   : > { %1009 = vmatprep.mubr.f32.mxu0 %v371_v43  ;;  %v469_v43 = vld [vmem:[%s3022_s17 + $0x8c8] sm:$0xff] }
  0x9f   : > { %785 = vmatmul.mubr.f32.gmra.mrb[40].mxu1 %v368_v45  ;;  %v267_v45 = vld [vmem:[%s3022_s17 + $0x278] sm:$0xff] }
  0xa0   : > { %1010 = vmatmul.mubr.f32.gmra.mrb[40].mxu0 %v370_v46  ;;  %789 = vmatprep.mubr.f32.mxu1 %v378_v48  ;;  %v193_v46 = vld [vmem:[%s3022_s17 + $0x28] sm:$0xff]  ;;  %v266_v48 = vld [vmem:[%s3022_s17 + $0x270] sm:$0xff] }
  0xa1   : > { %1014 = vmatprep.mubr.f32.mxu0 %v380_v50  ;;  %v606_v50 = vld [vmem:[%s4549_s1 + $0x410] sm:$0xff] }
  0xa3   : > { %790 = vmatmul.mubr.f32.gmra.mrb[42].mxu1 %v377_v51  ;;  %v607_v51 = vld [vmem:[%s4549_s1 + $0x418] sm:$0xff] }
  0xa4   : > { %1015 = vmatmul.mubr.f32.gmra.mrb[42].mxu0 %v379_v52  ;;  %794 = vmatprep.mubr.f32.mxu1 %v387_v53  ;;  %v192_v52 = vld [vmem:[%s3022_s17 + $0x20] sm:$0xff] }
  0xa5   : > { %1019 = vmatprep.mubr.f32.mxu0 %v389_v54  ;;  %v276_v53 = vld [vmem:[%s3022_s17 + $0x2c0] sm:$0xff]  ;;  %v202_v54 = vld [vmem:[%s3022_s17 + $0x70] sm:$0xff] }
  0xa7   : > { %795 = vmatmul.mubr.f32.gmra.mrb[44].mxu1 %v386_v56  ;;  %v2680_v56 = vpack.c.bf16 %v607_v51, %v606_v50  ;;  %v330_v50 = vld [vmem:[%s3022_s17 + $0x470] sm:$0xff] }
  0xa8   : > { %1020 = vmatmul.mubr.f32.gmra.mrb[44].mxu0 %v388_v58  ;;  %799 = vmatprep.mubr.f32.mxu1 %v396_v59  ;;  %v275_v58 = vld [vmem:[%s3022_s17 + $0x2b8] sm:$0xff]  ;;  %v608_v59 = vld [vmem:[%s4549_s1 + $0x420] sm:$0xff] }
  0xa9   : > { %1024 = vmatprep.mubr.f32.mxu0 %v398_v60  ;;  %v609_v60 = vld [vmem:[%s4549_s1 + $0x428] sm:$0xff] }
  0xab   : > { %800 = vmatmul.mubr.f32.gmra.mrb[46].mxu1 %v395_v62  ;;  %v201_v62 = vld [vmem:[%s3022_s17 + $0x68] sm:$0xff] }
  0xac   : > { %1025 = vmatmul.mubr.f32.gmra.mrb[46].mxu0 %v397_v63  ;;  %804 = vmatprep.mubr.f32.mxu1 %v405_v0  ;;  %v285_v63 = vld [vmem:[%s3022_s17 + $0x308] sm:$0xff]  ;;  %v211_v0 = vld [vmem:[%s3022_s17 + $0xb8] sm:$0xff] }
  0xad   : > { %1029 = vmatprep.mubr.f32.mxu0 %v407_v1  ;;  %v2684_v1 = vpack.c.bf16 %v609_v60, %v608_v59  ;;  %v2901_v59 = vmov 0.0  }
  0xaf   : > { %805 = vmatmul.mubr.f32.gmra.mrb[48].mxu1 %v404_v5  ;;  %v284_v5 = vld [vmem:[%s3022_s17 + $0x300] sm:$0xff] }
  0xb0   : > { %1030 = vmatmul.mubr.f32.gmra.mrb[48].mxu0 %v406_v6  ;;  %809 = vmatprep.mubr.f32.mxu1 %v414_v7  ;;  %v611_v6 = vld [vmem:[%s4549_s1 + $0x438] sm:$0xff]  ;;  %v210_v7 = vld [vmem:[%s3022_s17 + $0xb0] sm:$0xff] }
  0xb1   : > { %1034 = vmatprep.mubr.f32.mxu0 %v416_v8  ;;  %v220_v8 = vld [vmem:[%s3022_s17 + $0x100] sm:$0xff] }
  0xb3   : > { %810 = vmatmul.mubr.f32.gmra.mrb[50].mxu1 %v413_v9 }
  0xb4   : > { %1035 = vmatmul.mubr.f32.gmra.mrb[50].mxu0 %v415_v11  ;;  %814 = vmatprep.mubr.f32.mxu1 %v423_v12  ;;  %v293_v11 = vld [vmem:[%s3022_s17 + $0x348] sm:$0xff]  ;;  %v612_v12 = vld [vmem:[%s4549_s1 + $0x440] sm:$0xff] }
  0xb5   : > { %1039 = vmatprep.mubr.f32.mxu0 %v425_v13  ;;  %v219_v13 = vld [vmem:[%s3022_s17 + $0xf8] sm:$0xff] }
  0xb7   : > { %815 = vmatmul.mubr.f32.gmra.mrb[52].mxu1 %v422_v16  ;;  %v303_v16 = vld [vmem:[%s3022_s17 + $0x398] sm:$0xff] }
  0xb8   : > { %1040 = vmatmul.mubr.f32.gmra.mrb[52].mxu0 %v424_v17  ;;  %819 = vmatprep.mubr.f32.mxu1 %v432_v18  ;;  %v229_v17 = vld [vmem:[%s3022_s17 + $0x148] sm:$0xff] }
  0xb9   : > { %1044 = vmatprep.mubr.f32.mxu0 %v434_v19  ;;  %v302_v19 = vld [vmem:[%s3022_s17 + $0x390] sm:$0xff] }
  0xbb   : > { %820 = vmatmul.mubr.f32.gmra.mrb[54].mxu1 %v431_v20  ;;  %v614_v20 = vld [vmem:[%s4549_s1 + $0x450] sm:$0xff] }
  0xbc   : > { %1045 = vmatmul.mubr.f32.gmra.mrb[54].mxu0 %v433_v21  ;;  %824 = vmatprep.mubr.f32.mxu1 %v441_v25  ;;  %v1778_v21 = vlaneseq  ;;  %v228_v25 = vld [vmem:[%s3022_s17 + $0x140] sm:$0xff] }
  0xbd   : > { %1049 = vmatprep.mubr.f32.mxu0 %v443_v27  ;;  %v312_v27 = vld [vmem:[%s3022_s17 + $0x3e0] sm:$0xff] }
  0xbf   : > { %825 = vmatmul.mubr.f32.gmra.mrb[56].mxu1 %v440_v28  ;;  %v238_v28 = vld [vmem:[%s3022_s17 + $0x190] sm:$0xff] }
  0xc0   : > { %1050 = vmatmul.mubr.f32.gmra.mrb[56].mxu0 %v442_v29  ;;  %829 = vmatprep.mubr.f32.mxu1 %v450_v30  ;;  %v3637_v29 = vshrl.u32 %v1778_v21, 7  ;;  %v356_v21 = vld [vmem:[%s3022_s17 + $0x540] sm:$0xff] }
  0xc1   : > { %1054 = vmatprep.mubr.f32.mxu0 %v452_v31  ;;  %v311_v31 = vld [vmem:[%s3022_s17 + $0x3d8] sm:$0xff] }
  0xc2   : > { %v1782_v51 = vadd.s32 24, %v3637_v29 }
  0xc3   : > { %830 = vmatmul.mubr.f32.gmra.mrb[58].mxu1 %v449_v32  ;;  %v616_v32 = vld [vmem:[%s4549_s1 + $0x460] sm:$0xff] }
  0xc4   : > { %1055 = vmatmul.mubr.f32.gmra.mrb[58].mxu0 %v451_v33  ;;  %834 = vmatprep.mubr.f32.mxu1 %v459_v35  ;;  %v1780_v33 = vadd.s32 8, %v3637_v29  ;;  %v237_v35 = vld [vmem:[%s3022_s17 + $0x188] sm:$0xff] }
  0xc5   : > { %1059 = vmatprep.mubr.f32.mxu0 %v461_v36  ;;  %v321_v36 = vld [vmem:[%s3022_s17 + $0x428] sm:$0xff] }
  0xc7   : > { %835 = vmatmul.mubr.f32.gmra.mrb[60].mxu1 %v458_v38  ;;  %v3651_v38 = vstv %s2321_s24 }
  0xc8   : > { %1060 = vmatmul.mubr.f32.gmra.mrb[60].mxu0 %v460_v39  ;;  %839 = vmatprep.mubr.f32.mxu1 %v468_v40  ;;  %v247_v39 = vld [vmem:[%s3022_s17 + $0x1d8] sm:$0xff]  ;;  %v1781_v40 = vadd.s32 16, %v3637_v29 }
  0xc9   : > { %1064 = vmatprep.mubr.f32.mxu0 %v470_v41  ;;  %v1812_v41 = vadd.s32 %v3651_v38, %v3637_v29 }
  0xcb   : > { %840 = vmatmul.mubr.f32.gmra.mrb[62].mxu1 %v467_v42  ;;  %v1813_v42 = vadd.s32 %v3651_v38, %v1780_v33  ;;  %vm1844_vm0 = vcmp.lt.s32.totalorder %v1812_v41, 512  ;;  %v365_v33 = vld [vmem:[%s3022_s17 + $0x588] sm:$0xff] }
  0xcc   : > { %1065 = vmatmul.mubr.f32.gmra.mrb[62].mxu0 %v469_v43  ;;  %1399 = vmatprep.mubr.f32.mxu1 %v267_v45  ;;  %v618_v45 = vld [vmem:[%s4549_s1 + $0x470] sm:$0xff]  ;;  %v3678_v60 = vsel %vm1844_vm0, 1.0, %v2901_v59  ;;  %v301_v41 = vld [vmem:[%s3022_s17 + $0x388] sm:$0xff] }
  0xcd   : > { %1134 = vmatprep.mubr.f32.mxu0 %v193_v46  ;;  %v619_v46 = vld [vmem:[%s4549_s1 + $0x478] sm:$0xff]  ;;  %vm1845_vm1 = vcmp.lt.s32.totalorder %v1813_v42, 512 }
  0xcf   : > { %1400 = vmatmul.mubr.f32.vlgmr.msra.gmra.mrb[64].mxu1 %v266_v48  ;;  %v246_v48 = vld [vmem:[%s3022_s17 + $0x1d0] sm:$0xff] }
  0xd0   : > { %1135 = vmatmul.mubr.f32.vlgmr.msra.gmra.mrb[0].mxu0 %v192_v52  ;;  %1404 = vmatprep.mubr.f32.mxu1 %v276_v53  ;;  %v256_v52 = vld [vmem:[%s3022_s17 + $0x220] sm:$0xff]  ;;  %v1814_v53 = vadd.s32 %v3651_v38, %v1781_v40 }
  0xd1   : > { %2630 = vmatpush1.bf16.msra.mxu0 %v3192_v47  ;;  %1139 = vmatprep.mubr.f32.mxu0 %v202_v54  ;;  %v610_v47 = vld [vmem:[%s4549_s1 + $0x430] sm:$0xff]  ;;  %v2704_v54 = vpack.c.bf16 %v619_v46, %v618_v45  ;;  %v300_v45 = vld [vmem:[%s3022_s17 + $0x380] sm:$0xff] }
  0xd2   : > { %2631 = vmatprep.subr.bf16.mxu0 %v2900_v3  ;;  %2679 = vmatpush3.bf16.msra.mxu1 %v3509_v23  ;;  %v294_v23 = vld [vmem:[%s3022_s17 + $0x350] sm:$0xff]  ;;  %v2688_v9 = vpack.c.bf16 %v611_v6, %v610_v47  ;;  %vm1846_vm3 = vcmp.lt.s32.totalorder %v1814_v53, 512  ;;  %v264_v6 = vld [vmem:[%s3022_s17 + $0x260] sm:$0xff]  ;;  %v1789_v53 = vadd.s32 80, %v3637_v29 }
  0xd3   : > { %1405 = vmatmul.mubr.f32.gmra.mrb[66].mxu1 %v275_v58  ;;  %2681 = vmatprep.subr.bf16.mxu1 %v2680_v56  ;;  %v339_v58 = vld [vmem:[%s3022_s17 + $0x4b8] sm:$0xff]  ;;  %v384_v46 = vld [vmem:[%s3022_s17 + $0x620] sm:$0xff] }
  0xd4   : > { %1140 = vmatmul.mubr.f32.gmra.mrb[2].mxu0 %v201_v62  ;;  %1409 = vmatprep.mubr.f32.mxu1 %v285_v63  ;;  %v3681_v62 = vsel %vm1845_vm1, 1.0, %v2901_v59  ;;  %v265_v63 = vld [vmem:[%s3022_s17 + $0x268] sm:$0xff] }
  0xd5   : > { %1144 = vmatprep.mubr.f32.mxu0 %v211_v0  ;;  %2633 = vmatpush1.bf16.msra.mxu0 %v3212_v57  ;;  %v613_v57 = vld [vmem:[%s4549_s1 + $0x448] sm:$0xff]  ;;  %v1783_v0 = vadd.s32 32, %v3637_v29  ;;  %v1942_v47 = vsel %vm1940_vm2, %v3681_v62, 0.0 }
  0xd6   : > { %2634 = vmatprep.subr.bf16.mxu0 %v2900_v3  ;;  %2683 = vmatpush3.bf16.msra.mxu1 %v2680_v56  ;;  %v2692_v18 = vpack.c.bf16 %v613_v57, %v612_v12  ;;  %v329_v56 = vld [vmem:[%s3022_s17 + $0x468] sm:$0xff]  ;;  %v347_v57 = vld [vmem:[%s3022_s17 + $0x4f8] sm:$0xff] }
  0xd7   : > { %1410 = vmatmul.mubr.f32.gmra.mrb[68].mxu1 %v284_v5  ;;  %2685 = vmatprep.subr.bf16.mxu1 %v2684_v1  ;;  %v1941_v5 = vsel %vm1940_vm2, %v3678_v60, 0.0 }
  0xd8   : > { %1145 = vmatmul.mubr.f32.gmra.mrb[4].mxu0 %v210_v7  ;;  %1414 = vmatprep.mubr.f32.mxu1 %v294_v23  ;;  %v348_v7 = vld [vmem:[%s3022_s17 + $0x500] sm:$0xff]  ;;  %v3696_v23 = vsel %vm1846_vm3, 1.0, %v2901_v59  ;;  %v1943_v12 = vadd.f32 %v1942_v47, %v1941_v5  ;;  %v1791_v5 = vadd.s32 96, %v3637_v29  ;;  %v1822_v47 = vadd.s32 %v3651_v38, %v1789_v53 }
  0xd9   : > { %1149 = vmatprep.mubr.f32.mxu0 %v220_v8  ;;  %2636 = vmatpush1.bf16.msra.mxu0 %v3233_v4  ;;  %v615_v4 = vld [vmem:[%s4549_s1 + $0x458] sm:$0xff]  ;;  %v274_v8 = vld [vmem:[%s3022_s17 + $0x2b0] sm:$0xff] }
  0xda   : > { %2637 = vmatprep.subr.bf16.mxu0 %v2900_v3  ;;  %2687 = vmatpush3.bf16.msra.mxu1 %v2684_v1  ;;  %v2696_v30 = vpack.c.bf16 %v615_v4, %v614_v20  ;;  %v1815_v1 = vadd.s32 %v3651_v38, %v1782_v51  ;;  %vm1854_vm11 = vcmp.lt.s32.totalorder %v1822_v47, 512 }
  0xdb   : > { %1415 = vmatmul.mubr.f32.gmra.mrb[70].mxu1 %v293_v11  ;;  %2689 = vmatprep.subr.bf16.mxu1 %v2688_v9  ;;  %v1816_v11 = vadd.s32 %v3651_v38, %v1783_v0 }
  0xdc   : > { %1150 = vmatmul.mubr.f32.gmra.mrb[6].mxu0 %v219_v13  ;;  %1419 = vmatprep.mubr.f32.mxu1 %v303_v16  ;;  %vm1847_vm4 = vcmp.lt.s32.totalorder %v1815_v1, 512  ;;  %v273_v13 = vld [vmem:[%s3022_s17 + $0x2a8] sm:$0xff] }
  0xdd   : > { %1154 = vmatprep.mubr.f32.mxu0 %v229_v17  ;;  %2639 = vmatpush1.bf16.msra.mxu0 %v3254_v14  ;;  %v617_v14 = vld [vmem:[%s4549_s1 + $0x468] sm:$0xff]  ;;  %v3709_v17 = vsel %vm1847_vm4, 1.0, %v2901_v59  ;;  %vm1848_vm5 = vcmp.lt.s32.totalorder %v1816_v11, 512 }
  0xde   : > { %2640 = vmatprep.subr.bf16.mxu0 %v2900_v3  ;;  %2691 = vmatpush3.bf16.msra.mxu1 %v2688_v9  ;;  %v2700_v43 = vpack.c.bf16 %v617_v14, %v616_v32  ;;  %v1784_v9 = vadd.s32 40, %v3637_v29  ;;  %v357_v16 = vld [vmem:[%s3022_s17 + $0x548] sm:$0xff] }
  0xdf   : > { %1420 = vmatmul.mubr.f32.gmra.mrb[72].mxu1 %v302_v19  ;;  %2693 = vmatprep.subr.bf16.mxu1 %v2692_v18  ;;  %v1785_v19 = vadd.s32 48, %v3637_v29 }
  0xe0   : > { %1155 = vmatmul.mubr.f32.gmra.mrb[8].mxu0 %v228_v25  ;;  %1424 = vmatprep.mubr.f32.mxu1 %v312_v27  ;;  %v1817_v20 = vadd.s32 %v3651_v38, %v1784_v9  ;;  %v282_v25 = vld [vmem:[%s3022_s17 + $0x2f0] sm:$0xff] }
  0xe1   : > { %1159 = vmatprep.mubr.f32.mxu0 %v238_v28  ;;  %2642 = vmatpush1.bf16.msra.mxu0 %v3275_v24  ;;  %v320_v24 = vld [vmem:[%s3022_s17 + $0x420] sm:$0xff]  ;;  %v366_v27 = vld [vmem:[%s3022_s17 + $0x590] sm:$0xff]  ;;  %v3722_v28 = vsel %vm1848_vm5, 1.0, %v2901_v59  ;;  %v1818_v32 = vadd.s32 %v3651_v38, %v1785_v19 }
  0xe2   : > { %2643 = vmatprep.subr.bf16.mxu0 %v2900_v3  ;;  %2695 = vmatpush3.bf16.msra.mxu1 %v2692_v18  ;;  %v283_v18 = vld [vmem:[%s3022_s17 + $0x2f8] sm:$0xff]  ;;  %vm1849_vm6 = vcmp.lt.s32.totalorder %v1817_v20, 512  ;;  %v1794_v20 = vadd.s32 120, %v3637_v29 }
  0xe3   : > { %1425 = vmatmul.mubr.f32.gmra.mrb[74].mxu1 %v311_v31  ;;  %2697 = vmatprep.subr.bf16.mxu1 %v2696_v30  ;;  %v1786_v31 = vadd.s32 56, %v3637_v29  ;;  %v3736_v40 = vsel %vm1849_vm6, 1.0, %v2901_v59  ;;  %vm1850_vm7 = vcmp.lt.s32.totalorder %v1818_v32, 512 }
  0xe4   : > { %1160 = vmatmul.mubr.f32.gmra.mrb[10].mxu0 %v237_v35  ;;  %1429 = vmatprep.mubr.f32.mxu1 %v321_v36  ;;  %v291_v35 = vld [vmem:[%s3022_s17 + $0x338] sm:$0xff]  ;;  %4607 = vst [vmem:[#allocation2_spill] sm:$0xff] %v3736_v40  ;;  %v3750_v51 = vsel %vm1850_vm7, 1.0, %v2901_v59 }
  0xe5   : > { %1164 = vmatprep.mubr.f32.mxu0 %v247_v39  ;;  %2645 = vmatpush1.bf16.msra.mxu0 %v3296_v34  ;;  %v255_v34 = vld [vmem:[%s3022_s17 + $0x218] sm:$0xff]  ;;  %v1787_v39 = vadd.s32 64, %v3637_v29  ;;  %v1819_v42 = vadd.s32 %v3651_v38, %v1786_v31  ;;  %4608 = vst [vmem:[#allocation3_spill] sm:$0xff] %v3750_v51  ;;  %v1795_v31 = vadd.s32 128, %v3637_v29 }
  0xe6   : > { %2646 = vmatprep.subr.bf16.mxu0 %v2900_v3  ;;  %2699 = vmatpush3.bf16.msra.mxu1 %v2696_v30  ;;  %v292_v30 = vld [vmem:[%s3022_s17 + $0x340] sm:$0xff]  ;;  %v375_v36 = vld [vmem:[%s3022_s17 + $0x5d8] sm:$0xff] }
  0xe7   : > { %1430 = vmatmul.mubr.f32.gmra.mrb[76].mxu1 %v320_v24  ;;  %2701 = vmatprep.subr.bf16.mxu1 %v2700_v43  ;;  %v374_v24 = vld [vmem:[%s3022_s17 + $0x5d0] sm:$0xff]  ;;  %vm1851_vm8 = vcmp.lt.s32.totalorder %v1819_v42, 512 }
  0xe8   : > { %1165 = vmatmul.mubr.f32.gmra.mrb[12].mxu0 %v246_v48  ;;  %1434 = vmatprep.mubr.f32.mxu1 %v330_v50  ;;  %v1788_v48 = vadd.s32 72, %v3637_v29  ;;  %v1820_v50 = vadd.s32 %v3651_v38, %v1787_v39  ;;  %v3764_v1 = vsel %vm1851_vm8, 1.0, %v2901_v59  ;;  %v336_v39 = vld [vmem:[%s3022_s17 + $0x4a0] sm:$0xff] }
  0xe9   : > { %1169 = vmatprep.mubr.f32.mxu0 %v256_v52  ;;  %2648 = vmatpush1.bf16.msra.mxu0 %v3317_v44  ;;  %v338_v44 = vld [vmem:[%s3022_s17 + $0x4b0] sm:$0xff]  ;;  %4609 = vst [vmem:[#allocation4_spill] sm:$0xff] %v3764_v1  ;;  %v1954_v11 = vsel %vm1940_vm2, %v3764_v1, 0.0 }
  0xea   : > { %2649 = vmatprep.subr.bf16.mxu0 %v2900_v3  ;;  %2703 = vmatpush3.bf16.msra.mxu1 %v2700_v43  ;;  %v310_v52 = vld [vmem:[%s3022_s17 + $0x3d0] sm:$0xff]  ;;  %v1821_v0 = vadd.s32 %v3651_v38, %v1788_v48  ;;  %vm1852_vm9 = vcmp.lt.s32.totalorder %v1820_v50, 512  ;;  %v419_v50 = vld [vmem:[%s3022_s17 + $0x738] sm:$0xff] }
  0xeb   : > { %1435 = vmatmul.mubr.f32.gmra.mrb[78].mxu1 %v329_v56  ;;  %2705 = vmatprep.subr.bf16.mxu1 %v2704_v54  ;;  %v1790_v56 = vadd.s32 88, %v3637_v29  ;;  %v3774_v9 = vsel %vm1852_vm9, 1.0, %v2901_v59 }
  0xec   : > { %1170 = vmatmul.mubr.f32.gmra.mrb[14].mxu0 %v255_v34  ;;  %1439 = vmatprep.mubr.f32.mxu1 %v339_v58  ;;  %v1952_v34 = vsel %vm1940_vm2, %v3750_v51, 0.0  ;;  %v309_v58 = vld [vmem:[%s3022_s17 + $0x3c8] sm:$0xff]  ;;  %4610 = vst [vmem:[#allocation5_spill] sm:$0xff] %v3774_v9  ;;  %vm1853_vm10 = vcmp.lt.s32.totalorder %v1821_v0, 512  ;;  %v1956_v19 = vsel %vm1940_vm2, %v3774_v9, 0.0  ;;  %v1799_v0 = vadd.s32 160, %v3637_v29 }
  0xed   : > { %1174 = vmatprep.mubr.f32.mxu0 %v265_v63  ;;  %2651 = vmatpush1.bf16.msra.mxu0 %v3338_v55  ;;  %v1944_v55 = vsel %vm1940_vm2, %v3696_v23, 0.0  ;;  %v393_v63 = vld [vmem:[%s3022_s17 + $0x668] sm:$0xff] }
  0xee   : > { %2652 = vmatprep.subr.bf16.mxu0 %v2900_v3  ;;  %2707 = vmatpush3.bf16.msra.mxu1 %v2704_v54  ;;  %v1945_v4 = vadd.f32 %v1944_v55, %v1943_v12  ;;  %v318_v12 = vld [vmem:[%s3022_s17 + $0x410] sm:$0xff]  ;;  %v328_v55 = vld [vmem:[%s3022_s17 + $0x460] sm:$0xff] }
  0xef   : > { %1440 = vmatmul.mubr.f32.gmra.mrb[80].mxu1 %v338_v44  ;;  %v319_v44 = vld [vmem:[%s3022_s17 + $0x418] sm:$0xff] }
  0xf0   : > { %1175 = vmatmul.mubr.f32.gmra.mrb[16].mxu0 %v264_v6  ;;  %1444 = vmatprep.mubr.f32.mxu1 %v348_v7  ;;  %v1792_v7 = vadd.s32 104, %v3637_v29 }
  0xf1   : > { %1179 = vmatprep.mubr.f32.mxu0 %v274_v8  ;;  %2654 = vmatpush1.bf16.msra.mxu0 %v3359_v2  ;;  %v1946_v2 = vsel %vm1940_vm2, %v3709_v17, 0.0  ;;  %v1823_v8 = vadd.s32 %v3651_v38, %v1790_v56  ;;  %v429_v56 = vld [vmem:[%s3022_s17 + $0x788] sm:$0xff] }
  0xf2   : > { %2655 = vmatprep.subr.bf16.mxu0 %v2900_v3  ;;  %v1947_v14 = vadd.f32 %v1946_v2, %v1945_v4  ;;  %v1825_v4 = vadd.s32 %v3651_v38, %v1792_v7  ;;  %v327_v2 = vld [vmem:[%s3022_s17 + $0x458] sm:$0xff]  ;;  %v1800_v7 = vadd.s32 168, %v3637_v29 }
  0xf3   : > { %1445 = vmatmul.mubr.f32.gmra.mrb[82].mxu1 %v347_v57  ;;  %v402_v57 = vld [vmem:[%s3022_s17 + $0x6b0] sm:$0xff]  ;;  %vm1855_vm12 = vcmp.lt.s32.totalorder %v1823_v8, 512 }
  0xf4   : > { %1180 = vmatmul.mubr.f32.gmra.mrb[18].mxu0 %v273_v13  ;;  %1449 = vmatprep.mubr.f32.mxu1 %v357_v16  ;;  %v1793_v13 = vadd.s32 112, %v3637_v29  ;;  %v1824_v16 = vadd.s32 %v3651_v38, %v1791_v5  ;;  %vm1857_vm14 = vcmp.lt.s32.totalorder %v1825_v4, 512 }
  0xf5   : > { %1184 = vmatprep.mubr.f32.mxu0 %v283_v18  ;;  %2657 = vmatpush1.bf16.msra.mxu0 %v3380_v15  ;;  %v1948_v15 = vsel %vm1940_vm2, %v3722_v28, 0.0 }
  0xf6   : > { %2658 = vmatprep.subr.bf16.mxu0 %v2900_v3  ;;  %v1949_v43 = vadd.f32 %v1948_v15, %v1947_v14  ;;  %v1826_v32 = vadd.s32 %v3651_v38, %v1793_v13  ;;  %vm1856_vm13 = vcmp.lt.s32.totalorder %v1824_v16, 512  ;;  %v3804_v14 = vsel %vm1855_vm12, 1.0, %v2901_v59  ;;  %v410_v15 = vld [vmem:[%s3022_s17 + $0x6f0] sm:$0xff]  ;;  %v364_v16 = vld [vmem:[%s3022_s17 + $0x580] sm:$0xff] }
  0xf7   : > { %1450 = vmatmul.mubr.f32.gmra.mrb[84].mxu1 %v356_v21  ;;  %v3791_v21 = vsel %vm1853_vm10, 1.0, %v2901_v59  ;;  %4613 = vst [vmem:[#allocation8_spill] sm:$0xff] %v3804_v14  ;;  %v3818_v42 = vsel %vm1856_vm13, 1.0, %v2901_v59 }
  0xf8   : > { %1185 = vmatmul.mubr.f32.gmra.mrb[20].mxu0 %v282_v25  ;;  %1454 = vmatprep.mubr.f32.mxu1 %v366_v27  ;;  %4611 = vst [vmem:[#allocation6_spill] sm:$0xff] %v3791_v21  ;;  %v411_v25 = vld [vmem:[%s3022_s17 + $0x6f8] sm:$0xff]  ;;  %v3797_v27 = vsel %vm1854_vm11, 1.0, %v2901_v59  ;;  %4614 = vst [vmem:[#allocation9_spill] sm:$0xff] %v3818_v42  ;;  %vm1858_vm15 = vcmp.lt.s32.totalorder %v1826_v32, 512 }
  0xf9   : > { %1189 = vmatprep.mubr.f32.mxu0 %v292_v30  ;;  %2660 = vmatpush1.bf16.msra.mxu0 %v3401_v26  ;;  %v1950_v26 = vsel %vm1940_vm2, %v3736_v40, 0.0  ;;  %4612 = vst [vmem:[#allocation7_spill] sm:$0xff] %v3797_v27  ;;  %v337_v30 = vld [vmem:[%s3022_s17 + $0x4a8] sm:$0xff]  ;;  %v363_v32 = vld [vmem:[%s3022_s17 + $0x578] sm:$0xff] }
  0xfa   : > { %2661 = vmatprep.subr.bf16.mxu0 %v2900_v3  ;;  %v1951_v54 = vadd.f32 %v1950_v26, %v1949_v43  ;;  %v1797_v26 = vadd.s32 144, %v3637_v29 }
  0xfb   : > { %1455 = vmatmul.mubr.f32.gmra.mrb[86].mxu1 %v365_v33 }
  0xfc   : > { %1190 = vmatmul.mubr.f32.gmra.mrb[22].mxu0 %v291_v35  ;;  %1459 = vmatprep.mubr.f32.mxu1 %v375_v36  ;;  %v1953_v6 = vadd.f32 %v1952_v34, %v1951_v54  ;;  %v1827_v35 = vadd.s32 %v3651_v38, %v1794_v20  ;;  %v1960_v36 = vsel %vm1940_vm2, %v3797_v27, 0.0  ;;  %v1964_v54 = vsel %vm1940_vm2, %v3818_v42, 0.0 }
  0xfd   : > { %1194 = vmatprep.mubr.f32.mxu0 %v301_v41  ;;  %2663 = vmatpush1.bf16.msra.mxu0 %v3422_v37  ;;  %v383_v37 = vld [vmem:[%s3022_s17 + $0x618] sm:$0xff]  ;;  %v420_v41 = vld [vmem:[%s3022_s17 + $0x740] sm:$0xff]  ;;  %v3836_v34 = vsel %vm1858_vm15, 1.0, %v2901_v59 }
  0xfe   : > { %2664 = vmatprep.subr.bf16.mxu0 %v2900_v3  ;;  %v1955_v18 = vadd.f32 %v1954_v11, %v1953_v6  ;;  %vm1859_vm0 = vcmp.lt.s32.totalorder %v1827_v35, 512  ;;  %4616 = vst [vmem:[#allocation11_spill] sm:$0xff] %v3836_v34  ;;  %v1968_v11 = vsel %vm1940_vm2, %v3836_v34, 0.0  ;;  %v1803_v35 = vadd.s32 192, %v3637_v29 }
  0xff   : > { %1460 = vmatmul.mubr.f32.gmra.mrb[88].mxu1 %v374_v24  ;;  %v346_v24 = vld [vmem:[%s3022_s17 + $0x4f0] sm:$0xff]  ;;  %v3844_v47 = vsel %vm1859_vm0, 1.0, %v2901_v59 }
 0x100   : > { %1195 = vmatmul.mubr.f32.gmra.mrb[24].mxu0 %v300_v45  ;;  %1464 = vmatprep.mubr.f32.mxu1 %v384_v46  ;;  %v1957_v33 = vadd.f32 %v1956_v19, %v1955_v18  ;;  %v1828_v45 = vadd.s32 %v3651_v38, %v1795_v31  ;;  %v1962_v46 = vsel %vm1940_vm2, %v3804_v14, 0.0  ;;  %4617 = vst [vmem:[#allocation12_spill] sm:$0xff] %v3844_v47  ;;  %v1801_v18 = vadd.s32 176, %v3637_v29 }
 0x101   : > { %1199 = vmatprep.mubr.f32.mxu0 %v310_v52  ;;  %2666 = vmatpush1.bf16.msra.mxu0 %v3443_v49  ;;  %v392_v49 = vld [vmem:[%s3022_s17 + $0x660] sm:$0xff]  ;;  %v1798_v52 = vadd.s32 152, %v3637_v29  ;;  %v1832_v19 = vadd.s32 %v3651_v38, %v1799_v0 }
 0x102   : > { %2667 = vmatprep.subr.bf16.mxu0 %v2900_v3  ;;  %vm1860_vm1 = vcmp.lt.s32.totalorder %v1828_v45, 512 }
 0x103   : > { %1465 = vmatmul.mubr.f32.gmra.mrb[90].mxu1 %v383_v37  ;;  %v345_v37 = vld [vmem:[%s3022_s17 + $0x4e8] sm:$0xff]  ;;  %v1831_v8 = vadd.s32 %v3651_v38, %v1798_v52  ;;  %vm1864_vm6 = vcmp.lt.s32.totalorder %v1832_v19, 512 }
 0x104   : > { %1200 = vmatmul.mubr.f32.gmra.mrb[26].mxu0 %v309_v58  ;;  %1469 = vmatprep.mubr.f32.mxu1 %v393_v63  ;;  %v355_v63 = vld [vmem:[%s3022_s17 + $0x538] sm:$0xff]  ;;  %v3890_v52 = vsel %vm1864_vm6, 1.0, %v2901_v59 }
 0x105   : > { %1204 = vmatprep.mubr.f32.mxu0 %v319_v44  ;;  %2669 = vmatpush1.bf16.msra.mxu0 %v3464_v61  ;;  %v401_v61 = vld [vmem:[%s3022_s17 + $0x6a8] sm:$0xff]  ;;  %v1830_v44 = vadd.s32 %v3651_v38, %v1797_v26  ;;  %vm1863_vm5 = vcmp.lt.s32.totalorder %v1831_v8, 512  ;;  %v1804_v26 = vadd.s32 200, %v3637_v29  ;;  %4622 = vst [vmem:[#allocation17_spill] sm:$0xff] %v3890_v52 }
 0x106   : > { %2670 = vmatprep.subr.bf16.mxu0 %v2900_v3  ;;  %v465_v8 = vld [vmem:[%s3022_s17 + $0x8a8] sm:$0xff] }
 0x107   : > { %1470 = vmatmul.mubr.f32.gmra.mrb[92].mxu1 %v392_v49  ;;  %v428_v49 = vld [vmem:[%s3022_s17 + $0x780] sm:$0xff]  ;;  %vm1862_vm4 = vcmp.lt.s32.totalorder %v1830_v44, 512  ;;  %v455_v44 = vld [vmem:[%s3022_s17 + $0x858] sm:$0xff] }
 0x108   : > { %1205 = vmatmul.mubr.f32.gmra.mrb[28].mxu0 %v318_v12  ;;  %1474 = vmatprep.mubr.f32.mxu1 %v402_v57  ;;  %v354_v12 = vld [vmem:[%s3022_s17 + $0x530] sm:$0xff] }
 0x109   : > { %1209 = vmatprep.mubr.f32.mxu0 %v328_v55  ;;  %2672 = vmatpush1.bf16.msra.mxu0 %v3485_v10  ;;  %v1958_v10 = vsel %vm1940_vm2, %v3791_v21, 0.0  ;;  %v438_v57 = vld [vmem:[%s3022_s17 + $0x7d0] sm:$0xff]  ;;  %v3854_v55 = vsel %vm1860_vm1, 1.0, %v2901_v59 }
 0x10a   : > { %2673 = vmatprep.subr.bf16.mxu0 %v2900_v3  ;;  %v1796_v3 = vadd.s32 136, %v3637_v29  ;;  %v1959_v43 = vadd.f32 %v1958_v10, %v1957_v33  ;;  %4618 = vst [vmem:[#allocation13_spill] sm:$0xff] %v3854_v55  ;;  %v1972_v31 = vsel %vm1940_vm2, %v3854_v55, 0.0  ;;  %v447_v33 = vld [vmem:[%s3022_s17 + $0x818] sm:$0xff]  ;;  %v3872_v10 = vsel %vm1862_vm4, 1.0, %v2901_v59 }
 0x10b   : > { %1475 = vmatmul.mubr.f32.gmra.mrb[94].mxu1 %v401_v61  ;;  %v1970_v61 = vsel %vm1940_vm2, %v3844_v47, 0.0  ;;  %4620 = vst [vmem:[#allocation15_spill] sm:$0xff] %v3872_v10 }
 0x10c   : > { %1210 = vmatmul.mubr.f32.gmra.mrb[30].mxu0 %v327_v2  ;;  %1479 = vmatprep.mubr.f32.mxu1 %v411_v25  ;;  %v1961_v48 = vadd.f32 %v1960_v36, %v1959_v43  ;;  %v1829_v53 = vadd.s32 %v3651_v38, %v1796_v3  ;;  %v437_v2 = vld [vmem:[%s3022_s17 + $0x7c8] sm:$0xff]  ;;  %v1802_v25 = vadd.s32 184, %v3637_v29  ;;  %v1834_v36 = vadd.s32 %v3651_v38, %v1801_v18 }
 0x10d   : > { %1214 = vmatprep.mubr.f32.mxu0 %v337_v30  ;;  %2675 = vmatpush1.bf16.msra.mxu0 %v3506_v22  ;;  %v3826_v22 = vsel %vm1857_vm14, 1.0, %v2901_v59  ;;  %v1833_v30 = vadd.s32 %v3651_v38, %v1800_v7  ;;  %v373_v3 = vld [vmem:[%s3022_s17 + $0x5c8] sm:$0xff] }
 0x10e   : > { %4615 = vst [vmem:[#allocation10_spill] sm:$0xff] %v3826_v22  ;;  %v1963_v58 = vadd.f32 %v1962_v46, %v1961_v48  ;;  %v1966_v5 = vsel %vm1940_vm2, %v3826_v22, 0.0  ;;  %vm1861_vm3 = vcmp.lt.s32.totalorder %v1829_v53, 512  ;;  %v1835_v45 = vadd.s32 %v3651_v38, %v1802_v25  ;;  %v372_v48 = vld [vmem:[%s3022_s17 + $0x5c0] sm:$0xff]  ;;  %v381_v7 = vld [vmem:[%s3022_s17 + $0x608] sm:$0xff] }
 0x10f   : > { %1480 = vmatmul.mubr.f32.gmra.mrb[96].mxu1 %v410_v15  ;;  %v3862_v20 = vsel %vm1861_vm3, 1.0, %v2901_v59  ;;  %vm1865_vm7 = vcmp.lt.s32.totalorder %v1833_v30, 512  ;;  %v1976_v46 = vsel %vm1940_vm2, %v3872_v10, 0.0  ;;  %vm1866_vm8 = vcmp.lt.s32.totalorder %v1834_v36, 512  ;;  %v464_v25 = vld [vmem:[%s3022_s17 + $0x8a0] sm:$0xff] }
 0x110   : > { %1215 = vmatmul.mubr.f32.gmra.mrb[32].mxu0 %v336_v39  ;;  %1484 = vmatprep.mubr.f32.mxu1 %v420_v41  ;;  %v1965_v6 = vadd.f32 %v1964_v54, %v1963_v58  ;;  %4619 = vst [vmem:[#allocation14_spill] sm:$0xff] %v3862_v20  ;;  %v1974_v39 = vsel %vm1940_vm2, %v3862_v20, 0.0  ;;  %v3880_v41 = vsel %vm1863_vm5, 1.0, %v2901_v59  ;;  %v382_v54 = vld [vmem:[%s3022_s17 + $0x610] sm:$0xff]  ;;  %vm1867_vm9 = vcmp.lt.s32.totalorder %v1835_v45, 512  ;;  %v400_v36 = vld [vmem:[%s3022_s17 + $0x6a0] sm:$0xff] }
 0x111   : > { %1219 = vmatprep.mubr.f32.mxu0 %v346_v24  ;;  %4621 = vst [vmem:[#allocation16_spill] sm:$0xff] %v3880_v41  ;;  %v446_v24 = vld [vmem:[%s3022_s17 + $0x810] sm:$0xff]  ;;  %v1978_v58 = vsel %vm1940_vm2, %v3880_v41, 0.0  ;;  %v1808_v30 = vadd.s32 232, %v3637_v29  ;;  %vm2221_vm3 = vcmask 1041408  }
 0x112   : > { %v1967_v13 = vadd.f32 %v1966_v5, %v1965_v6  ;;  %v1806_v5 = vadd.s32 216, %v3637_v29  ;;  %v1837_v6 = vadd.s32 %v3651_v38, %v1804_v26 }
 0x113   : > { %1485 = vmatmul.mubr.f32.gmra.mrb[98].mxu1 %v419_v50  ;;  %v456_v50 = vld [vmem:[%s3022_s17 + $0x860] sm:$0xff] }
 0x114   : > { %1220 = vmatmul.mubr.f32.gmra.mrb[34].mxu0 %v345_v37  ;;  %1489 = vmatprep.mubr.f32.mxu1 %v429_v56  ;;  %v1969_v4 = vadd.f32 %v1968_v11, %v1967_v13  ;;  %v1805_v37 = vadd.s32 208, %v3637_v29  ;;  %v1836_v56 = vadd.s32 %v3651_v38, %v1803_v35  ;;  %v3908_v11 = vsel %vm1866_vm8, 1.0, %v2901_v59 }
 0x115   : > { %1224 = vmatprep.mubr.f32.mxu0 %v355_v63  ;;  %v3898_v63 = vsel %vm1865_vm7, 1.0, %v2901_v59  ;;  %4624 = vst [vmem:[#allocation19_spill] sm:$0xff] %v3908_v11  ;;  %vm1869_vm11 = vcmp.lt.s32.totalorder %v1837_v6, 512 }
 0x116   : > { %v1971_v15 = vadd.f32 %v1970_v61, %v1969_v4  ;;  %4623 = vst [vmem:[#allocation18_spill] sm:$0xff] %v3898_v63  ;;  %v1838_v18 = vadd.s32 %v3651_v38, %v1805_v37  ;;  %vm1868_vm10 = vcmp.lt.s32.totalorder %v1836_v56, 512  ;;  %v1982_v19 = vsel %vm1940_vm2, %v3898_v63, 0.0  ;;  %v399_v56 = vld [vmem:[%s3022_s17 + $0x698] sm:$0xff] }
 0x117   : > { %1490 = vmatmul.mubr.f32.gmra.mrb[100].mxu1 %v428_v49  ;;  %v1980_v49 = vsel %vm1940_vm2, %v3890_v52, 0.0  ;;  %v3918_v4 = vsel %vm1867_vm9, 1.0, %v2901_v59 }
 0x118   : > { %1225 = vmatmul.mubr.f32.gmra.mrb[36].mxu0 %v354_v12  ;;  %1494 = vmatprep.mubr.f32.mxu1 %v438_v57  ;;  %v1973_v43 = vadd.f32 %v1972_v31, %v1971_v15  ;;  %v391_v57 = vld [vmem:[%s3022_s17 + $0x658] sm:$0xff]  ;;  %4625 = vst [vmem:[#allocation20_spill] sm:$0xff] %v3918_v4  ;;  %v1839_v31 = vadd.s32 %v3651_v38, %v1806_v5  ;;  %v474_v15 = vld [vmem:[%s3022_s17 + $0x8f0] sm:$0xff]  ;;  %vm1870_vm12 = vcmp.lt.s32.totalorder %v1838_v18, 512  ;;  %v1986_v26 = vsel %vm1940_vm2, %v3918_v4, 0.0  ;;  %v409_v5 = vld [vmem:[%s3022_s17 + $0x6e8] sm:$0xff] }
 0x119   : > { %1229 = vmatprep.mubr.f32.mxu0 %v364_v16  ;;  %v1807_v16 = vadd.s32 224, %v3637_v29 }
 0x11a   : > { %v1975_v53 = vadd.f32 %v1974_v39, %v1973_v43  ;;  %v1809_v43 = vadd.s32 240, %v3637_v29  ;;  %vm1871_vm13 = vcmp.lt.s32.totalorder %v1839_v31, 512 }
 0x11b   : > { %1495 = vmatmul.mubr.f32.gmra.mrb[102].mxu1 %v437_v2 }
 0x11c   : > { %1230 = vmatmul.mubr.f32.gmra.mrb[38].mxu0 %v363_v32  ;;  %1499 = vmatprep.mubr.f32.mxu1 %v447_v33  ;;  %v1977_v0 = vadd.f32 %v1976_v46, %v1975_v53  ;;  %v1984_v32 = vsel %vm1940_vm2, %v3908_v11, 0.0  ;;  %v390_v33 = vld [vmem:[%s3022_s17 + $0x650] sm:$0xff]  ;;  %v3939_v46 = vsel %vm1869_vm11, 1.0, %v2901_v59  ;;  %v1810_v53 = vadd.s32 248, %v3637_v29 }
 0x11d   : > { %1234 = vmatprep.mubr.f32.mxu0 %v373_v3  ;;  %v3929_v3 = vsel %vm1868_vm10, 1.0, %v2901_v59  ;;  %4627 = vst [vmem:[#allocation22_spill] sm:$0xff] %v3939_v46  ;;  %v1842_v29 = vadd.s32 %v3651_v38, %v1809_v43  ;;  %v417_v43 = vld [vmem:[%s3022_s17 + $0x728] sm:$0xff] }
 0x11e   : > { %v1979_v12 = vadd.f32 %v1978_v58, %v1977_v0  ;;  %4626 = vst [vmem:[#allocation21_spill] sm:$0xff] %v3929_v3  ;;  %v1988_v37 = vsel %vm1940_vm2, %v3929_v3, 0.0  ;;  %v196_v58 = vld [vmem:[%s3022_s17 + $0x40] sm:$0xff]  ;;  %v3950_v0 = vsel %vm1870_vm12, 1.0, %v2901_v59 }
 0x11f   : > { %1500 = vmatmul.mubr.f32.gmra.mrb[104].mxu1 %v446_v24  ;;  %v1840_v24 = vadd.s32 %v3651_v38, %v1807_v16  ;;  %4628 = vst [vmem:[#allocation23_spill] sm:$0xff] %v3950_v0  ;;  %v1843_v16 = vadd.s32 %v3651_v38, %v1810_v53  ;;  %v1992_v18 = vsel %vm1940_vm2, %v3950_v0, 0.0  ;;  %vm1874_vm0 = vcmp.lt.s32.totalorder %v1842_v29, 512  ;;  %v250_v29 = vld [vmem:[%s3022_s17 + $0x1f0] sm:$0xff] }
 0x120   : > { %1235 = vmatmul.mubr.f32.gmra.mrb[40].mxu0 %v372_v48  ;;  %1504 = vmatprep.mubr.f32.mxu1 %v456_v50  ;;  %v1981_v2 = vadd.f32 %v1980_v49, %v1979_v12  ;;  %v473_v50 = vld [vmem:[%s3022_s17 + $0x8e8] sm:$0xff]  ;;  %v1990_v49 = vsel %vm1940_vm2, %v3939_v46, 0.0 }
 0x121   : > { %1239 = vmatprep.mubr.f32.mxu0 %v382_v54  ;;  %v1841_v54 = vadd.s32 %v3651_v38, %v1808_v30  ;;  %vm1872_vm14 = vcmp.lt.s32.totalorder %v1840_v24, 512  ;;  %v418_v30 = vld [vmem:[%s3022_s17 + $0x730] sm:$0xff]  ;;  %vm1875_vm1 = vcmp.lt.s32.totalorder %v1843_v16, 512  ;;  %v232_v24 = vld [vmem:[%s3022_s17 + $0x160] sm:$0xff] }
 0x122   : > { %v3911_v13 = vpop.f32.mrb[0].mxu1  ;;  %v1983_v35 = vadd.f32 %v1982_v19, %v1981_v2  ;;  %v408_v19 = vld [vmem:[%s3022_s17 + $0x6e0] sm:$0xff]  ;;  %v3968_v2 = vsel %vm1872_vm14, 1.0, %v2901_v59 }
 0x123   : > { %1505 = vmatmul.mubr.f32.gmra.mrb[106].mxu1 %v455_v44  ;;  %v688_v61 = vpop.f32.mrb[1].mxu1  ;;  %vm1873_vm15 = vcmp.lt.s32.totalorder %v1841_v54, 512  ;;  %4630 = vst [vmem:[#allocation25_spill] sm:$0xff] %v3968_v2 }
 0x124   : > { %1240 = vmatmul.mubr.f32.gmra.mrb[42].mxu0 %v381_v7  ;;  %1509 = vmatprep.mubr.f32.mxu1 %v465_v8  ;;  %v1985_v48 = vadd.f32 %v1984_v32, %v1983_v35  ;;  %v3959_v8 = vsel %vm1871_vm13, 1.0, %v2901_v59  ;;  %v214_v61 = vld [vmem:[%s3022_s17 + $0xd0] sm:$0xff]  ;;  %v223_v35 = vld [vmem:[%s3022_s17 + $0x118] sm:$0xff] }
 0x125   : > { %1244 = vmatprep.mubr.f32.mxu0 %v391_v57  ;;  %4629 = vst [vmem:[#allocation24_spill] sm:$0xff] %v3959_v8  ;;  %v205_v57 = vld [vmem:[%s3022_s17 + $0x88] sm:$0xff]  ;;  %v1994_v38 = vsel %vm1940_vm2, %v3959_v8, 0.0 }
 0x126   : > { %v3932_v39 = vpop.f32.mrb[2].mxu1  ;;  %v1987_v44 = vadd.f32 %v1986_v26, %v1985_v48  ;;  %v3984_v26 = vsel %vm1874_vm0, 1.0, %v2901_v59  ;;  %v427_v48 = vld [vmem:[%s3022_s17 + $0x778] sm:$0xff] }
 0x127   : > { %1510 = vmatmul.mubr.f32.gmra.mrb[108].mxu1 %v464_v25  ;;  %v693_v45 = vpop.f32.mrb[3].mxu1  ;;  %4632 = vst [vmem:[#allocation27_spill] sm:$0xff] %v3984_v26 }
 0x128   : > { %1245 = vmatmul.mubr.f32.gmra.mrb[44].mxu0 %v390_v33  ;;  %1514 = vmatprep.mubr.f32.mxu1 %v474_v15  ;;  %v1989_v12 = vadd.f32 %v1988_v37, %v1987_v44  ;;  %v3976_v33 = vsel %vm1873_vm15, 1.0, %v2901_v59  ;;  %v3992_v37 = vsel %vm1875_vm1, 1.0, %v2901_v59  ;;  %v2000_v44 = vsel %vm1940_vm2, %v3984_v26, 0.0 }
 0x129   : > { %1249 = vmatprep.mubr.f32.mxu0 %v400_v36  ;;  %4631 = vst [vmem:[#allocation26_spill] sm:$0xff] %v3976_v33  ;;  %v1996_v36 = vsel %vm1940_vm2, %v3968_v2, 0.0  ;;  %v1998_v53 = vsel %vm1940_vm2, %v3976_v33, 0.0  ;;  %4633 = vst [vmem:[#allocation28_spill] sm:$0xff] %v3992_v37  ;;  %v2002_v59 = vsel %vm1940_vm2, %v3992_v37, 0.0  ;;  %vm2219_vm2 = vcmask 1040384  }
 0x12a   : > { %v3953_v6 = vpop.f32.mrb[4].mxu1  ;;  %v1991_v25 = vadd.f32 %v1990_v49, %v1989_v12 }
 0x12b   : > { %1515 = vmatmul.mubr.f32.gmra.mrb[110].mxu1 %v473_v50  ;;  %v698_v7 = vpop.f32.mrb[5].mxu1 }
 0x12c   : > { %1250 = vmatmul.mubr.f32.gmra.mrb[46].mxu0 %v399_v56  ;;  %2436 = vmatprep.mubr.f32.mxu1 %v196_v58  ;;  %v1993_v15 = vadd.f32 %v1992_v18, %v1991_v25  ;;  %v241_v58 = vld [vmem:[%s3022_s17 + $0x1a8] sm:$0xff]  ;;  %v436_v7 = vld [vmem:[%s3022_s17 + $0x7c0] sm:$0xff]  ;;  %v259_v18 = vld [vmem:[%s3022_s17 + $0x238] sm:$0xff] }
 0x12d   : > { %1254 = vmatprep.mubr.f32.mxu0 %v409_v5  ;;  %v426_v5 = vld [vmem:[%s3022_s17 + $0x770] sm:$0xff] }
 0x12e   : > { %v3971_v31 = vpop.f32.mrb[6].mxu1  ;;  %v1995_v45 = vadd.f32 %v1994_v38, %v1993_v15  ;;  %v277_v15 = vld [vmem:[%s3022_s17 + $0x2c8] sm:$0xff] }
 0x12f   : > { %2437 = vmatmul.mubr.f32.vlgmr.msra.gmra.mrb[112].mxu1 %v205_v57  ;;  %v703_v32 = vpop.f32.mrb[7].mxu1 }
 0x130   : > { %1255 = vmatmul.mubr.f32.gmra.mrb[48].mxu0 %v408_v19  ;;  %2439 = vmatprep.mubr.f32.mxu1 %v214_v61  ;;  %v1997_v56 = vadd.f32 %v1996_v36, %v1995_v45  ;;  %v435_v19 = vld [vmem:[%s3022_s17 + $0x7b8] sm:$0xff]  ;;  %v268_v61 = vld [vmem:[%s3022_s17 + $0x280] sm:$0xff]  ;;  %v286_v36 = vld [vmem:[%s3022_s17 + $0x310] sm:$0xff] }
 0x131   : > { %1259 = vmatprep.mubr.f32.mxu0 %v418_v30  ;;  %v445_v30 = vld [vmem:[%s3022_s17 + $0x808] sm:$0xff] }
 0x132   : > { %v3987_v50 = vpop.f32.mrb[8].mxu1  ;;  %v1999_v49 = vadd.f32 %v1998_v53, %v1997_v56  ;;  %v453_v53 = vld [vmem:[%s3022_s17 + $0x848] sm:$0xff]  ;;  %v463_v56 = vld [vmem:[%s3022_s17 + $0x898] sm:$0xff] }
 0x133   : > { %2440 = vmatmul.mubr.f32.gmra.mrb[114].mxu1 %v223_v35  ;;  %v708_v54 = vpop.f32.mrb[9].mxu1  ;;  %v444_v35 = vld [vmem:[%s3022_s17 + $0x800] sm:$0xff] }
 0x134   : > { %1260 = vmatmul.mubr.f32.gmra.mrb[50].mxu0 %v417_v43  ;;  %2442 = vmatprep.mubr.f32.mxu1 %v232_v24  ;;  %v2001_v16 = vadd.f32 %v2000_v44, %v1999_v49  ;;  %v454_v43 = vld [vmem:[%s3022_s17 + $0x850] sm:$0xff]  ;;  %v304_v54 = vld [vmem:[%s3022_s17 + $0x3a0] sm:$0xff] }
 0x135   : > { %1264 = vmatprep.mubr.f32.mxu0 %v427_v48  ;;  %v295_v48 = vld [vmem:[%s3022_s17 + $0x358] sm:$0xff]  ;;  %v322_v49 = vld [vmem:[%s3022_s17 + $0x430] sm:$0xff] }
 0x136   : > { %v4000_v12 = vpop.f32.mrb[10].mxu1  ;;  %v2003_v25 = vadd.f32 %v2002_v59, %v2001_v16  ;;  %v331_v16 = vld [vmem:[%s3022_s17 + $0x478] sm:$0xff] }
 0x137   : > { %2443 = vmatmul.mubr.f32.gmra.mrb[116].mxu1 %v241_v58  ;;  %v713_v57 = vpop.f32.mrb[11].mxu1 }
 0x138   : > { %1265 = vmatmul.mubr.f32.gmra.mrb[52].mxu0 %v426_v5  ;;  %2445 = vmatprep.mubr.f32.mxu1 %v250_v29  ;;  %v313_v5 = vld [vmem:[%s3022_s17 + $0x3e8] sm:$0xff]  ;;  %v462_v29 = vld [vmem:[%s3022_s17 + $0x890] sm:$0xff] }
 0x139   : > { %1269 = vmatprep.mubr.f32.mxu0 %v436_v7  ;;  %2004 = vadd.xlane.f32.xlu0 %v2003_v25  ;;  %v472_v7 = vld [vmem:[%s3022_s17 + $0x8e0] sm:$0xff] }
 0x13a   : > { %v4008_v38 = vpop.f32.mrb[12].mxu1 }
 0x13b   : > { %2446 = vmatmul.mubr.f32.gmra.mrb[118].mxu1 %v259_v18  ;;  %v718_v32 = vpop.f32.mrb[13].mxu1  ;;  %v471_v18 = vld [vmem:[%s3022_s17 + $0x8d8] sm:$0xff] }
 0x13c   : > { %1270 = vmatmul.mubr.f32.gmra.mrb[54].mxu0 %v435_v19  ;;  %2448 = vmatprep.mubr.f32.mxu1 %v268_v61  ;;  %v340_v19 = vld [vmem:[%s3022_s17 + $0x4c0] sm:$0xff]  ;;  %v195_v61 = vld [vmem:[%s3022_s17 + $0x38] sm:$0xff]  ;;  %v349_v32 = vld [vmem:[%s3022_s17 + $0x508] sm:$0xff] }
 0x13d   : > { %1274 = vmatprep.mubr.f32.mxu0 %v445_v30 }
 0x13e   : > { %v4014_v24 = vpop.f32.mrb[14].mxu1 }
 0x13f   : > { %4634 = vst [vmem:[#allocation29_spill] sm:$0xff] %v4014_v24  ;;  %2449 = vmatmul.mubr.f32.gmra.mrb[120].mxu1 %v277_v15  ;;  %v723_v45 = vpop.f32.mrb[15].mxu1  ;;  %v194_v15 = vld [vmem:[%s3022_s17 + $0x30] sm:$0xff] }
 0x140   : > { %1275 = vmatmul.mubr.f32.gmra.mrb[56].mxu0 %v444_v35  ;;  %2451 = vmatprep.mubr.f32.mxu1 %v286_v36  ;;  %v358_v35 = vld [vmem:[%s3022_s17 + $0x550] sm:$0xff]  ;;  %v204_v36 = vld [vmem:[%s3022_s17 + $0x80] sm:$0xff] }
 0x141   : > { %1279 = vmatprep.mubr.f32.mxu0 %v454_v43 }
 0x142   : > { %v4020_v58 = vpop.f32.mrb[16].mxu1 }
 0x143   : > { %2452 = vmatmul.mubr.f32.gmra.mrb[122].mxu1 %v295_v48  ;;  %v728_v44 = vpop.f32.mrb[17].mxu1  ;;  %v367_v48 = vld [vmem:[%s3022_s17 + $0x598] sm:$0xff] }
 0x144   : > { %1280 = vmatmul.mubr.f32.gmra.mrb[58].mxu0 %v453_v53  ;;  %2454 = vmatprep.mubr.f32.mxu1 %v304_v54  ;;  %v203_v53 = vld [vmem:[%s3022_s17 + $0x78] sm:$0xff]  ;;  %v376_v54 = vld [vmem:[%s3022_s17 + $0x5e0] sm:$0xff] }
 0x145   : > { %1284 = vmatprep.mubr.f32.mxu0 %v463_v56  ;;  %v213_v56 = vld [vmem:[%s3022_s17 + $0xc8] sm:$0xff] }
 0x146   : > { %v4026_v59 = vpop.f32.mrb[18].mxu1 }
 0x147   : > { %2455 = vmatmul.mubr.f32.gmra.mrb[124].mxu1 %v313_v5  ;;  %v733_v57 = vpop.f32.mrb[19].mxu1 }
 0x148   : > { %1285 = vmatmul.mubr.f32.gmra.mrb[60].mxu0 %v462_v29  ;;  %2457 = vmatprep.mubr.f32.mxu1 %v322_v49  ;;  %v385_v29 = vld [vmem:[%s3022_s17 + $0x628] sm:$0xff]  ;;  %v212_v49 = vld [vmem:[%s3022_s17 + $0xc0] sm:$0xff]  ;;  %v222_v57 = vld [vmem:[%s3022_s17 + $0x110] sm:$0xff] }
 0x149   : > { %1289 = vmatprep.mubr.f32.mxu0 %v472_v7  ;;  %v394_v7 = vld [vmem:[%s3022_s17 + $0x670] sm:$0xff] }
 0x14a   : > { %v4032_v25 = vpop.f32.mrb[20].mxu1 }
 0x14b   : > { %2458 = vmatmul.mubr.f32.gmra.mrb[126].mxu1 %v331_v16  ;;  %v738_v30 = vpop.f32.mrb[21].mxu1 }
 0x14c   : > { %1290 = vmatmul.mubr.f32.gmra.mrb[62].mxu0 %v471_v18  ;;  %2460 = vmatprep.mubr.f32.mxu1 %v340_v19  ;;  %v403_v19 = vld [vmem:[%s3022_s17 + $0x6b8] sm:$0xff]  ;;  %v412_v30 = vld [vmem:[%s3022_s17 + $0x700] sm:$0xff] }
 0x14d   : > { %1359 = vmatprep.mubr.f32.mxu0 %v195_v61  ;;  %v221_v61 = vld [vmem:[%s3022_s17 + $0x108] sm:$0xff] }
 0x14e   : > { %v4038_v43 = vpop.f32.mrb[22].mxu1 }
 0x14f   : > { %2461 = vmatmul.mubr.f32.gmra.mrb[128].mxu1 %v349_v32  ;;  %v743_v45 = vpop.f32.mrb[23].mxu1  ;;  %v231_v32 = vld [vmem:[%s3022_s17 + $0x158] sm:$0xff] }
 0x150   : > { %1360 = vmatmul.mubr.f32.vlgmr.msra.gmra.mrb[0].mxu0 %v194_v15  ;;  %2463 = vmatprep.mubr.f32.mxu1 %v358_v35  ;;  %v230_v45 = vld [vmem:[%s3022_s17 + $0x150] sm:$0xff] }
 0x151   : > { %1364 = vmatprep.mubr.f32.mxu0 %v204_v36  ;;  %v421_v36 = vld [vmem:[%s3022_s17 + $0x748] sm:$0xff] }
 0x152   : > { %v4044_v44 = vpop.f32.mrb[24].mxu1 }
 0x153   : > { %2464 = vmatmul.mubr.f32.gmra.mrb[130].mxu1 %v367_v48  ;;  %v748_v5 = vpop.f32.mrb[25].mxu1  ;;  %v430_v48 = vld [vmem:[%s3022_s17 + $0x790] sm:$0xff] }
 0x154   : > { %1365 = vmatmul.mubr.f32.gmra.mrb[2].mxu0 %v203_v53  ;;  %2466 = vmatprep.mubr.f32.mxu1 %v376_v54  ;;  %v240_v53 = vld [vmem:[%s3022_s17 + $0x1a0] sm:$0xff]  ;;  %v439_v5 = vld [vmem:[%s3022_s17 + $0x7d8] sm:$0xff] }
 0x155   : > { %1369 = vmatprep.mubr.f32.mxu0 %v213_v56 }
 0x156   : > { %v4050_v16 = vpop.f32.mrb[26].mxu1 }
 0x157   : > { %2467 = vmatmul.mubr.f32.gmra.mrb[132].mxu1 %v385_v29  ;;  %v753_v18 = vpop.f32.mrb[27].mxu1  ;;  %v239_v29 = vld [vmem:[%s3022_s17 + $0x198] sm:$0xff] }
 0x158   : > { %1370 = vmatmul.mubr.f32.gmra.mrb[4].mxu0 %v212_v49  ;;  %2469 = vmatprep.mubr.f32.mxu1 %v394_v7  ;;  %v448_v49 = vld [vmem:[%s3022_s17 + $0x820] sm:$0xff]  ;;  %v249_v7 = vld [vmem:[%s3022_s17 + $0x1e8] sm:$0xff] }
 0x159   : > { %1374 = vmatprep.mubr.f32.mxu0 %v222_v57 }
 0x15a   : > { %v4056_v15 = vpop.f32.mrb[28].mxu1 }
 0x15b   : > { %2470 = vmatmul.mubr.f32.gmra.mrb[134].mxu1 %v403_v19  ;;  %v758_v35 = vpop.f32.mrb[29].mxu1  ;;  %v457_v19 = vld [vmem:[%s3022_s17 + $0x868] sm:$0xff] }
 0x15c   : > { %1375 = vmatmul.mubr.f32.gmra.mrb[6].mxu0 %v221_v61  ;;  %2472 = vmatprep.mubr.f32.mxu1 %v412_v30  ;;  %v248_v61 = vld [vmem:[%s3022_s17 + $0x1e0] sm:$0xff]  ;;  %v466_v30 = vld [vmem:[%s3022_s17 + $0x8b0] sm:$0xff] }
 0x15d   : > { %1379 = vmatprep.mubr.f32.mxu0 %v231_v32  ;;  %v258_v32 = vld [vmem:[%s3022_s17 + $0x230] sm:$0xff] }
 0x15e   : > { %v4062_v54 = vpop.f32.mrb[30].mxu1 }
 0x15f   : > { %2473 = vmatmul.mubr.f32.gmra.mrb[136].mxu1 %v421_v36  ;;  %v763_v56 = vpop.f32.mrb[31].mxu1 }
 0x160   : > { %1380 = vmatmul.mubr.f32.gmra.mrb[8].mxu0 %v230_v45  ;;  %2475 = vmatprep.mubr.f32.mxu1 %v430_v48  ;;  %v475_v45 = vld [vmem:[%s3022_s17 + $0x8f8] sm:$0xff]  ;;  %v257_v48 = vld [vmem:[%s3022_s17 + $0x228] sm:$0xff]  ;;  %s2319_s17 = sshll.u32 %s4681_s30, 3 }
 0x161   : > { %1384 = vmatprep.mubr.f32.mxu0 %v240_v53  ;;  %s4190_s5 = scalar_lea.vmem %s4550_s2, %s2319_s17 }
 0x162   : > { %v4068_v57 = vpop.f32.mrb[32].mxu1 }
 0x163   : > { %2476 = vmatmul.mubr.f32.gmra.mrb[138].mxu1 %v439_v5  ;;  %v768_v18 = vpop.f32.mrb[33].mxu1 }
 0x164   : > { %1385 = vmatmul.mubr.f32.gmra.mrb[10].mxu0 %v239_v29  ;;  %2478 = vmatprep.mubr.f32.mxu1 %v448_v49 }
 0x165   : > { %1389 = vmatprep.mubr.f32.mxu0 %v249_v7 }
 0x166   : > { %v4074_v35 = vpop.f32.mrb[34].mxu1 }
 0x167   : > { %2479 = vmatmul.mubr.f32.gmra.mrb[140].mxu1 %v457_v19  ;;  %v773_v36 = vpop.f32.mrb[35].mxu1 }
 0x168   : > { %1390 = vmatmul.mubr.f32.gmra.mrb[12].mxu0 %v248_v61  ;;  %2481 = vmatprep.mubr.f32.mxu1 %v466_v30 }
 0x169   : > { %1394 = vmatprep.mubr.f32.mxu0 %v258_v32 }
 0x16a   : > { %v4078_v53 = vpop.f32.mrb[36].mxu1 }
 0x16b   : > { %2482 = vmatmul.mubr.f32.gmra.mrb[142].mxu1 %v475_v45  ;;  %v778_v56 = vpop.f32.mrb[37].mxu1 }
 0x16c   : > { %1395 = vmatmul.mubr.f32.gmra.mrb[14].mxu0 %v257_v48 }
 0x16e   : > { %v4080_v5 = vpop.f32.mrb[38].mxu1 }
 0x16f   : > { %v783_v29 = vpop.f32.mrb[39].mxu1 }
 0x172   : > { %v4082_v49 = vpop.f32.mrb[40].mxu1 }
 0x173   : > { %v788_v7 = vpop.f32.mrb[41].mxu1 }
 0x176   : > { %v4084_v18 = vpop.f32.mrb[42].mxu1 }
 0x177   : > { %v793_v19 = vpop.f32.mrb[43].mxu1 }
 0x17a   : > { %v4086_v36 = vpop.f32.mrb[44].mxu1 }
 0x17b   : > { %v798_v61 = vpop.f32.mrb[45].mxu1 }
 0x17e   : > { %v4088_v30 = vpop.f32.mrb[46].mxu1 }
 0x17f   : > { %v803_v32 = vpop.f32.mrb[47].mxu1 }
 0x182   : > { %v4090_v37 = vpop.f32.mrb[48].mxu1 }
 0x183   : > { %v808_v45 = vpop.f32.mrb[49].mxu1 }
 0x186   : > { %v4092_v56 = vpop.f32.mrb[50].mxu1 }
 0x187   : > { %v813_v48 = vpop.f32.mrb[51].mxu1 }
 0x18a   : > { %v4094_v26 = vpop.f32.mrb[52].mxu1 }
 0x18b   : > { %v818_v29 = vpop.f32.mrb[53].mxu1 }
 0x18e   : > { %v4096_v33 = vpop.f32.mrb[54].mxu1 }
 0x18f   : > { %v823_v7 = vpop.f32.mrb[55].mxu1 }
 0x192   : > { %v4098_v2 = vpop.f32.mrb[56].mxu1 }
 0x193   : > { %v828_v19 = vpop.f32.mrb[57].mxu1 }
 0x196   : > { %v4100_v8 = vpop.f32.mrb[58].mxu1 }
 0x197   : > { %v833_v61 = vpop.f32.mrb[59].mxu1 }
 0x19a   : > { %v4102_v0 = vpop.f32.mrb[60].mxu1 }
 0x19b   : > { %v838_v32 = vpop.f32.mrb[61].mxu1 }
 0x19e   : > { %v4104_v46 = vpop.f32.mrb[62].mxu1 }
 0x19f   : > { %v843_v45 = vpop.f32.mrb[63].mxu1 }
 0x1a2   : > { %v1401_v3 = vpop.f32.mrb[64].mxu1 }
 0x1a3   : > { %v1403_v48 = vpop.f32.mrb[65].mxu1 }
 0x1a6   : > { %v1406_v4 = vpop.f32.mrb[66].mxu1 }
 0x1a7   : > { %v1408_v11 = vpop.f32.mrb[67].mxu1 }
 0x1aa   : > { %v1411_v29 = vpop.f32.mrb[68].mxu1 }
 0x1ab   : > { %v1413_v63 = vpop.f32.mrb[69].mxu1 }
 0x1ae   : > { %v1416_v52 = vpop.f32.mrb[70].mxu1 }
 0x1af   : > { %v1418_v7 = vpop.f32.mrb[71].mxu1 }
 0x1b2   : > { %v1421_v41 = vpop.f32.mrb[72].mxu1 }
 0x1b3   : > { %v1423_v10 = vpop.f32.mrb[73].mxu1 }
 0x1b6   : > { %v1426_v19 = vpop.f32.mrb[74].mxu1 }
 0x1b7   : > { %v1428_v20 = vpop.f32.mrb[75].mxu1 }
 0x1ba   : > { %v1431_v55 = vpop.f32.mrb[76].mxu1 }
 0x1bb   : > { %v1433_v61 = vpop.f32.mrb[77].mxu1 }
 0x1be   : > { %v1436_v47 = vpop.f32.mrb[78].mxu1 }
 0x1bf   : > { %v1438_v34 = vpop.f32.mrb[79].mxu1 }
 0x1c2   : > { %v1441_v32 = vpop.f32.mrb[80].mxu1 }
 0x1c3   : > { %v1176_v22 = vpop.f32.mrb[16].mxu0  ;;  %v1443_v42 = vpop.f32.mrb[81].mxu1 }
 0x1c4   : > { %v2748_v45 = vadd.f32 %v1176_v22, %v4020_v58  ;;  %v1178_v48 = vpop.f32.mrb[17].mxu0 }
 0x1c6   : > { %v4107_v14 = vadd.f32 %v2748_v45, %v1401_v3  ;;  %v1446_v11 = vpop.f32.mrb[82].mxu1  ;;  %v2005_v21 = vpop.xlane.xlu0 %2004 }
 0x1c7   : > { %v1181_v63 = vpop.f32.mrb[18].mxu0  ;;  %v1448_v27 = vpop.f32.mrb[83].mxu1  ;;  %v2006_v20 = vrot.slane %v2005_v21, 4 }
 0x1c8   : > { %v2750_v7 = vadd.f32 %v1181_v63, %v4026_v59  ;;  %v1183_v10 = vpop.f32.mrb[19].mxu0 }
 0x1c9   : > { %v2007_v24 = vadd.f32 %v2006_v20, %v2005_v21 }
 0x1ca   : > { %v4110_v9 = vadd.f32 %v2750_v7, %v1406_v4  ;;  %v1451_v61 = vpop.f32.mrb[84].mxu1 }
 0x1cb   : > { %v1186_v34 = vpop.f32.mrb[20].mxu0  ;;  %v1453_v1 = vpop.f32.mrb[85].mxu1  ;;  %v2008_v58 = vrot.slane %v2007_v24, 2 }
 0x1cc   : > { %v2752_v42 = vadd.f32 %v1186_v34, %v4032_v25  ;;  %v1188_v22 = vpop.f32.mrb[21].mxu0 }
 0x1cd   : > { %v2009_v51 = vadd.f32 %v2008_v58, %v2007_v24 }
 0x1ce   : > { %v4113_v3 = vadd.f32 %v2752_v42, %v1411_v29  ;;  %v1456_v45 = vpop.f32.mrb[86].mxu1 }
 0x1cf   : > { %v1191_v48 = vpop.f32.mrb[22].mxu0  ;;  %v1458_v27 = vpop.f32.mrb[87].mxu1  ;;  %v2010_v10 = vrot.slane %v2009_v51, 1 }
 0x1d0   : > { %v2754_v59 = vadd.f32 %v1191_v48, %v4038_v43  ;;  %v1193_v63 = vpop.f32.mrb[23].mxu0 }
 0x1d1   : > { %v2011_v21 = vadd.f32 %v2010_v10, %v2009_v51 }
 0x1d2   : > { %v4116_v4 = vadd.f32 %v2754_v59, %v1416_v52  ;;  %v1461_v7 = vpop.f32.mrb[88].mxu1 }
 0x1d3   : > { %v1196_v40 = vpop.f32.mrb[24].mxu0  ;;  %v1463_v1 = vpop.f32.mrb[89].mxu1  ;;  %2877 = vpush %v2011_v21 }
 0x1d4   : > { %v2756_v25 = vadd.f32 %v1196_v40, %v4044_v44  ;;  %v1198_v20 = vpop.f32.mrb[25].mxu0 }
 0x1d6   : > { %v4119_v29 = vadd.f32 %v2756_v25, %v1421_v41  ;;  %v1466_v34 = vpop.f32.mrb[90].mxu1 }
 0x1d7   : > { %v1201_v42 = vpop.f32.mrb[26].mxu0  ;;  %v1468_v22 = vpop.f32.mrb[91].mxu1 }
 0x1d8   : > { %v2758_v24 = vadd.f32 %v1201_v42, %v4050_v16  ;;  %v1203_v43 = vpop.f32.mrb[27].mxu0 }
 0x1da   : > { %v4122_v58 = vadd.f32 %v2758_v24, %v1426_v19  ;;  %v1471_v52 = vpop.f32.mrb[92].mxu1 }
 0x1db   : > { %v1206_v48 = vpop.f32.mrb[28].mxu0  ;;  %v1473_v27 = vpop.f32.mrb[93].mxu1 }
 0x1dc   : > { %v2760_v59 = vadd.f32 %v1206_v48, %v4056_v15  ;;  %v1208_v51 = vpop.f32.mrb[29].mxu0 }
 0x1de   : > { %v4125_v63 = vadd.f32 %v2760_v59, %v1431_v55  ;;  %v1476_v40 = vpop.f32.mrb[94].mxu1 }
 0x1df   : > { %v1211_v44 = vpop.f32.mrb[30].mxu0  ;;  %v1478_v41 = vpop.f32.mrb[95].mxu1 }
 0x1e0   : > { %v2762_v10 = vadd.f32 %v1211_v44, %v4062_v54  ;;  %v1213_v1 = vpop.f32.mrb[31].mxu0 }
 0x1e2   : > { %v4128_v21 = vadd.f32 %v2762_v10, %v1436_v47  ;;  %v1481_v16 = vpop.f32.mrb[96].mxu1 }
 0x1e3   : > { %v1216_v25 = vpop.f32.mrb[32].mxu0  ;;  %v1483_v19 = vpop.f32.mrb[97].mxu1 }
 0x1e4   : > { %v2764_v20 = vadd.f32 %v1216_v25, %v4068_v57  ;;  %v1218_v42 = vpop.f32.mrb[33].mxu0 }
 0x1e6   : > { %v4131_v22 = vadd.f32 %v2764_v20, %v1441_v32  ;;  %v1486_v15 = vpop.f32.mrb[98].mxu1 }
 0x1e7   : > { %v1221_v24 = vpop.f32.mrb[34].mxu0  ;;  %v1488_v55 = vpop.f32.mrb[99].mxu1 }
 0x1e8   : > { %v2766_v43 = vadd.f32 %v1221_v24, %v4074_v35  ;;  %v1223_v48 = vpop.f32.mrb[35].mxu0 }
 0x1ea   : > { %v4134_v27 = vadd.f32 %v2766_v43, %v1446_v11  ;;  %v1491_v54 = vpop.f32.mrb[100].mxu1 }
 0x1eb   : > { %v1226_v59 = vpop.f32.mrb[36].mxu0  ;;  %v1493_v47 = vpop.f32.mrb[101].mxu1 }
 0x1ec   : > { %v2768_v51 = vadd.f32 %v1226_v59, %v4078_v53  ;;  %v1228_v44 = vpop.f32.mrb[37].mxu0 }
 0x1ee   : > { %v4137_v41 = vadd.f32 %v2768_v51, %v1451_v61  ;;  %v1496_v57 = vpop.f32.mrb[102].mxu1 }
 0x1ef   : > { %v1231_v10 = vpop.f32.mrb[38].mxu0  ;;  %v1498_v32 = vpop.f32.mrb[103].mxu1 }
 0x1f0   : > { %v2770_v1 = vadd.f32 %v1231_v10, %v4080_v5  ;;  %v1233_v25 = vpop.f32.mrb[39].mxu0 }
 0x1f2   : > { %v4140_v19 = vadd.f32 %v2770_v1, %v1456_v45  ;;  %v1501_v35 = vpop.f32.mrb[104].mxu1 }
 0x1f3   : > { %v1236_v20 = vpop.f32.mrb[40].mxu0  ;;  %v1503_v11 = vpop.f32.mrb[105].mxu1 }
 0x1f4   : > { %v2772_v42 = vadd.f32 %v1236_v20, %v4082_v49  ;;  %v1238_v24 = vpop.f32.mrb[41].mxu0 }
 0x1f6   : > { %v4143_v55 = vadd.f32 %v2772_v42, %v1461_v7  ;;  %v4145_v53 = vpop.f32.mrb[106].mxu1 }
 0x1f7   : > { %v1241_v61 = vpop.f32.mrb[42].mxu0  ;;  %v1508_v43 = vpop.f32.mrb[107].mxu1 }
 0x1f8   : > { %v2774_v48 = vadd.f32 %v1241_v61, %v4084_v18  ;;  %v1243_v59 = vpop.f32.mrb[43].mxu0 }
 0x1fa   : > { %v4148_v47 = vpop.f32.mrb[108].mxu1  ;;  %v4150_v5 = vadd.f32 %v2774_v48, %v1466_v34 }
 0x1fb   : > { %v1246_v45 = vpop.f32.mrb[44].mxu0  ;;  %v1513_v51 = vpop.f32.mrb[109].mxu1 }
 0x1fc   : > { %v2776_v44 = vadd.f32 %v1246_v45, %v4086_v36  ;;  %v1248_v10 = vpop.f32.mrb[45].mxu0 }
 0x1fe   : > { %v4153_v49 = vpop.f32.mrb[110].mxu1  ;;  %v4155_v7 = vadd.f32 %v2776_v44, %v1471_v52 }
 0x1ff   : > { %v1251_v32 = vpop.f32.mrb[46].mxu0  ;;  %v1518_v1 = vpop.f32.mrb[111].mxu1 }
 0x200   : > { %v2778_v25 = vadd.f32 %v1251_v32, %v4088_v30  ;;  %v1253_v20 = vpop.f32.mrb[47].mxu0 }
 0x202   : > { %v4158_v18 = vpop.f32.mrb[112].mxu1  ;;  %v4160_v11 = vadd.f32 %v2778_v25, %v1476_v40 }
 0x203   : > { %v1256_v34 = vpop.f32.mrb[48].mxu0  ;;  %v4162_v42 = vpop.f32.mrb[113].mxu1 }
 0x204   : > { %v2780_v24 = vadd.f32 %v1256_v34, %v4090_v37  ;;  %v1258_v36 = vpop.f32.mrb[49].mxu0  ;;  %s2878_s30 = spop %2877 }
 0x205   : > { %s2013_s7 = smax.f32 %s2902_s6, %s2878_s30 }
 0x206   : > { %v4165_v61 = vpop.f32.mrb[114].mxu1  ;;  %v4167_v52 = vadd.f32 %v2780_v24, %v1481_v16 }
 0x207   : > { %v1261_v43 = vpop.f32.mrb[50].mxu0  ;;  %v4169_v48 = vpop.f32.mrb[115].mxu1 }
 0x208   : > { %v2782_v30 = vadd.f32 %v1261_v43, %v4092_v56  ;;  %v1263_v59 = vpop.f32.mrb[51].mxu0 }
 0x20a   : > { %v4172_v45 = vpop.f32.mrb[116].mxu1  ;;  %v4174_v40 = vadd.f32 %v2782_v30, %v1486_v15 }
 0x20b   : > { %v1266_v51 = vpop.f32.mrb[52].mxu0  ;;  %v4176_v44 = vpop.f32.mrb[117].mxu1 }
 0x20c   : > { %v2784_v37 = vadd.f32 %v1266_v51, %v4094_v26  ;;  %v1268_v10 = vpop.f32.mrb[53].mxu0 }
 0x20e   : > { %v4179_v32 = vpop.f32.mrb[118].mxu1  ;;  %v4181_v16 = vadd.f32 %v2784_v37, %v1491_v54 }
 0x20f   : > { %v1271_v1 = vpop.f32.mrb[54].mxu0  ;;  %v4183_v25 = vpop.f32.mrb[119].mxu1 }
 0x210   : > { %v2786_v56 = vadd.f32 %v1271_v1, %v4096_v33  ;;  %v1273_v20 = vpop.f32.mrb[55].mxu0 }
 0x212   : > { %v2450_v26 = vpop.f32.mrb[120].mxu1  ;;  %v4192_v15 = vadd.f32 %v2786_v56, %v1496_v57 }
 0x213   : > { %v1276_v34 = vpop.f32.mrb[56].mxu0  ;;  %v4195_v54 = vadd.f32 %v4110_v9, %v2450_v26  ;;  %v1626_v24 = vpop.f32.mrb[121].mxu1 }
 0x214   : > { %v2788_v33 = vadd.f32 %v1276_v34, %v4098_v2  ;;  %v1278_v36 = vpop.f32.mrb[57].mxu0  ;;  %v4199_v43 = vadd.f32 %v4107_v14, %v1626_v24 }
 0x215   : > { %1754 = vst [vmem:[%s4190_s5 + $0x48] sm:$0xff] %v4195_v54 }
 0x216   : > { %1753 = vst [vmem:[%s4190_s5 + $0x40] sm:$0xff] %v4199_v43  ;;  %v2453_v30 = vpop.f32.mrb[122].mxu1  ;;  %v4205_v57 = vadd.f32 %v2788_v33, %v1501_v35 }
 0x217   : > { %v1281_v59 = vpop.f32.mrb[58].mxu0  ;;  %v4208_v9 = vadd.f32 %v4116_v4, %v2453_v30  ;;  %v1636_v51 = vpop.f32.mrb[123].mxu1 }
 0x218   : > { %v2790_v2 = vadd.f32 %v1281_v59, %v4100_v8  ;;  %v1283_v37 = vpop.f32.mrb[59].mxu0  ;;  %v4212_v14 = vadd.f32 %v4113_v3, %v1636_v51 }
 0x219   : > { %1756 = vst [vmem:[%s4190_s5 + $0x58] sm:$0xff] %v4208_v9 }
 0x21a   : > { %1755 = vst [vmem:[%s4190_s5 + $0x50] sm:$0xff] %v4212_v14  ;;  %v2456_v10 = vpop.f32.mrb[124].mxu1  ;;  %v4219_v35 = vadd.f32 %v2790_v2, %v4145_v53 }
 0x21b   : > { %v1286_v1 = vpop.f32.mrb[60].mxu0  ;;  %v4222_v4 = vadd.f32 %v4122_v58, %v2456_v10  ;;  %v1646_v56 = vpop.f32.mrb[125].mxu1 }
 0x21c   : > { %v2792_v8 = vadd.f32 %v1286_v1, %v4102_v0  ;;  %v1288_v20 = vpop.f32.mrb[61].mxu0  ;;  %v4226_v3 = vadd.f32 %v4119_v29, %v1646_v56 }
 0x21d   : > { %1758 = vst [vmem:[%s4190_s5 + $0x68] sm:$0xff] %v4222_v4 }
 0x21e   : > { %1757 = vst [vmem:[%s4190_s5 + $0x60] sm:$0xff] %v4226_v3  ;;  %v2459_v26 = vpop.f32.mrb[126].mxu1  ;;  %v4233_v53 = vadd.f32 %v2792_v8, %v4148_v47 }
 0x21f   : > { %v1291_v34 = vpop.f32.mrb[62].mxu0  ;;  %v4236_v58 = vadd.f32 %v4128_v21, %v2459_v26  ;;  %v1656_v24 = vpop.f32.mrb[127].mxu1 }
 0x220   : > { %v2794_v0 = vadd.f32 %v1291_v34, %v4104_v46  ;;  %v1293_v33 = vpop.f32.mrb[63].mxu0  ;;  %v4240_v29 = vadd.f32 %v4125_v63, %v1656_v24 }
 0x221   : > { %1760 = vst [vmem:[%s4190_s5 + $0x78] sm:$0xff] %v4236_v58 }
 0x222   : > { %1759 = vst [vmem:[%s4190_s5 + $0x70] sm:$0xff] %v4240_v29  ;;  %v2462_v47 = vpop.f32.mrb[128].mxu1  ;;  %v4247_v36 = vadd.f32 %v2794_v0, %v4153_v49 }
 0x223   : > { %v1361_v30 = vpop.f32.mrb[0].mxu0  ;;  %v4250_v21 = vadd.f32 %v4134_v27, %v2462_v47  ;;  %v1666_v59 = vpop.f32.mrb[129].mxu1 }
 0x224   : > { %v2740_v46 = vadd.f32 %v1361_v30, %v3911_v13  ;;  %v1363_v63 = vpop.f32.mrb[1].mxu0  ;;  %v4254_v51 = vadd.f32 %v4131_v22, %v1666_v59 }
 0x225   : > { %1762 = vst [vmem:[%s4190_s5 + $0x88] sm:$0xff] %v4250_v21 }
 0x226   : > { %v4259_v2 = vadd.f32 %v2740_v46, %v4162_v42  ;;  %1761 = vst [vmem:[%s4190_s5 + $0x80] sm:$0xff] %v4254_v51  ;;  %v2465_v49 = vpop.f32.mrb[130].mxu1 }
 0x227   : > { %v1366_v27 = vpop.f32.mrb[2].mxu0  ;;  %v4264_v37 = vadd.f32 %v4140_v19, %v2465_v49  ;;  %v1676_v10 = vpop.f32.mrb[131].mxu1 }
 0x228   : > { %1745 = vst [vmem:[%s4190_s5] sm:$0xff] %v4259_v2  ;;  %v2741_v13 = vadd.f32 %v1366_v27, %v3932_v39  ;;  %v1368_v22 = vpop.f32.mrb[3].mxu0  ;;  %v4270_v1 = vadd.f32 %v4137_v41, %v1676_v10 }
 0x229   : > { %1764 = vst [vmem:[%s4190_s5 + $0x98] sm:$0xff] %v4264_v37 }
 0x22a   : > { %v4275_v42 = vadd.f32 %v2741_v13, %v4158_v18  ;;  %1763 = vst [vmem:[%s4190_s5 + $0x90] sm:$0xff] %v4270_v1  ;;  %v2468_v19 = vpop.f32.mrb[132].mxu1 }
 0x22b   : > { %v1371_v56 = vpop.f32.mrb[4].mxu0  ;;  %v4280_v8 = vadd.f32 %v4150_v5, %v2468_v19  ;;  %v1686_v20 = vpop.f32.mrb[133].mxu1 }
 0x22c   : > { %1746 = vst [vmem:[%s4190_s5 + $0x8] sm:$0xff] %v4275_v42  ;;  %v2742_v39 = vadd.f32 %v1371_v56, %v3953_v6  ;;  %v1373_v41 = vpop.f32.mrb[5].mxu0  ;;  %v4286_v26 = vadd.f32 %v4143_v55, %v1686_v20 }
 0x22d   : > { %1766 = vst [vmem:[%s4190_s5 + $0xa8] sm:$0xff] %v4280_v8 }
 0x22e   : > { %v4291_v18 = vadd.f32 %v2742_v39, %v4169_v48  ;;  %1765 = vst [vmem:[%s4190_s5 + $0xa0] sm:$0xff] %v4286_v26  ;;  %v2471_v5 = vpop.f32.mrb[134].mxu1 }
 0x22f   : > { %v1376_v34 = vpop.f32.mrb[6].mxu0  ;;  %v4296_v24 = vadd.f32 %v4160_v11, %v2471_v5  ;;  %v1696_v0 = vpop.f32.mrb[135].mxu1 }
 0x230   : > { %1747 = vst [vmem:[%s4190_s5 + $0x10] sm:$0xff] %v4291_v18  ;;  %v2743_v6 = vadd.f32 %v1376_v34, %v3971_v31  ;;  %v1378_v55 = vpop.f32.mrb[7].mxu0  ;;  %v4302_v33 = vadd.f32 %v4155_v7, %v1696_v0  ;;  %v2016_v10 = vmul.f32 %v3696_v23, %v4291_v18 }
 0x231   : > { %1768 = vst [vmem:[%s4190_s5 + $0xb8] sm:$0xff] %v4296_v24 }
 0x232   : > { %v4307_v48 = vadd.f32 %v2743_v6, %v4165_v61  ;;  %1767 = vst [vmem:[%s4190_s5 + $0xb0] sm:$0xff] %v4302_v33  ;;  %v2474_v11 = vpop.f32.mrb[136].mxu1  ;;  %v2015_v61 = vmul.f32 %v3681_v62, %v4275_v42 }
 0x233   : > { %v1381_v47 = vpop.f32.mrb[8].mxu0  ;;  %v4312_v30 = vadd.f32 %v4174_v40, %v2474_v11  ;;  %v1706_v59 = vpop.f32.mrb[137].mxu1 }
 0x234   : > { %1748 = vst [vmem:[%s4190_s5 + $0x18] sm:$0xff] %v4307_v48  ;;  %v2744_v31 = vadd.f32 %v1381_v47, %v3987_v50  ;;  %v1383_v7 = vpop.f32.mrb[9].mxu0  ;;  %v4318_v46 = vadd.f32 %v4167_v52, %v1706_v59  ;;  %v2014_v52 = vmul.f32 %v3678_v60, %v4259_v2  ;;  %v2017_v19 = vmul.f32 %v3709_v17, %v4307_v48 }
 0x235   : > { %1770 = vst [vmem:[%s4190_s5 + $0xc8] sm:$0xff] %v4312_v30  ;;  %v4637_v7 = vld [vmem:[#allocation3_spill] sm:$0xff] }
 0x236   : > { %v4325_v63 = vadd.f32 %v2744_v31, %v4176_v44  ;;  %1769 = vst [vmem:[%s4190_s5 + $0xc0] sm:$0xff] %v4318_v46  ;;  %v2477_v40 = vpop.f32.mrb[138].mxu1 }
 0x237   : > { %v1386_v49 = vpop.f32.mrb[10].mxu0  ;;  %v4330_v50 = vadd.f32 %v4192_v15, %v2477_v40  ;;  %v1716_v27 = vpop.f32.mrb[139].mxu1  ;;  %v2046_v15 = vadd.f32 %v2015_v61, %v2014_v52  ;;  %v4638_v40 = vld [vmem:[#allocation29_spill] sm:$0xff] }
 0x238   : > { %1749 = vst [vmem:[%s4190_s5 + $0x20] sm:$0xff] %v4325_v63  ;;  %v2745_v44 = vadd.f32 %v1386_v49, %v4000_v12  ;;  %v1388_v13 = vpop.f32.mrb[11].mxu0  ;;  %v4340_v22 = vadd.f32 %v4181_v16, %v1716_v27  ;;  %v2018_v5 = vmul.f32 %v3722_v28, %v4325_v63 }
 0x239   : > { %1772 = vst [vmem:[%s4190_s5 + $0xd8] sm:$0xff] %v4330_v50  ;;  %v2047_v41 = vadd.f32 %v2046_v15, %v2016_v10  ;;  %v4640_v15 = vld [vmem:[#allocation5_spill] sm:$0xff] }
 0x23a   : > { %4635 = vst [vmem:[#allocation30_spill] sm:$0xff] %v4340_v22  ;;  %v4347_v56 = vadd.f32 %v2745_v44, %v4172_v45  ;;  %1771 = vst [vmem:[%s4190_s5 + $0xd0] sm:$0xff] %v4340_v22  ;;  %v2480_v20 = vpop.f32.mrb[140].mxu1  ;;  %v4639_v44 = vld [vmem:[#allocation4_spill] sm:$0xff] }
 0x23b   : > { %v1391_v39 = vpop.f32.mrb[12].mxu0  ;;  %v4352_v12 = vadd.f32 %v4219_v35, %v2480_v20  ;;  %v1726_v16 = vpop.f32.mrb[141].mxu1  ;;  %v2048_v6 = vadd.f32 %v2047_v41, %v2017_v19  ;;  %v4636_v35 = vld [vmem:[#allocation2_spill] sm:$0xff]  ;;  %v2022_v19 = vmul.f32 %v4640_v15, %v4199_v43  ;;  %v4642_v41 = vld [vmem:[#allocation7_spill] sm:$0xff] }
 0x23c   : > { %1750 = vst [vmem:[%s4190_s5 + $0x28] sm:$0xff] %v4347_v56  ;;  %v2746_v34 = vadd.f32 %v1391_v39, %v4008_v38  ;;  %v1393_v45 = vpop.f32.mrb[13].mxu0  ;;  %v4360_v0 = vadd.f32 %v4205_v57, %v1726_v16  ;;  %v2019_v55 = vmul.f32 %v4636_v35, %v4347_v56 }
 0x23d   : > { %1774 = vst [vmem:[%s4190_s5 + $0xe8] sm:$0xff] %v4352_v12  ;;  %v2049_v31 = vadd.f32 %v2048_v6, %v2018_v5 }
 0x23e   : > { %v4367_v11 = vadd.f32 %v2746_v34, %v4183_v25  ;;  %1773 = vst [vmem:[%s4190_s5 + $0xe0] sm:$0xff] %v4360_v0  ;;  %v2483_v47 = vpop.f32.mrb[142].mxu1  ;;  %v4643_v34 = vld [vmem:[#allocation8_spill] sm:$0xff] }
 0x23f   : > { %v1396_v38 = vpop.f32.mrb[14].mxu0  ;;  %v4372_v59 = vadd.f32 %v4247_v36, %v2483_v47  ;;  %v1736_v57 = vpop.f32.mrb[143].mxu1  ;;  %v2050_v52 = vadd.f32 %v2049_v31, %v2019_v55  ;;  %v2025_v45 = vmul.f32 %v4643_v34, %v4208_v9  ;;  %v4644_v55 = vld [vmem:[#allocation9_spill] sm:$0xff] }
 0x240   : > { %1751 = vst [vmem:[%s4190_s5 + $0x30] sm:$0xff] %v4367_v11  ;;  %v2020_v61 = vmul.f32 %v4637_v7, %v4367_v11  ;;  %v2747_v49 = vadd.f32 %v1396_v38, %v4638_v40  ;;  %v1398_v27 = vpop.f32.mrb[15].mxu0  ;;  %v4380_v25 = vadd.f32 %v4233_v53, %v1736_v57  ;;  %v4641_v53 = vld [vmem:[#allocation6_spill] sm:$0xff]  ;;  %v2026_v47 = vmul.f32 %v4644_v55, %v4226_v3  ;;  %v4646_v40 = vld [vmem:[#allocation11_spill] sm:$0xff] }
 0x241   : > { %1776 = vst [vmem:[%s4190_s5 + $0xf8] sm:$0xff] %v4372_v59  ;;  %v2023_v39 = vmul.f32 %v4641_v53, %v4195_v54  ;;  %v4645_v57 = vld [vmem:[#allocation10_spill] sm:$0xff] }
 0x242   : > { %v4385_v10 = vadd.f32 %v2747_v49, %v4179_v32  ;;  %1775 = vst [vmem:[%s4190_s5 + $0xf0] sm:$0xff] %v4380_v25  ;;  %v2051_v36 = vadd.f32 %v2050_v52, %v2020_v61  ;;  %v2024_v32 = vmul.f32 %v4642_v41, %v4212_v14  ;;  %v2027_v31 = vmul.f32 %v4645_v57, %v4222_v4  ;;  %v4647_v52 = vld [vmem:[#allocation12_spill] sm:$0xff] }
 0x243   : > { %v2028_v49 = vmul.f32 %v4646_v40, %v4240_v29 }
 0x244   : > { %1752 = vst [vmem:[%s4190_s5 + $0x38] sm:$0xff] %v4385_v10  ;;  %v2021_v13 = vmul.f32 %v4639_v44, %v4385_v10 }
 0x246   : > { %v2052_v20 = vadd.f32 %v2051_v36, %v2021_v13  ;;  %v2029_v36 = vmul.f32 %v4647_v52, %v4236_v58 }
 0x248   : > { %v2053_v16 = vadd.f32 %v2052_v20, %v2022_v19  ;;  %v4648_v19 = vld [vmem:[#allocation13_spill] sm:$0xff] }
 0x249   : > { %v2030_v20 = vmul.f32 %v4648_v19, %v4254_v51 }
 0x24a   : > { %v2054_v5 = vadd.f32 %v2053_v16, %v2023_v39  ;;  %v4649_v16 = vld [vmem:[#allocation14_spill] sm:$0xff] }
 0x24c   : > { %v2055_v6 = vadd.f32 %v2054_v5, %v2024_v32  ;;  %v2031_v32 = vmul.f32 %v4649_v16, %v4250_v21 }
 0x24e   : > { %v2056_v38 = vadd.f32 %v2055_v6, %v2025_v45  ;;  %v4650_v45 = vld [vmem:[#allocation15_spill] sm:$0xff] }
 0x24f   : > { %v2032_v6 = vmul.f32 %v4650_v45, %v4270_v1 }
 0x250   : > { %v2057_v61 = vadd.f32 %v2056_v38, %v2026_v47  ;;  %v4651_v38 = vld [vmem:[#allocation16_spill] sm:$0xff] }
 0x251   : > { %v2033_v40 = vmul.f32 %v4651_v38, %v4264_v37 }
 0x252   : > { %v2058_v27 = vadd.f32 %v2057_v61, %v2027_v31  ;;  %v4652_v61 = vld [vmem:[#allocation17_spill] sm:$0xff] }
 0x253   : > { %v2034_v52 = vmul.f32 %v4652_v61, %v4286_v26 }
 0x254   : > { %v2059_v13 = vadd.f32 %v2058_v27, %v2028_v49  ;;  %v4653_v27 = vld [vmem:[#allocation18_spill] sm:$0xff] }
 0x255   : > { %v2035_v19 = vmul.f32 %v4653_v27, %v4280_v8 }
 0x256   : > { %v2060_v39 = vadd.f32 %v2059_v13, %v2029_v36  ;;  %v4654_v13 = vld [vmem:[#allocation19_spill] sm:$0xff] }
 0x257   : > { %v2036_v16 = vmul.f32 %v4654_v13, %v4302_v33 }
 0x258   : > { %v2061_v5 = vadd.f32 %v2060_v39, %v2030_v20  ;;  %v4655_v39 = vld [vmem:[#allocation20_spill] sm:$0xff] }
 0x259   : > { %v2037_v45 = vmul.f32 %v4655_v39, %v4296_v24 }
 0x25a   : > { %v2062_v47 = vadd.f32 %v2061_v5, %v2031_v32  ;;  %v4656_v5 = vld [vmem:[#allocation21_spill] sm:$0xff] }
 0x25b   : > { %v2038_v38 = vmul.f32 %v4656_v5, %v4318_v46 }
 0x25c   : > { %v2063_v31 = vadd.f32 %v2062_v47, %v2032_v6  ;;  %v4657_v47 = vld [vmem:[#allocation22_spill] sm:$0xff] }
 0x25d   : > { %v2039_v61 = vmul.f32 %v4657_v47, %v4312_v30 }
 0x25e   : > { %v2064_v49 = vadd.f32 %v2063_v31, %v2033_v40  ;;  %v4658_v31 = vld [vmem:[#allocation23_spill] sm:$0xff] }
 0x25f   : > { %v2040_v27 = vmul.f32 %v4658_v31, %v4340_v22 }
 0x260   : > { %v2065_v36 = vadd.f32 %v2064_v49, %v2034_v52  ;;  %v4659_v49 = vld [vmem:[#allocation24_spill] sm:$0xff] }
 0x261   : > { %v2041_v13 = vmul.f32 %v4659_v49, %v4330_v50 }
 0x262   : > { %v2066_v20 = vadd.f32 %v2065_v36, %v2035_v19  ;;  %v4660_v36 = vld [vmem:[#allocation25_spill] sm:$0xff] }
 0x263   : > { %v2042_v39 = vmul.f32 %v4660_v36, %v4360_v0 }
 0x264   : > { %v2067_v32 = vadd.f32 %v2066_v20, %v2036_v16  ;;  %v4661_v20 = vld [vmem:[#allocation26_spill] sm:$0xff] }
 0x265   : > { %v2043_v5 = vmul.f32 %v4661_v20, %v4352_v12 }
 0x266   : > { %v2068_v6 = vadd.f32 %v2067_v32, %v2037_v45  ;;  %v4662_v32 = vld [vmem:[#allocation27_spill] sm:$0xff] }
 0x267   : > { %v2044_v47 = vmul.f32 %v4662_v32, %v4380_v25 }
 0x268   : > { %v2069_v40 = vadd.f32 %v2068_v6, %v2038_v38  ;;  %v4663_v6 = vld [vmem:[#allocation28_spill] sm:$0xff] }
 0x269   : > { %v2045_v31 = vmul.f32 %v4663_v6, %v4372_v59 }
 0x26a   : > { %v2070_v52 = vadd.f32 %v2069_v40, %v2039_v61 }
 0x26c   : > { %v2071_v19 = vadd.f32 %v2070_v52, %v2040_v27 }
 0x26e   : > { %v2072_v16 = vadd.f32 %v2071_v19, %v2041_v13  ;;  %v2083_v13 = vstv %s2013_s7 }
 0x26f   : > { %2890 = vrcp.f32 %v2083_v13 }
 0x270   : > { %v2073_v45 = vadd.f32 %v2072_v16, %v2042_v39 }
 0x272   : > { %v2074_v38 = vadd.f32 %v2073_v45, %v2043_v5 }
 0x274   : > { %v2075_v61 = vadd.f32 %v2074_v38, %v2044_v47 }
 0x276   : > { %v2076_v40 = vadd.f32 %v2075_v61, %v2045_v31 }
 0x278   : > { %v2077_v22 = vrot.slane %v2076_v40, 4 }
 0x279   : > { %v2891_v16 = vpop.eup %2890 }
 0x27a   : > { %v2078_v49 = vadd.f32 %v2077_v22, %v2076_v40 }
 0x27c   : > { %v2079_v27 = vrot.slane %v2078_v49, 2 }
 0x27e   : > { %v2080_v52 = vadd.f32 %v2079_v27, %v2078_v49 }
 0x280   : > { %v2081_v19 = vrot.slane %v2080_v52, 1 }
 0x282   : > { %v2082_v39 = vadd.f32 %v2081_v19, %v2080_v52 }
 0x284   : > { %v4441_v20 = vmul.f32 %v2891_v16, %v2082_v39 }
 0x286   : > { %v2086_v5 = vsub.f32 %v4259_v2, %v4441_v20  ;;  %v2087_v47 = vsub.f32 %v4275_v42, %v4441_v20  ;;  %v2088_v22 = vsub.f32 %v4291_v18, %v4441_v20  ;;  %v2089_v49 = vsub.f32 %v4307_v48, %v4441_v20 }
 0x287   : > { %v2090_v38 = vsub.f32 %v4325_v63, %v4441_v20  ;;  %v2091_v2 = vsub.f32 %v4347_v56, %v4441_v20  ;;  %v2092_v18 = vsub.f32 %v4367_v11, %v4441_v20  ;;  %v2093_v48 = vsub.f32 %v4385_v10, %v4441_v20 }
 0x288   : > { %v2118_v31 = vmul.f32 %v2086_v5, %v2086_v5  ;;  %v2119_v45 = vmul.f32 %v2087_v47, %v2087_v47  ;;  %v2120_v61 = vmul.f32 %v2088_v22, %v2088_v22  ;;  %v2121_v42 = vmul.f32 %v2089_v49, %v2089_v49 }
 0x289   : > { %v2122_v13 = vmul.f32 %v2090_v38, %v2090_v38  ;;  %v2123_v63 = vmul.f32 %v2091_v2, %v2091_v2  ;;  %v2124_v16 = vmul.f32 %v2092_v18, %v2092_v18  ;;  %v2095_v11 = vsub.f32 %v4195_v54, %v4441_v20 }
 0x28a   : > { %v2150_v40 = vmul.f32 %v3678_v60, %v2118_v31  ;;  %v2151_v27 = vmul.f32 %v3681_v62, %v2119_v45  ;;  %v2152_v52 = vmul.f32 %v3696_v23, %v2120_v61  ;;  %v2153_v39 = vmul.f32 %v3709_v17, %v2121_v42 }
 0x28b   : > { %v2094_v62 = vsub.f32 %v4199_v43, %v4441_v20  ;;  %v2154_v56 = vmul.f32 %v3722_v28, %v2122_v13  ;;  %v2125_v47 = vmul.f32 %v2093_v48, %v2093_v48  ;;  %v2155_v23 = vmul.f32 %v4636_v35, %v2123_v63 }
 0x28c   : > { %v2182_v19 = vadd.f32 %v2151_v27, %v2150_v40  ;;  %v2096_v10 = vsub.f32 %v4212_v14, %v4441_v20  ;;  %v2156_v17 = vmul.f32 %v4637_v7, %v2124_v16  ;;  %v2097_v43 = vsub.f32 %v4208_v9, %v4441_v20 }
 0x28d   : > { %v2126_v31 = vmul.f32 %v2094_v62, %v2094_v62  ;;  %v2127_v49 = vmul.f32 %v2095_v11, %v2095_v11  ;;  %v2157_v28 = vmul.f32 %v4639_v44, %v2125_v47  ;;  %v2098_v54 = vsub.f32 %v4226_v3, %v4441_v20 }
 0x28e   : > { %v2183_v60 = vadd.f32 %v2182_v19, %v2152_v52  ;;  %v2128_v61 = vmul.f32 %v2096_v10, %v2096_v10  ;;  %v2099_v14 = vsub.f32 %v4222_v4, %v4441_v20  ;;  %v2129_v27 = vmul.f32 %v2097_v43, %v2097_v43 }
 0x28f   : > { %v2158_v35 = vmul.f32 %v4640_v15, %v2126_v31  ;;  %v2159_v7 = vmul.f32 %v4641_v53, %v2127_v49  ;;  %v2100_v9 = vsub.f32 %v4240_v29, %v4441_v20  ;;  %v2130_v42 = vmul.f32 %v2098_v54, %v2098_v54  ;;  %v4667_v31 = vld [vmem:[#allocation14_spill] sm:$0xff]  ;;  %v4668_v49 = vld [vmem:[#allocation15_spill] sm:$0xff] }
 0x290   : > { %v2184_v5 = vadd.f32 %v2183_v60, %v2153_v39  ;;  %v2160_v44 = vmul.f32 %v4642_v41, %v2128_v61  ;;  %v2101_v3 = vsub.f32 %v4236_v58, %v4441_v20  ;;  %v2131_v13 = vmul.f32 %v2099_v14, %v2099_v14  ;;  %v4669_v61 = vld [vmem:[#allocation16_spill] sm:$0xff] }
 0x291   : > { %v2161_v15 = vmul.f32 %v4643_v34, %v2129_v27  ;;  %v2102_v4 = vsub.f32 %v4254_v51, %v4441_v20  ;;  %v2132_v19 = vmul.f32 %v2100_v9, %v2100_v9  ;;  %v2162_v53 = vmul.f32 %v4644_v55, %v2130_v42  ;;  %v4664_v34 = vld [vmem:[#allocation11_spill] sm:$0xff]  ;;  %v4665_v55 = vld [vmem:[#allocation12_spill] sm:$0xff]  ;;  %v4670_v27 = vld [vmem:[#allocation17_spill] sm:$0xff] }
 0x292   : > { %v2185_v22 = vadd.f32 %v2184_v5, %v2154_v56  ;;  %v2103_v29 = vsub.f32 %v4250_v21, %v4441_v20  ;;  %v2133_v63 = vmul.f32 %v2101_v3, %v2101_v3  ;;  %v2163_v41 = vmul.f32 %v4645_v57, %v2131_v13  ;;  %v4666_v57 = vld [vmem:[#allocation13_spill] sm:$0xff]  ;;  %v4671_v42 = vld [vmem:[#allocation18_spill] sm:$0xff] }
 0x293   : > { %v2104_v58 = vsub.f32 %v4270_v1, %v4441_v20  ;;  %v2134_v60 = vmul.f32 %v2102_v4, %v2102_v4  ;;  %v2164_v62 = vmul.f32 %v4664_v34, %v2132_v19  ;;  %v2105_v51 = vsub.f32 %v4264_v37, %v4441_v20 }
 0x294   : > { %v2186_v45 = vadd.f32 %v2185_v22, %v2155_v23  ;;  %v2135_v56 = vmul.f32 %v2103_v29, %v2103_v29  ;;  %v2165_v5 = vmul.f32 %v4665_v55, %v2133_v63  ;;  %v2106_v21 = vsub.f32 %v4286_v26, %v4441_v20  ;;  %v4677_v55 = vld [vmem:[#allocation23_spill] sm:$0xff] }
 0x295   : > { %v2136_v47 = vmul.f32 %v2104_v58, %v2104_v58  ;;  %v2166_v23 = vmul.f32 %v4666_v57, %v2134_v60  ;;  %v2107_v1 = vsub.f32 %v4280_v8, %v4441_v20  ;;  %v2137_v10 = vmul.f32 %v2105_v51, %v2105_v51 }
 0x296   : > { %v2187_v38 = vadd.f32 %v2186_v45, %v2156_v17  ;;  %v2167_v17 = vmul.f32 %v4667_v31, %v2135_v56  ;;  %v2108_v37 = vsub.f32 %v4302_v33, %v4441_v20  ;;  %v2138_v43 = vmul.f32 %v2106_v21, %v2106_v21  ;;  %v4679_v31 = vld [vmem:[#allocation26_spill] sm:$0xff] }
 0x297   : > { %v2109_v26 = vsub.f32 %v4296_v24, %v4441_v20  ;;  %v2139_v54 = vmul.f32 %v2107_v1, %v2107_v1  ;;  %v2110_v8 = vsub.f32 %v4318_v46, %v4441_v20  ;;  %v2111_v33 = vsub.f32 %v4312_v30, %v4441_v20  ;;  %v4672_v24 = vld [vmem:[#allocation30_spill] sm:$0xff] }
 0x298   : > { %v2188_v40 = vadd.f32 %v2187_v38, %v2157_v28  ;;  %v2168_v28 = vmul.f32 %v4668_v49, %v2136_v47  ;;  %v2140_v14 = vmul.f32 %v2108_v37, %v2108_v37  ;;  %v2112_v3 = vsub.f32 %v4672_v24, %v4441_v20  ;;  %v4678_v47 = vld [vmem:[#allocation24_spill] sm:$0xff] }
 0x299   : > { %v2141_v9 = vmul.f32 %v2109_v26, %v2109_v26  ;;  %v2142_v13 = vmul.f32 %v2110_v8, %v2110_v8  ;;  %v2113_v46 = vsub.f32 %v4330_v50, %v4441_v20  ;;  %v2143_v19 = vmul.f32 %v2111_v33, %v2111_v33 }
 0x29a   : > { %v2189_v2 = vadd.f32 %v2188_v40, %v2158_v35  ;;  %v2169_v35 = vmul.f32 %v4669_v61, %v2137_v10  ;;  %v2114_v30 = vsub.f32 %v4360_v0, %v4441_v20  ;;  %v2144_v63 = vmul.f32 %v2112_v3, %v2112_v3 }
 0x29b   : > { %v2115_v60 = vsub.f32 %v4352_v12, %v4441_v20  ;;  %v2145_v34 = vmul.f32 %v2113_v46, %v2113_v46  ;;  %v2116_v50 = vsub.f32 %v4380_v25, %v4441_v20  ;;  %v2117_v0 = vsub.f32 %v4372_v59, %v4441_v20 }
 0x29c   : > { %v2190_v18 = vadd.f32 %v2189_v2, %v2159_v7  ;;  %v2170_v7 = vmul.f32 %v4670_v27, %v2138_v43  ;;  %v2146_v56 = vmul.f32 %v2114_v30, %v2114_v30 }
 0x29d   : > { %v2147_v21 = vmul.f32 %v2115_v60, %v2115_v60  ;;  %v2177_v57 = vmul.f32 %v4678_v47, %v2145_v34  ;;  %v2149_v10 = vmul.f32 %v2117_v0, %v2117_v0 }
 0x29e   : > { %v2191_v52 = vadd.f32 %v2190_v18, %v2160_v44  ;;  %v2171_v44 = vmul.f32 %v4671_v42, %v2139_v54 }
 0x29f   : > { %v2179_v25 = vmul.f32 %v4679_v31, %v2147_v21  ;;  %v2181_v43 = vmul.f32 %v4663_v6, %v2149_v10 }
 0x2a0   : > { %v2192_v48 = vadd.f32 %v2191_v52, %v2161_v15  ;;  %v4673_v15 = vld [vmem:[#allocation19_spill] sm:$0xff] }
 0x2a1   : > { %v2172_v52 = vmul.f32 %v4673_v15, %v2140_v14 }
 0x2a2   : > { %v2193_v39 = vadd.f32 %v2192_v48, %v2162_v53  ;;  %v4674_v53 = vld [vmem:[#allocation20_spill] sm:$0xff] }
 0x2a3   : > { %v2173_v48 = vmul.f32 %v4674_v53, %v2141_v9 }
 0x2a4   : > { %v2194_v16 = vadd.f32 %v2193_v39, %v2163_v41  ;;  %v4675_v41 = vld [vmem:[#allocation21_spill] sm:$0xff] }
 0x2a5   : > { %v2174_v39 = vmul.f32 %v4675_v41, %v2142_v13 }
 0x2a6   : > { %v2195_v11 = vadd.f32 %v2194_v16, %v2164_v62  ;;  %v4676_v62 = vld [vmem:[#allocation22_spill] sm:$0xff] }
 0x2a7   : > { %v2175_v16 = vmul.f32 %v4676_v62, %v2143_v19 }
 0x2a8   : > { %v2196_v22 = vadd.f32 %v2195_v11, %v2165_v5  ;;  %v2176_v5 = vmul.f32 %v4677_v55, %v2144_v63 }
 0x2aa   : > { %v2197_v45 = vadd.f32 %v2196_v22, %v2166_v23  ;;  %v2148_v23 = vmul.f32 %v2116_v50, %v2116_v50  ;;  %v2178_v22 = vmul.f32 %v4660_v36, %v2146_v56 }
 0x2ac   : > { %v2198_v38 = vadd.f32 %v2197_v45, %v2167_v17  ;;  %v2180_v45 = vmul.f32 %v4662_v32, %v2148_v23 }
 0x2ae   : > { %v2199_v40 = vadd.f32 %v2198_v38, %v2168_v28 }
 0x2b0   : > { %v2200_v2 = vadd.f32 %v2199_v40, %v2169_v35 }
 0x2b2   : > { %v2201_v18 = vadd.f32 %v2200_v2, %v2170_v7 }
 0x2b4   : > { %v2202_v4 = vadd.f32 %v2201_v18, %v2171_v44 }
 0x2b6   : > { %v2203_v29 = vadd.f32 %v2202_v4, %v2172_v52 }
 0x2b8   : > { %v2204_v58 = vadd.f32 %v2203_v29, %v2173_v48 }
 0x2ba   : > { %v2205_v51 = vadd.f32 %v2204_v58, %v2174_v39 }
 0x2bc   : > { %v2206_v11 = vadd.f32 %v2205_v51, %v2175_v16 }
 0x2be   : > { %v2207_v12 = vadd.f32 %v2206_v11, %v2176_v5 }
 0x2c0   : > { %v2208_v1 = vadd.f32 %v2207_v12, %v2177_v57 }
 0x2c2   : > { %v2209_v17 = vadd.f32 %v2208_v1, %v2178_v22 }
 0x2c4   : > { %v2210_v37 = vadd.f32 %v2209_v17, %v2179_v25 }
 0x2c6   : > { %v2211_v49 = vadd.f32 %v2210_v37, %v2180_v45 }
 0x2c8   : > { %v2212_v59 = vadd.f32 %v2211_v49, %v2181_v43 }
 0x2ca   : > { %v2213_v28 = vrot.slane %v2212_v59, 4 }
 0x2cc   : > { %v2214_v38 = vadd.f32 %v2213_v28, %v2212_v59 }
 0x2ce   : > { %v2215_v26 = vrot.slane %v2214_v38, 2 }
 0x2d0   : > { %v2216_v54 = vadd.f32 %v2215_v26, %v2214_v38 }
 0x2d2   : > { %v2217_v36 = vrot.slane %v2216_v54, 1 }
 0x2d4   : > { %v2218_v61 = vadd.f32 %v2217_v36, %v2216_v54 }
 0x2d6   : > { %v2220_v32 = vsel %vm2219_vm2, %v4441_v20, %v2218_v61 }
 0x2d7   : > { %v2222_v6 = vsel %vm2221_vm3, %v2220_v32, 0.0 }
 0x2d8   : > { %2223 = vst [vmem:[%s187_s11] sm:$0xff] %v2222_v6 }
 0x2d9 PF: > { %s14_s12 = sadd.s32 1, %s2898_s12  }
 0x2da   : > { %p11_p5 = scmp.ge.s32.totalorder %s14_s12, 4  }
 0x2dc   :  { %13 = sbr.rel (!%p11_p5) target bundleno = 1 (0x1), region = 70 }

// kernel: bottleneck_forward.8
= control target key start
LH: loop header
LB: loop body
LE: loop exit
PB: predicated region body
PF: predicated region fallthrough
CT: control target
= control target key end

     0   :  { %s1465_s18 = smov 0   ;;  %s2176_s0 = inlined_call_operand.vmem [shape: f32[512,128], index: 0, kind: input, shape index: {}]   ;;  %s2177_s1 = inlined_call_operand.vmem [shape: f32[1,128], index: 1, kind: input, shape index: {}]   ;;  %s2178_s2 = inlined_call_operand.vmem [shape: f32[1,128], index: 2, kind: input, shape index: {}]   ;;  %s2179_s3 = inlined_call_operand.vmem [shape: f32[128,128], index: 3, kind: input, shape index: {}]   ;;  %s2180_s4 = inlined_call_operand.vmem [shape: f32[512,128], index: 4, kind: output, shape index: {0}]   ;;  %s2181_s5 = inlined_call_operand.vmem [shape: f32[2,8,128], index: 5, kind: output, shape index: {1}]  }
   0x1 LB: > { %s1471_s19 = sadd.s32 4294967295, %s1431_s18   ;;  %p1192_p0 = scmp.ge.s32.totalorder %s1431_s18, 1  ;;  %s1431_s18 = sphi %s1465_s18, %s16_s18  }
   0x2   : > { %p191_p1 = scmp.lt.s32.totalorder %s1431_s18, 3 }
   0x4   : > { %p192_p2 = pnand %p1192_p0, %p191_p1 }
   0x6   : > { %195 = sbr.rel (%p192_p2) target bundleno = 435 (0x1b3), region = 36 }
   0xd   : > { %v381_v0 = vld [vmem:[%s2179_s3] sm:$0xff]  ;;  %v382_v1 = vld [vmem:[%s2179_s3 + $0x8] sm:$0xff]  ;;  %v383_v2 = vld [vmem:[%s2179_s3 + $0x10] sm:$0xff]  ;;  %s1193_s26 = sshll.u32 %s1471_s19, 5  ;;  %s1200_s15 = sshll.u32 %s1471_s19, 8  ;;  %vm817_vm4 = vcmask 7168  }
   0xe   : > { %v1363_v3 = vpack.c.bf16 %v382_v1, %v381_v0  ;;  %v384_v4 = vld [vmem:[%s2179_s3 + $0x18] sm:$0xff]  ;;  %p224_p3 = scmp.lt.s32.totalorder %s1193_s26, 63  ;;  %v385_v6 = vld [vmem:[%s2179_s3 + $0x20] sm:$0xff]  ;;  %v386_v7 = vld [vmem:[%s2179_s3 + $0x28] sm:$0xff]  ;;  %p235_p4 = scmp.lt.s32.totalorder %s1471_s19, 1 }
   0xf   : > { %v1367_v5 = vpack.c.bf16 %v384_v4, %v383_v2  ;;  %v1371_v8 = vpack.c.bf16 %v386_v7, %v385_v6  ;;  %v1500_v9 = vld [vmem:[%s2177_s1] ss:$0 sm:$0xff]  ;;  %v387_v10 = vld [vmem:[%s2179_s3 + $0x30] sm:$0xff]  ;;  %v388_v11 = vld [vmem:[%s2179_s3 + $0x38] sm:$0xff] }
  0x10   : > { %1364 = vmatprep.subr.bf16.mxu0 %v1363_v3  ;;  %1395 = vmatprep.subr.bf16.mxu1 %v1363_v3  ;;  %s2231_s26 = smov (!%p224_p3, %s1193_s26), 63  ;;  %v1519_v13 = vld [vmem:[%s2178_s2] ss:$0 sm:$0xff]  ;;  %v1375_v15 = vpack.c.bf16 %v388_v11, %v387_v10  ;;  %v390_v17 = vld [vmem:[%s2179_s3 + $0x48] sm:$0xff]  ;;  %v391_v21 = vld [vmem:[%s2179_s3 + $0x50] sm:$0xff]  ;;  %s2233_s19 = smov (!%p235_p4, %s1471_s19), 1 }
  0x11   : > { %1366 = vmatpush3.bf16.msra.mxu0 %v1363_v3  ;;  %1403 = vmatpush3.bf16.msra.mxu1 %v1363_v3  ;;  %s1194_s8 = sshll.u32 %s2231_s26, 3  ;;  %v389_v16 = vld [vmem:[%s2179_s3 + $0x40] sm:$0xff]  ;;  %v392_v22 = vld [vmem:[%s2179_s3 + $0x58] sm:$0xff]  ;;  %v394_v26 = vld [vmem:[%s2179_s3 + $0x68] sm:$0xff]  ;;  %s1197_s22 = sshll.u32 %s2233_s19, 3 }
  0x12   : > { %1368 = vmatprep.subr.bf16.mxu0 %v1367_v5  ;;  %1396 = vmatprep.subr.bf16.mxu1 %v1367_v5  ;;  %s1513_s17 = scalar_lea.vmem %s2176_s0, %s1194_s8  ;;  %v1379_v20 = vpack.c.bf16 %v390_v17, %v389_v16  ;;  %v1383_v23 = vpack.c.bf16 %v392_v22, %v391_v21  ;;  %v393_v25 = vld [vmem:[%s2179_s3 + $0x60] sm:$0xff]  ;;  %v395_v33 = vld [vmem:[%s2179_s3 + $0x70] sm:$0xff]  ;;  %v396_v34 = vld [vmem:[%s2179_s3 + $0x78] sm:$0xff]  ;;  %s1875_s20 = scalar_lea.vmem %s2180_s4, %s1194_s8 }
  0x13   : > { %v239_v12 = vld [vmem:[%s1513_s17] sm:$0xff]  ;;  %v240_v27 = vld [vmem:[%s1513_s17 + $0x8] sm:$0xff]  ;;  %v1387_v30 = vpack.c.bf16 %v394_v26, %v393_v25  ;;  %v241_v31 = vld [vmem:[%s1513_s17 + $0x10] sm:$0xff]  ;;  %v1391_v44 = vpack.c.bf16 %v396_v34, %v395_v33  ;;  %s1434_s8 = smov 1.0   ;;  %s238_s25 = scalar_lea.vmem %s2181_s5, %s1197_s22 }
  0x14   : > { %v278_v14 = vmul.f32 %v1500_v9, %v239_v12  ;;  %v255_v24 = vld [vmem:[%s1513_s17 + $0x80] sm:$0xff]  ;;  %v256_v29 = vld [vmem:[%s1513_s17 + $0x88] sm:$0xff]  ;;  %v257_v32 = vld [vmem:[%s1513_s17 + $0x90] sm:$0xff]  ;;  %v279_v36 = vmul.f32 %v1500_v9, %v240_v27  ;;  %v280_v40 = vmul.f32 %v1500_v9, %v241_v31 }
  0x15   : > { %1370 = vmatpush3.bf16.msra.mxu0 %v1367_v5  ;;  %1404 = vmatpush3.bf16.msra.mxu1 %v1367_v5  ;;  %v294_v28 = vmul.f32 %v1500_v9, %v255_v24  ;;  %v242_v37 = vld [vmem:[%s1513_s17 + $0x18] sm:$0xff]  ;;  %v243_v38 = vld [vmem:[%s1513_s17 + $0x20] sm:$0xff]  ;;  %v295_v39 = vmul.f32 %v1500_v9, %v256_v29  ;;  %v296_v42 = vmul.f32 %v1500_v9, %v257_v32  ;;  %v244_v49 = vld [vmem:[%s1513_s17 + $0x28] sm:$0xff] }
  0x16   : > { %1372 = vmatprep.subr.bf16.mxu0 %v1371_v8  ;;  %1397 = vmatprep.subr.bf16.mxu1 %v1371_v8  ;;  %v317_v18 = vadd.f32 %v1519_v13, %v278_v14  ;;  %v258_v43 = vld [vmem:[%s1513_s17 + $0x98] sm:$0xff]  ;;  %v259_v45 = vld [vmem:[%s1513_s17 + $0xa0] sm:$0xff]  ;;  %v281_v46 = vmul.f32 %v1500_v9, %v242_v37  ;;  %v282_v47 = vmul.f32 %v1500_v9, %v243_v38  ;;  %v245_v50 = vld [vmem:[%s1513_s17 + $0x30] sm:$0xff] }
  0x17   : > { %v333_v35 = vadd.f32 %v1519_v13, %v294_v28  ;;  %v318_v48 = vadd.f32 %v1519_v13, %v279_v36  ;;  %v334_v51 = vadd.f32 %v1519_v13, %v295_v39  ;;  %v297_v52 = vmul.f32 %v1500_v9, %v258_v43  ;;  %v260_v56 = vld [vmem:[%s1513_s17 + $0xa8] sm:$0xff]  ;;  %v261_v57 = vld [vmem:[%s1513_s17 + $0xb0] sm:$0xff]  ;;  %v246_v63 = vld [vmem:[%s1513_s17 + $0x38] sm:$0xff] }
  0x18   : > { %v349_v19 = vmax.f32 %v317_v18, 0.0  ;;  %v319_v53 = vadd.f32 %v1519_v13, %v280_v40  ;;  %v335_v54 = vadd.f32 %v1519_v13, %v296_v42  ;;  %v298_v55 = vmul.f32 %v1500_v9, %v259_v45  ;;  %v262_v7 = vld [vmem:[%s1513_s17 + $0xb8] sm:$0xff]  ;;  %v263_v10 = vld [vmem:[%s1513_s17 + $0xc0] sm:$0xff]  ;;  %v248_v17 = vld [vmem:[%s1513_s17 + $0x48] sm:$0xff] }
  0x19   : > { %1374 = vmatpush3.bf16.msra.mxu0 %v1371_v8  ;;  %1405 = vmatpush3.bf16.msra.mxu1 %v1371_v8  ;;  %v365_v41 = vmax.f32 %v333_v35, 0.0  ;;  %v320_v58 = vadd.f32 %v1519_v13, %v281_v46  ;;  %v321_v59 = vadd.f32 %v1519_v13, %v282_v47  ;;  %v283_v60 = vmul.f32 %v1500_v9, %v244_v49  ;;  %v247_v8 = vld [vmem:[%s1513_s17 + $0x40] sm:$0xff]  ;;  %v249_v22 = vld [vmem:[%s1513_s17 + $0x50] sm:$0xff]  ;;  %v264_v26 = vld [vmem:[%s1513_s17 + $0xc8] sm:$0xff] }
  0x1a   : > { %1376 = vmatprep.subr.bf16.mxu0 %v1375_v15  ;;  %1398 = vmatprep.subr.bf16.mxu1 %v1375_v15  ;;  %v284_v61 = vmul.f32 %v1500_v9, %v245_v50  ;;  %v350_v62 = vmax.f32 %v318_v48, 0.0  ;;  %v366_v0 = vmax.f32 %v334_v51, 0.0  ;;  %v336_v1 = vadd.f32 %v1519_v13, %v297_v52  ;;  %v265_v27 = vld [vmem:[%s1513_s17 + $0xd0] sm:$0xff]  ;;  %v250_v34 = vld [vmem:[%s1513_s17 + $0x58] sm:$0xff]  ;;  %v251_v35 = vld [vmem:[%s1513_s17 + $0x60] sm:$0xff] }
  0x1b   : > { %1315 = vmatprep.mubr.f32.mxu0 %v349_v19  ;;  %1339 = vmatprep.mubr.f32.mxu1 %v365_v41  ;;  %v299_v2 = vmul.f32 %v1500_v9, %v260_v56  ;;  %v351_v3 = vmax.f32 %v319_v53, 0.0  ;;  %v367_v4 = vmax.f32 %v335_v54, 0.0  ;;  %v337_v5 = vadd.f32 %v1519_v13, %v298_v55  ;;  %v266_v43 = vld [vmem:[%s1513_s17 + $0xd8] sm:$0xff]  ;;  %v252_v51 = vld [vmem:[%s1513_s17 + $0x68] sm:$0xff] }
  0x1c   : > { %v300_v6 = vmul.f32 %v1500_v9, %v261_v57  ;;  %v352_v11 = vmax.f32 %v320_v58, 0.0  ;;  %v322_v12 = vadd.f32 %v1519_v13, %v283_v60  ;;  %v323_v14 = vadd.f32 %v1519_v13, %v284_v61  ;;  %v268_v55 = vld [vmem:[%s1513_s17 + $0xe8] sm:$0xff]  ;;  %v253_v60 = vld [vmem:[%s1513_s17 + $0x70] sm:$0xff] }
  0x1d   : > { %1378 = vmatpush3.bf16.msra.mxu0 %v1375_v15  ;;  %1406 = vmatpush3.bf16.msra.mxu1 %v1375_v15  ;;  %v285_v15 = vmul.f32 %v1500_v9, %v246_v63  ;;  %v353_v16 = vmax.f32 %v321_v59, 0.0  ;;  %v368_v18 = vmax.f32 %v336_v1, 0.0  ;;  %v338_v19 = vadd.f32 %v1519_v13, %v299_v2  ;;  %v269_v61 = vld [vmem:[%s1513_s17 + $0xf0] sm:$0xff] }
  0x1e   : > { %1380 = vmatprep.subr.bf16.mxu0 %v1379_v20  ;;  %1399 = vmatprep.subr.bf16.mxu1 %v1379_v20  ;;  %v286_v21 = vmul.f32 %v1500_v9, %v247_v8  ;;  %v339_v24 = vadd.f32 %v1519_v13, %v300_v6  ;;  %v302_v25 = vmul.f32 %v1500_v9, %v263_v10  ;;  %v655_v28 = vlaneseq }
  0x1f   : > { %v354_v29 = vmax.f32 %v322_v12, 0.0  ;;  %v324_v31 = vadd.f32 %v1519_v13, %v285_v15  ;;  %v287_v32 = vmul.f32 %v1500_v9, %v248_v17  ;;  %v288_v33 = vmul.f32 %v1500_v9, %v249_v22 }
  0x20   : > { %v370_v36 = vmax.f32 %v338_v19, 0.0  ;;  %v303_v38 = vmul.f32 %v1500_v9, %v264_v26  ;;  %v325_v39 = vadd.f32 %v1519_v13, %v286_v21  ;;  %v371_v40 = vmax.f32 %v339_v24, 0.0 }
  0x21   : > { %1382 = vmatpush3.bf16.msra.mxu0 %v1379_v20  ;;  %1407 = vmatpush3.bf16.msra.mxu1 %v1379_v20  ;;  %v301_v20 = vmul.f32 %v1500_v9, %v262_v7  ;;  %v341_v41 = vadd.f32 %v1519_v13, %v302_v25  ;;  %v304_v42 = vmul.f32 %v1500_v9, %v265_v27  ;;  %v1610_v45 = vshrl.u32 %v655_v28, 7  ;;  %v254_v7 = vld [vmem:[%s1513_s17 + $0x78] sm:$0xff] }
  0x22   : > { %1384 = vmatprep.subr.bf16.mxu0 %v1383_v23  ;;  %1400 = vmatprep.subr.bf16.mxu1 %v1383_v23  ;;  %v356_v46 = vmax.f32 %v324_v31, 0.0  ;;  %v326_v47 = vadd.f32 %v1519_v13, %v287_v32  ;;  %v289_v48 = vmul.f32 %v1500_v9, %v250_v34  ;;  %v290_v49 = vmul.f32 %v1500_v9, %v251_v35 }
  0x23   : > { %v340_v37 = vadd.f32 %v1519_v13, %v301_v20  ;;  %v327_v50 = vadd.f32 %v1519_v13, %v288_v33  ;;  %v342_v53 = vadd.f32 %v1519_v13, %v303_v38  ;;  %v305_v54 = vmul.f32 %v1500_v9, %v266_v43 }
  0x24   : > { %v357_v56 = vmax.f32 %v325_v39, 0.0  ;;  %v373_v57 = vmax.f32 %v341_v41, 0.0  ;;  %v343_v58 = vadd.f32 %v1519_v13, %v304_v42  ;;  %v658_v63 = vadd.s32 16, %v1610_v45 }
  0x25   : > { %1386 = vmatpush3.bf16.msra.mxu0 %v1383_v23  ;;  %1408 = vmatpush3.bf16.msra.mxu1 %v1383_v23  ;;  %v369_v23 = vmax.f32 %v337_v5, 0.0  ;;  %v372_v52 = vmax.f32 %v340_v37, 0.0  ;;  %v328_v1 = vadd.f32 %v1519_v13, %v289_v48  ;;  %v329_v2 = vadd.f32 %v1519_v13, %v290_v49 }
  0x26   : > { %1388 = vmatprep.subr.bf16.mxu0 %v1387_v30  ;;  %1401 = vmatprep.subr.bf16.mxu1 %v1387_v30  ;;  %v358_v5 = vmax.f32 %v326_v47, 0.0  ;;  %v359_v6 = vmax.f32 %v327_v50, 0.0  ;;  %v374_v8 = vmax.f32 %v342_v53, 0.0  ;;  %v344_v10 = vadd.f32 %v1519_v13, %v305_v54 }
  0x27   : > { %v292_v12 = vmul.f32 %v1500_v9, %v253_v60  ;;  %v659_v17 = vadd.s32 24, %v1610_v45  ;;  %v293_v21 = vmul.f32 %v1500_v9, %v254_v7  ;;  %v360_v24 = vmax.f32 %v328_v1, 0.0 }
  0x28   : > { %v376_v25 = vmax.f32 %v344_v10, 0.0  ;;  %v361_v28 = vmax.f32 %v329_v2, 0.0  ;;  %v661_v32 = vadd.s32 40, %v1610_v45  ;;  %v663_v41 = vadd.s32 56, %v1610_v45 }
  0x29   : > { %1390 = vmatpush3.bf16.msra.mxu0 %v1387_v30  ;;  %1409 = vmatpush3.bf16.msra.mxu1 %v1387_v30  ;;  %v355_v30 = vmax.f32 %v323_v14, 0.0  ;;  %v375_v14 = vmax.f32 %v343_v58, 0.0  ;;  %v332_v35 = vadd.f32 %v1519_v13, %v293_v21  ;;  %v664_v43 = vadd.s32 64, %v1610_v45 }
  0x2a   : > { %1392 = vmatprep.subr.bf16.mxu0 %v1391_v44  ;;  %1402 = vmatprep.subr.bf16.mxu1 %v1391_v44  ;;  %v667_v1 = vadd.s32 88, %v1610_v45 }
  0x2b   : > { %v364_v48 = vmax.f32 %v332_v35, 0.0 }
  0x2d   : > { %1394 = vmatpush3.bf16.msra.mxu0 %v1391_v44  ;;  %1410 = vmatpush3.bf16.msra.mxu1 %v1391_v44  ;;  %v267_v44 = vld [vmem:[%s1513_s17 + $0xe0] sm:$0xff] }
  0x2e   : > { %v306_v59 = vmul.f32 %v1500_v9, %v267_v44 }
  0x30   : > { %1316 = vmatmul.mubr.f32.vlgmr.msra.gmra.mrb[0].mxu0 %v350_v62  ;;  %1340 = vmatmul.mubr.f32.vlgmr.msra.gmra.mrb[0].mxu1 %v366_v0  ;;  %v657_v62 = vadd.s32 8, %v1610_v45  ;;  %v1627_v0 = vstv %s1200_s15  ;;  %v345_v15 = vadd.f32 %v1519_v13, %v306_v59  ;;  %v666_v59 = vadd.s32 80, %v1610_v45 }
  0x31   : > { %1318 = vmatprep.mubr.f32.mxu0 %v351_v3  ;;  %1342 = vmatprep.mubr.f32.mxu1 %v367_v4  ;;  %v291_v3 = vmul.f32 %v1500_v9, %v252_v51  ;;  %v307_v4 = vmul.f32 %v1500_v9, %v268_v55  ;;  %v689_v19 = vadd.s32 %v1627_v0, %v1610_v45  ;;  %v665_v51 = vadd.s32 72, %v1610_v45 }
  0x32   : > { %v690_v26 = vadd.s32 %v1627_v0, %v657_v62  ;;  %v691_v27 = vadd.s32 %v1627_v0, %v658_v63  ;;  %v692_v33 = vadd.s32 %v1627_v0, %v659_v17  ;;  %v694_v42 = vadd.s32 %v1627_v0, %v661_v32 }
  0x33   : > { %v330_v20 = vadd.f32 %v1519_v13, %v291_v3  ;;  %v346_v22 = vadd.f32 %v1519_v13, %v307_v4  ;;  %vm721_vm0 = vcmp.lt.s32.totalorder %v689_v19, 512  ;;  %v697_v60 = vadd.s32 %v1627_v0, %v664_v43 }
  0x34   : > { %1319 = vmatmul.mubr.f32.gmra.mrb[2].mxu0 %v352_v11  ;;  %1343 = vmatmul.mubr.f32.gmra.mrb[2].mxu1 %v368_v18  ;;  %v270_v11 = vld [vmem:[%s1513_s17 + $0xf8] sm:$0xff]  ;;  %v660_v18 = vadd.s32 32, %v1610_v45  ;;  %vm722_vm1 = vcmp.lt.s32.totalorder %v690_v26, 512  ;;  %vm723_vm2 = vcmp.lt.s32.totalorder %v691_v27, 512  ;;  %vm724_vm3 = vcmp.lt.s32.totalorder %v692_v33, 512 }
  0x35   : > { %1321 = vmatprep.mubr.f32.mxu0 %v353_v16  ;;  %1345 = vmatprep.mubr.f32.mxu1 %v369_v23  ;;  %v308_v16 = vmul.f32 %v1500_v9, %v269_v61  ;;  %v309_v23 = vmul.f32 %v1500_v9, %v270_v11  ;;  %v662_v9 = vadd.s32 48, %v1610_v45  ;;  %v362_v34 = vmax.f32 %v330_v20, 0.0 }
  0x36   : > { %v693_v38 = vadd.s32 %v1627_v0, %v660_v18  ;;  %vm726_vm6 = vcmp.lt.s32.totalorder %v694_v42, 512  ;;  %v698_v2 = vadd.s32 %v1627_v0, %v665_v51  ;;  %v699_v7 = vadd.s32 %v1627_v0, %v666_v59 }
  0x37   : > { %v347_v31 = vadd.f32 %v1519_v13, %v308_v16  ;;  %v348_v37 = vadd.f32 %v1519_v13, %v309_v23  ;;  %v695_v50 = vadd.s32 %v1627_v0, %v662_v9  ;;  %vm729_vm9 = vcmp.lt.s32.totalorder %v697_v60, 512 }
  0x38   : > { %1322 = vmatmul.mubr.f32.gmra.mrb[4].mxu0 %v354_v29  ;;  %1346 = vmatmul.mubr.f32.gmra.mrb[4].mxu1 %v370_v36  ;;  %v331_v29 = vadd.f32 %v1519_v13, %v292_v12  ;;  %v378_v36 = vmax.f32 %v346_v22, 0.0  ;;  %v1433_v13 = vmov 0.0   ;;  %vm725_vm5 = vcmp.lt.s32.totalorder %v693_v38, 512 }
  0x39   : > { %1324 = vmatprep.mubr.f32.mxu0 %v355_v30  ;;  %1348 = vmatprep.mubr.f32.mxu1 %v371_v40  ;;  %v377_v30 = vmax.f32 %v345_v15, 0.0  ;;  %v379_v40 = vmax.f32 %v347_v31, 0.0  ;;  %v1661_v44 = vsel %vm721_vm0, 1.0, %v1433_v13  ;;  %v1667_v47 = vsel %vm723_vm2, 1.0, %v1433_v13 }
  0x3a   : > { %v363_v39 = vmax.f32 %v331_v29, 0.0  ;;  %v380_v49 = vmax.f32 %v348_v37, 0.0  ;;  %v1674_v53 = vsel %vm724_vm3, 1.0, %v1433_v13  ;;  %v818_v54 = vsel %vm817_vm4, %v1661_v44, 0.0 }
  0x3b   : > { %vm727_vm7 = vcmp.lt.s32.totalorder %v695_v50, 512  ;;  %v823_v61 = vsel %vm817_vm4, %v1674_v53, 0.0  ;;  %v1690_v62 = vsel %vm726_vm6, 1.0, %v1433_v13  ;;  %v669_v12 = vadd.s32 104, %v1610_v45 }
  0x3c   : > { %1325 = vmatmul.mubr.f32.gmra.mrb[6].mxu0 %v356_v46  ;;  %1349 = vmatmul.mubr.f32.gmra.mrb[6].mxu1 %v372_v52  ;;  %v1664_v46 = vsel %vm722_vm1, 1.0, %v1433_v13  ;;  %v696_v52 = vadd.s32 %v1627_v0, %v663_v41  ;;  %v1697_v4 = vsel %vm727_vm7, 1.0, %v1433_v13  ;;  %vm730_vm10 = vcmp.lt.s32.totalorder %v698_v2, 512 }
  0x3d   : > { %1327 = vmatprep.mubr.f32.mxu0 %v357_v56  ;;  %1351 = vmatprep.mubr.f32.mxu1 %v373_v57  ;;  %v819_v55 = vsel %vm817_vm4, %v1664_v46, 0.0  ;;  %v821_v56 = vsel %vm817_vm4, %v1667_v47, 0.0  ;;  %v1683_v57 = vsel %vm725_vm5, 1.0, %v1433_v13  ;;  %2198 = vst [vmem:[#allocation2_spill] sm:$0xff] %v1697_v4  ;;  %v829_v15 = vsel %vm817_vm4, %v1697_v4, 0.0 }
  0x3e   : > { %v820_v58 = vadd.f32 %v819_v55, %v818_v54  ;;  %vm728_vm8 = vcmp.lt.s32.totalorder %v696_v52, 512  ;;  %v825_v3 = vsel %vm817_vm4, %v1683_v57, 0.0  ;;  %v1711_v16 = vsel %vm729_vm9, 1.0, %v1433_v13 }
  0x3f   : > { %v1704_v10 = vsel %vm728_vm8, 1.0, %v1433_v13  ;;  %2200 = vst [vmem:[#allocation4_spill] sm:$0xff] %v1711_v16  ;;  %v670_v18 = vadd.s32 112, %v1610_v45  ;;  %vm731_vm11 = vcmp.lt.s32.totalorder %v699_v7, 512  ;;  %v1718_v21 = vsel %vm730_vm10, 1.0, %v1433_v13 }
  0x40   : > { %1328 = vmatmul.mubr.f32.gmra.mrb[8].mxu0 %v358_v5  ;;  %1352 = vmatmul.mubr.f32.gmra.mrb[8].mxu1 %v374_v8  ;;  %v822_v63 = vadd.f32 %v821_v56, %v820_v58  ;;  %v827_v8 = vsel %vm817_vm4, %v1690_v62, 0.0  ;;  %2199 = vst [vmem:[#allocation3_spill] sm:$0xff] %v1704_v10  ;;  %v831_v20 = vsel %vm817_vm4, %v1704_v10, 0.0  ;;  %2201 = vst [vmem:[#allocation5_spill] sm:$0xff] %v1718_v21  ;;  %v671_v23 = vadd.s32 120, %v1610_v45 }
  0x41   : > { %1330 = vmatprep.mubr.f32.mxu0 %v359_v6  ;;  %1354 = vmatprep.mubr.f32.mxu1 %v375_v14  ;;  %v668_v6 = vadd.s32 96, %v1610_v45  ;;  %v700_v14 = vadd.s32 %v1627_v0, %v667_v1  ;;  %v1725_v26 = vsel %vm731_vm11, 1.0, %v1433_v13  ;;  %v703_v29 = vadd.s32 %v1627_v0, %v670_v18 }
  0x42   : > { %v824_v5 = vadd.f32 %v823_v61, %v822_v63  ;;  %2202 = vst [vmem:[#allocation6_spill] sm:$0xff] %v1725_v26  ;;  %v673_v9 = vadd.s32 136, %v1610_v45  ;;  %v704_v33 = vadd.s32 %v1627_v0, %v671_v23  ;;  %v674_v37 = vadd.s32 144, %v1610_v45 }
  0x43   : > { %v701_v19 = vadd.s32 %v1627_v0, %v668_v6  ;;  %vm732_vm12 = vcmp.lt.s32.totalorder %v700_v14, 512  ;;  %vm735_vm15 = vcmp.lt.s32.totalorder %v703_v29, 512  ;;  %v675_v42 = vadd.s32 152, %v1610_v45 }
  0x44   : > { %1331 = vmatmul.mubr.f32.gmra.mrb[10].mxu0 %v360_v24  ;;  %1355 = vmatmul.mubr.f32.gmra.mrb[10].mxu1 %v376_v25  ;;  %v826_v11 = vadd.f32 %v825_v3, %v824_v5  ;;  %v702_v24 = vadd.s32 %v1627_v0, %v669_v12  ;;  %v833_v25 = vsel %vm817_vm4, %v1711_v16, 0.0  ;;  %v1732_v31 = vsel %vm732_vm12, 1.0, %v1433_v13 }
  0x45   : > { %1333 = vmatprep.mubr.f32.mxu0 %v361_v28  ;;  %1357 = vmatprep.mubr.f32.mxu1 %v377_v30  ;;  %v672_v28 = vadd.s32 128, %v1610_v45  ;;  %vm733_vm13 = vcmp.lt.s32.totalorder %v701_v19, 512  ;;  %v835_v30 = vsel %vm817_vm4, %v1718_v21, 0.0  ;;  %2203 = vst [vmem:[#allocation7_spill] sm:$0xff] %v1732_v31  ;;  %v706_v43 = vadd.s32 %v1627_v0, %v673_v9 }
  0x46   : > { %v828_v17 = vadd.f32 %v827_v8, %v826_v11  ;;  %vm734_vm14 = vcmp.lt.s32.totalorder %v702_v24, 512  ;;  %v1739_v35 = vsel %vm733_vm13, 1.0, %v1433_v13  ;;  %vm736_vm0 = vcmp.lt.s32.totalorder %v704_v33, 512 }
  0x47   : > { %2204 = vst [vmem:[#allocation8_spill] sm:$0xff] %v1739_v35  ;;  %v705_v38 = vadd.s32 %v1627_v0, %v672_v28  ;;  %v676_v51 = vadd.s32 160, %v1610_v45  ;;  %v707_v52 = vadd.s32 %v1627_v0, %v674_v37  ;;  %v1760_v55 = vsel %vm736_vm0, 1.0, %v1433_v13 }
  0x48   : > { %1334 = vmatmul.mubr.f32.gmra.mrb[12].mxu0 %v362_v34  ;;  %1358 = vmatmul.mubr.f32.gmra.mrb[12].mxu1 %v378_v36  ;;  %v830_v22 = vadd.f32 %v829_v15, %v828_v17  ;;  %v837_v34 = vsel %vm817_vm4, %v1725_v26, 0.0  ;;  %v677_v58 = vadd.s32 168, %v1610_v45  ;;  %v708_v59 = vadd.s32 %v1627_v0, %v675_v42 }
  0x49   : > { %1336 = vmatprep.mubr.f32.mxu0 %v363_v39  ;;  %1360 = vmatprep.mubr.f32.mxu1 %v379_v40  ;;  %v839_v39 = vsel %vm817_vm4, %v1732_v31, 0.0  ;;  %v1746_v40 = vsel %vm734_vm14, 1.0, %v1433_v13  ;;  %vm737_vm1 = vcmp.lt.s32.totalorder %v705_v38, 512  ;;  %vm738_vm2 = vcmp.lt.s32.totalorder %v706_v43, 512 }
  0x4a   : > { %v832_v27 = vadd.f32 %v831_v20, %v830_v22  ;;  %2205 = vst [vmem:[#allocation9_spill] sm:$0xff] %v1746_v40  ;;  %v843_v54 = vsel %vm817_vm4, %v1746_v40, 0.0  ;;  %v1767_v61 = vsel %vm737_vm1, 1.0, %v1433_v13  ;;  %v678_v1 = vadd.s32 176, %v1610_v45 }
  0x4b   : > { %v709_v2 = vadd.s32 %v1627_v0, %v676_v51  ;;  %vm739_vm3 = vcmp.lt.s32.totalorder %v707_v52, 512  ;;  %v847_v3 = vsel %vm817_vm4, %v1760_v55, 0.0  ;;  %v1774_v5 = vsel %vm738_vm2, 1.0, %v1433_v13 }
  0x4c   : > { %1337 = vmatmul.mubr.f32.gmra.mrb[14].mxu0 %v364_v48  ;;  %1361 = vmatmul.mubr.f32.gmra.mrb[14].mxu1 %v380_v49  ;;  %v834_v32 = vadd.f32 %v833_v25, %v832_v27  ;;  %v841_v48 = vsel %vm817_vm4, %v1739_v35, 0.0  ;;  %v1753_v49 = vsel %vm735_vm15, 1.0, %v1433_v13  ;;  %v679_v7 = vadd.s32 184, %v1610_v45 }
  0x4d   : > { %2206 = vst [vmem:[#allocation10_spill] sm:$0xff] %v1753_v49  ;;  %v845_v60 = vsel %vm817_vm4, %v1753_v49, 0.0  ;;  %v710_v8 = vadd.s32 %v1627_v0, %v677_v58  ;;  %vm740_vm5 = vcmp.lt.s32.totalorder %v708_v59, 512  ;;  %v849_v11 = vsel %vm817_vm4, %v1767_v61, 0.0 }
  0x4e   : > { %v836_v36 = vadd.f32 %v835_v30, %v834_v32  ;;  %v1781_v12 = vsel %vm739_vm3, 1.0, %v1433_v13  ;;  %v680_v15 = vadd.s32 192, %v1610_v45  ;;  %v711_v17 = vadd.s32 %v1627_v0, %v678_v1 }
  0x4f   : > { %vm741_vm6 = vcmp.lt.s32.totalorder %v709_v2, 512  ;;  %v851_v18 = vsel %vm817_vm4, %v1774_v5, 0.0  ;;  %v1788_v19 = vsel %vm740_vm5, 1.0, %v1433_v13  ;;  %v681_v22 = vadd.s32 200, %v1610_v45 }
  0x50   : > { %v838_v41 = vadd.f32 %v837_v34, %v836_v36  ;;  %v712_v23 = vadd.s32 %v1627_v0, %v679_v7  ;;  %vm742_vm7 = vcmp.lt.s32.totalorder %v710_v8, 512  ;;  %v853_v24 = vsel %vm817_vm4, %v1781_v12, 0.0 }
  0x51   : > { %v1795_v25 = vsel %vm741_vm6, 1.0, %v1433_v13  ;;  %v682_v28 = vadd.s32 208, %v1610_v45  ;;  %v713_v29 = vadd.s32 %v1627_v0, %v680_v15  ;;  %vm743_vm8 = vcmp.lt.s32.totalorder %v711_v17, 512 }
  0x52   : > { %v840_v50 = vadd.f32 %v839_v39, %v838_v41  ;;  %v855_v30 = vsel %vm817_vm4, %v1788_v19, 0.0  ;;  %v1802_v32 = vsel %vm742_vm7, 1.0, %v1433_v13  ;;  %v683_v33 = vadd.s32 216, %v1610_v45 }
  0x53   : > { %v714_v34 = vadd.s32 %v1627_v0, %v681_v22  ;;  %vm744_vm9 = vcmp.lt.s32.totalorder %v712_v23, 512  ;;  %v857_v36 = vsel %vm817_vm4, %v1795_v25, 0.0  ;;  %v1809_v37 = vsel %vm743_vm8, 1.0, %v1433_v13 }
  0x54   : > { %v842_v56 = vadd.f32 %v841_v48, %v840_v50  ;;  %v684_v39 = vadd.s32 224, %v1610_v45  ;;  %v715_v41 = vadd.s32 %v1627_v0, %v682_v28  ;;  %vm745_vm10 = vcmp.lt.s32.totalorder %v713_v29, 512 }
  0x55   : > { %v859_v42 = vsel %vm817_vm4, %v1802_v32, 0.0  ;;  %v1816_v43 = vsel %vm744_vm9, 1.0, %v1433_v13  ;;  %v685_v50 = vadd.s32 232, %v1610_v45  ;;  %v716_v51 = vadd.s32 %v1627_v0, %v683_v33 }
  0x56   : > { %v844_v63 = vadd.f32 %v843_v54, %v842_v56  ;;  %vm746_vm11 = vcmp.lt.s32.totalorder %v714_v34, 512  ;;  %v861_v52 = vsel %vm817_vm4, %v1809_v37, 0.0  ;;  %v1823_v54 = vsel %vm745_vm10, 1.0, %v1433_v13 }
  0x57   : > { %v686_v58 = vadd.s32 240, %v1610_v45  ;;  %v717_v59 = vadd.s32 %v1627_v0, %v684_v39  ;;  %vm747_vm12 = vcmp.lt.s32.totalorder %v715_v41, 512  ;;  %v687_v2 = vadd.s32 248, %v1610_v45 }
  0x58   : > { %v846_v6 = vadd.f32 %v845_v60, %v844_v63  ;;  %v863_v60 = vsel %vm817_vm4, %v1816_v43, 0.0  ;;  %v1830_v63 = vsel %vm746_vm11, 1.0, %v1433_v13  ;;  %vm748_vm13 = vcmp.lt.s32.totalorder %v716_v51, 512 }
  0x59   : > { %v1837_v7 = vsel %vm747_vm12, 1.0, %v1433_v13  ;;  %vm749_vm14 = vcmp.lt.s32.totalorder %v717_v59, 512  ;;  %v1843_v15 = vsel %vm748_vm13, 1.0, %v1433_v13  ;;  %v720_v17 = vadd.s32 %v1627_v0, %v687_v2 }
  0x5a   : > { %v848_v14 = vadd.f32 %v847_v3, %v846_v6  ;;  %v718_v3 = vadd.s32 %v1627_v0, %v685_v50  ;;  %v865_v6 = vsel %vm817_vm4, %v1823_v54, 0.0  ;;  %2207 = vst [vmem:[#allocation11_spill] sm:$0xff] %v1837_v7  ;;  %2208 = vst [vmem:[#allocation12_spill] sm:$0xff] %v1843_v15  ;;  %v871_v23 = vsel %vm817_vm4, %v1843_v15, 0.0 }
  0x5b   : > { %vm752_vm1 = vcmp.lt.s32.totalorder %v720_v17, 512  ;;  %vm1098_vm2 = vcmask 1041408  }
  0x5c   : > { %v850_v20 = vadd.f32 %v849_v11, %v848_v14  ;;  %v719_v11 = vadd.s32 %v1627_v0, %v686_v58  ;;  %v867_v14 = vsel %vm817_vm4, %v1830_v63, 0.0  ;;  %vm750_vm15 = vcmp.lt.s32.totalorder %v718_v3, 512 }
  0x5e   : > { %v852_v27 = vadd.f32 %v851_v18, %v850_v20  ;;  %v869_v18 = vsel %vm817_vm4, %v1837_v7, 0.0  ;;  %v1849_v20 = vsel %vm749_vm14, 1.0, %v1433_v13  ;;  %vm751_vm0 = vcmp.lt.s32.totalorder %v719_v11, 512 }
  0x5f   : > { %v873_v0 = vsel %vm817_vm4, %v1849_v20, 0.0  ;;  %v1859_v28 = vsel %vm751_vm0, 1.0, %v1433_v13 }
  0x60   : > { %v854_v9 = vadd.f32 %v853_v24, %v852_v27  ;;  %v1854_v24 = vsel %vm750_vm15, 1.0, %v1433_v13  ;;  %v877_v34 = vsel %vm817_vm4, %v1859_v28, 0.0 }
  0x61   : > { %2209 = vst [vmem:[#allocation13_spill] sm:$0xff] %v1854_v24 }
  0x62   : > { %v856_v38 = vadd.f32 %v855_v30, %v854_v9  ;;  %v875_v30 = vsel %vm817_vm4, %v1854_v24, 0.0  ;;  %v1864_v9 = vsel %vm752_vm1, 1.0, %v1433_v13 }
  0x64   : > { %v858_v48 = vadd.f32 %v857_v36, %v856_v38  ;;  %v879_v38 = vsel %vm817_vm4, %v1864_v9, 0.0  ;;  %vm1096_vm4 = vcmask 1040384  }
  0x66   : > { %v860_v56 = vadd.f32 %v859_v42, %v858_v48 }
  0x68   : > { %v862_v1 = vadd.f32 %v861_v52, %v860_v56 }
  0x6a   : > { %v864_v8 = vadd.f32 %v863_v60, %v862_v1 }
  0x6c   : > { %v866_v45 = vadd.f32 %v865_v6, %v864_v8 }
  0x6e   : > { %v868_v22 = vadd.f32 %v867_v14, %v866_v45 }
  0x70   : > { %v870_v27 = vadd.f32 %v869_v18, %v868_v22 }
  0x72   : > { %v872_v29 = vadd.f32 %v871_v23, %v870_v27 }
  0x74   : > { %v874_v33 = vadd.f32 %v873_v0, %v872_v29 }
  0x76   : > { %v876_v36 = vadd.f32 %v875_v30, %v874_v33 }
  0x78   : > { %v878_v39 = vadd.f32 %v877_v34, %v876_v36 }
  0x7a   : > { %v880_v41 = vadd.f32 %v879_v38, %v878_v39 }
  0x7c   : > { %881 = vadd.xlane.f32.xlu0 %v880_v41 }
 0x103   : > { %v1877_v13 = vpop.f32.mrb[0].mxu0  ;;  %v1879_v42 = vpop.f32.mrb[0].mxu1 }
 0x104   : > { %623 = vst [vmem:[%s1875_s20 + $0x8] sm:$0xff] %v1877_v13  ;;  %v892_v48 = vmul.f32 %v1877_v13, %v1664_v46  ;;  %v1885_v50 = vpop.f32.mrb[1].mxu0  ;;  %639 = vst [vmem:[%s1875_s20 + $0x88] sm:$0xff] %v1879_v42  ;;  %v1889_v51 = vpop.f32.mrb[1].mxu1 }
 0x105   : > { %622 = vst [vmem:[%s1875_s20] sm:$0xff] %v1885_v50  ;;  %v891_v52 = vmul.f32 %v1661_v44, %v1885_v50  ;;  %638 = vst [vmem:[%s1875_s20 + $0x80] sm:$0xff] %v1889_v51 }
 0x107   : > { %v923_v56 = vadd.f32 %v892_v48, %v891_v52  ;;  %v1897_v58 = vpop.f32.mrb[2].mxu0  ;;  %v1899_v59 = vpop.f32.mrb[2].mxu1 }
 0x108   : > { %625 = vst [vmem:[%s1875_s20 + $0x18] sm:$0xff] %v1897_v58  ;;  %v1903_v60 = vpop.f32.mrb[3].mxu0  ;;  %641 = vst [vmem:[%s1875_s20 + $0x98] sm:$0xff] %v1899_v59  ;;  %v1907_v1 = vpop.f32.mrb[3].mxu1  ;;  %v894_v3 = vmul.f32 %v1897_v58, %v1674_v53 }
 0x109   : > { %624 = vst [vmem:[%s1875_s20 + $0x10] sm:$0xff] %v1903_v60  ;;  %v893_v2 = vmul.f32 %v1667_v47, %v1903_v60  ;;  %640 = vst [vmem:[%s1875_s20 + $0x90] sm:$0xff] %v1907_v1 }
 0x10b   : > { %v924_v6 = vadd.f32 %v923_v56, %v893_v2  ;;  %v1917_v8 = vpop.f32.mrb[4].mxu0  ;;  %v1919_v11 = vpop.f32.mrb[4].mxu1 }
 0x10c   : > { %627 = vst [vmem:[%s1875_s20 + $0x28] sm:$0xff] %v1917_v8  ;;  %v1923_v14 = vpop.f32.mrb[5].mxu0  ;;  %643 = vst [vmem:[%s1875_s20 + $0xa8] sm:$0xff] %v1919_v11  ;;  %v1927_v45 = vpop.f32.mrb[5].mxu1  ;;  %v896_v22 = vmul.f32 %v1917_v8, %v1690_v62 }
 0x10d   : > { %626 = vst [vmem:[%s1875_s20 + $0x20] sm:$0xff] %v1923_v14  ;;  %v895_v17 = vmul.f32 %v1683_v57, %v1923_v14  ;;  %v925_v18 = vadd.f32 %v924_v6, %v894_v3  ;;  %642 = vst [vmem:[%s1875_s20 + $0xa0] sm:$0xff] %v1927_v45  ;;  %v882_v3 = vpop.xlane.xlu0 %881 }
 0x10e   : > { %v883_v6 = vrot.slane %v882_v3, 4 }
 0x10f   : > { %v926_v23 = vadd.f32 %v925_v18, %v895_v17  ;;  %v1937_v27 = vpop.f32.mrb[6].mxu0  ;;  %v1939_v0 = vpop.f32.mrb[6].mxu1 }
 0x110   : > { %629 = vst [vmem:[%s1875_s20 + $0x38] sm:$0xff] %v1937_v27  ;;  %v1943_v29 = vpop.f32.mrb[7].mxu0  ;;  %645 = vst [vmem:[%s1875_s20 + $0xb8] sm:$0xff] %v1939_v0  ;;  %v1947_v30 = vpop.f32.mrb[7].mxu1  ;;  %v898_v36 = vmul.f32 %v1937_v27, %v1704_v10 }
 0x111   : > { %628 = vst [vmem:[%s1875_s20 + $0x30] sm:$0xff] %v1943_v29  ;;  %v897_v33 = vmul.f32 %v1697_v4, %v1943_v29  ;;  %v927_v34 = vadd.f32 %v926_v23, %v896_v22  ;;  %644 = vst [vmem:[%s1875_s20 + $0xb0] sm:$0xff] %v1947_v30 }
 0x113   : > { %v928_v38 = vadd.f32 %v927_v34, %v897_v33  ;;  %v1957_v39 = vpop.f32.mrb[8].mxu0  ;;  %v1959_v41 = vpop.f32.mrb[8].mxu1 }
 0x114   : > { %631 = vst [vmem:[%s1875_s20 + $0x48] sm:$0xff] %v1957_v39  ;;  %v1963_v48 = vpop.f32.mrb[9].mxu0  ;;  %647 = vst [vmem:[%s1875_s20 + $0xc8] sm:$0xff] %v1959_v41  ;;  %v1967_v52 = vpop.f32.mrb[9].mxu1  ;;  %v900_v17 = vmul.f32 %v1957_v39, %v1718_v21 }
 0x115   : > { %630 = vst [vmem:[%s1875_s20 + $0x40] sm:$0xff] %v1963_v48  ;;  %v899_v56 = vmul.f32 %v1711_v16, %v1963_v48  ;;  %v929_v2 = vadd.f32 %v928_v38, %v898_v36  ;;  %646 = vst [vmem:[%s1875_s20 + $0xc0] sm:$0xff] %v1967_v52  ;;  %v884_v36 = vadd.f32 %v883_v6, %v882_v3 }
 0x117   : > { %v930_v18 = vadd.f32 %v929_v2, %v899_v56  ;;  %v1977_v22 = vpop.f32.mrb[10].mxu0  ;;  %v1979_v23 = vpop.f32.mrb[10].mxu1  ;;  %v885_v2 = vrot.slane %v884_v36, 2 }
 0x118   : > { %2210 = vst [vmem:[#allocation14_spill] sm:$0xff] %v1977_v22  ;;  %633 = vst [vmem:[%s1875_s20 + $0x58] sm:$0xff] %v1977_v22  ;;  %v1983_v33 = vpop.f32.mrb[11].mxu0  ;;  %v1987_v34 = vpop.f32.mrb[11].mxu1  ;;  %v902_v21 = vmul.f32 %v1977_v22, %v1732_v31 }
 0x119   : > { %2211 = vst [vmem:[#allocation15_spill] sm:$0xff] %v1983_v33  ;;  %649 = vst [vmem:[%s1875_s20 + $0xd8] sm:$0xff] %v1979_v23  ;;  %v901_v38 = vmul.f32 %v1725_v26, %v1983_v33  ;;  %v931_v56 = vadd.f32 %v930_v18, %v900_v17  ;;  %v886_v17 = vadd.f32 %v885_v2, %v884_v36 }
 0x11a   : > { %632 = vst [vmem:[%s1875_s20 + $0x50] sm:$0xff] %v1983_v33  ;;  %648 = vst [vmem:[%s1875_s20 + $0xd0] sm:$0xff] %v1987_v34 }
 0x11b   : > { %v932_v16 = vadd.f32 %v931_v56, %v901_v38  ;;  %v1997_v10 = vpop.f32.mrb[12].mxu0  ;;  %v1999_v4 = vpop.f32.mrb[12].mxu1  ;;  %v887_v56 = vrot.slane %v886_v17, 1 }
 0x11c   : > { %2212 = vst [vmem:[#allocation16_spill] sm:$0xff] %v1997_v10  ;;  %635 = vst [vmem:[%s1875_s20 + $0x68] sm:$0xff] %v1997_v10  ;;  %v2003_v3 = vpop.f32.mrb[13].mxu0  ;;  %v2007_v6 = vpop.f32.mrb[13].mxu1  ;;  %v904_v31 = vmul.f32 %v1997_v10, %v1746_v40 }
 0x11d   : > { %2213 = vst [vmem:[#allocation17_spill] sm:$0xff] %v2003_v3  ;;  %651 = vst [vmem:[%s1875_s20 + $0xe8] sm:$0xff] %v1999_v4  ;;  %v903_v18 = vmul.f32 %v1739_v35, %v2003_v3  ;;  %v933_v38 = vadd.f32 %v932_v16, %v902_v21  ;;  %v888_v16 = vadd.f32 %v887_v56, %v886_v17 }
 0x11e   : > { %634 = vst [vmem:[%s1875_s20 + $0x60] sm:$0xff] %v2003_v3  ;;  %650 = vst [vmem:[%s1875_s20 + $0xe0] sm:$0xff] %v2007_v6  ;;  %v907_v35 = vmul.f32 %v1767_v61, %v1889_v51  ;;  %v908_v17 = vmul.f32 %v1879_v42, %v1774_v5  ;;  %v909_v3 = vmul.f32 %v1781_v12, %v1907_v1 }
 0x11f   : > { %v934_v26 = vadd.f32 %v933_v38, %v903_v18  ;;  %v2017_v22 = vpop.f32.mrb[14].mxu0  ;;  %v2019_v33 = vpop.f32.mrb[14].mxu1  ;;  %1411 = vpush %v888_v16  ;;  %v911_v16 = vmul.f32 %v1795_v25, %v1927_v45 }
 0x120   : > { %637 = vst [vmem:[%s1875_s20 + $0x78] sm:$0xff] %v2017_v22  ;;  %v2023_v36 = vpop.f32.mrb[15].mxu0  ;;  %653 = vst [vmem:[%s1875_s20 + $0xf8] sm:$0xff] %v2019_v33  ;;  %v2027_v2 = vpop.f32.mrb[15].mxu1  ;;  %v906_v18 = vmul.f32 %v2017_v22, %v1760_v55 }
 0x121   : > { %636 = vst [vmem:[%s1875_s20 + $0x70] sm:$0xff] %v2023_v36  ;;  %v905_v21 = vmul.f32 %v1753_v49, %v2023_v36  ;;  %v935_v40 = vadd.f32 %v934_v26, %v904_v31  ;;  %652 = vst [vmem:[%s1875_s20 + $0xf0] sm:$0xff] %v2027_v2  ;;  %v910_v26 = vmul.f32 %v1899_v59, %v1788_v19 }
 0x123   : > { %v936_v38 = vadd.f32 %v935_v40, %v905_v21  ;;  %v912_v21 = vmul.f32 %v1919_v11, %v1802_v32 }
 0x125   : > { %v937_v10 = vadd.f32 %v936_v38, %v906_v18  ;;  %v913_v38 = vmul.f32 %v1809_v37, %v1947_v30 }
 0x127   : > { %v938_v56 = vadd.f32 %v937_v10, %v907_v35  ;;  %v914_v35 = vmul.f32 %v1939_v0, %v1816_v43 }
 0x129   : > { %v939_v49 = vadd.f32 %v938_v56, %v908_v17  ;;  %v915_v56 = vmul.f32 %v1823_v54, %v1967_v52 }
 0x12b   : > { %v940_v31 = vadd.f32 %v939_v49, %v909_v3  ;;  %v916_v3 = vmul.f32 %v1959_v41, %v1830_v63 }
 0x12d   : > { %v941_v40 = vadd.f32 %v940_v31, %v910_v26  ;;  %v917_v31 = vmul.f32 %v1837_v7, %v1987_v34 }
 0x12f   : > { %v942_v18 = vadd.f32 %v941_v40, %v911_v16  ;;  %v918_v40 = vmul.f32 %v1979_v23, %v1843_v15 }
 0x131   : > { %v943_v10 = vadd.f32 %v942_v18, %v912_v21  ;;  %v919_v18 = vmul.f32 %v1849_v20, %v2007_v6 }
 0x133   : > { %v944_v17 = vadd.f32 %v943_v10, %v913_v38  ;;  %v920_v10 = vmul.f32 %v1999_v4, %v1854_v24 }
 0x135   : > { %v945_v49 = vadd.f32 %v944_v17, %v914_v35  ;;  %v921_v17 = vmul.f32 %v1859_v28, %v2027_v2 }
 0x137   : > { %v946_v26 = vadd.f32 %v945_v49, %v915_v56  ;;  %v922_v49 = vmul.f32 %v2019_v33, %v1864_v9 }
 0x139   : > { %v947_v16 = vadd.f32 %v946_v26, %v916_v3 }
 0x13b   : > { %v948_v21 = vadd.f32 %v947_v16, %v917_v31 }
 0x13d   : > { %v949_v38 = vadd.f32 %v948_v21, %v918_v40 }
 0x13f   : > { %v950_v35 = vadd.f32 %v949_v38, %v919_v18 }
 0x141   : > { %v951_v56 = vadd.f32 %v950_v35, %v920_v10 }
 0x143   : > { %v952_v3 = vadd.f32 %v951_v56, %v921_v17 }
 0x145   : > { %v953_v26 = vadd.f32 %v952_v3, %v922_v49 }
 0x147   : > { %v954_v7 = vrot.slane %v953_v26, 4 }
 0x149   : > { %v955_v15 = vadd.f32 %v954_v7, %v953_v26 }
 0x14b   : > { %v956_v31 = vrot.slane %v955_v15, 2 }
 0x14d   : > { %v957_v40 = vadd.f32 %v956_v31, %v955_v15 }
 0x14f   : > { %v958_v21 = vrot.slane %v957_v40, 1 }
 0x150   : > { %s1412_s26 = spop %1411 }
 0x151   : > { %s890_s21 = smax.f32 %s1434_s8, %s1412_s26  ;;  %v959_v18 = vadd.f32 %v958_v21, %v957_v40 }
 0x152   : > { %v960_v16 = vstv %s890_s21 }
 0x153   : > { %1423 = vrcp.f32 %v960_v16 }
 0x15d   : > { %v1424_v38 = vpop.eup %1423 }
 0x15e   : > { %v2069_v24 = vmul.f32 %v1424_v38, %v959_v18 }
 0x160   : > { %v963_v10 = vsub.f32 %v1885_v50, %v2069_v24  ;;  %v964_v35 = vsub.f32 %v1877_v13, %v2069_v24  ;;  %v965_v7 = vsub.f32 %v1903_v60, %v2069_v24  ;;  %v966_v15 = vsub.f32 %v1897_v58, %v2069_v24 }
 0x161   : > { %v967_v49 = vsub.f32 %v1923_v14, %v2069_v24  ;;  %v968_v50 = vsub.f32 %v1917_v8, %v2069_v24  ;;  %v969_v60 = vsub.f32 %v1943_v29, %v2069_v24  ;;  %v970_v58 = vsub.f32 %v1937_v27, %v2069_v24  ;;  %v2214_v27 = vld [vmem:[#allocation15_spill] sm:$0xff] }
 0x162   : > { %v995_v17 = vmul.f32 %v963_v10, %v963_v10  ;;  %v996_v56 = vmul.f32 %v964_v35, %v964_v35  ;;  %v997_v3 = vmul.f32 %v965_v7, %v965_v7  ;;  %v998_v13 = vmul.f32 %v966_v15, %v966_v15 }
 0x163   : > { %v999_v16 = vmul.f32 %v967_v49, %v967_v49  ;;  %v1000_v14 = vmul.f32 %v968_v50, %v968_v50  ;;  %v1001_v38 = vmul.f32 %v969_v60, %v969_v60  ;;  %v972_v29 = vsub.f32 %v1957_v39, %v2069_v24  ;;  %v2218_v39 = vld [vmem:[#allocation17_spill] sm:$0xff] }
 0x164   : > { %v1027_v26 = vmul.f32 %v1661_v44, %v995_v17  ;;  %v1028_v31 = vmul.f32 %v1664_v46, %v996_v56  ;;  %v1029_v40 = vmul.f32 %v1667_v47, %v997_v3  ;;  %v1030_v18 = vmul.f32 %v1674_v53, %v998_v13  ;;  %v2215_v53 = vld [vmem:[#allocation2_spill] sm:$0xff] }
 0x165   : > { %v971_v46 = vsub.f32 %v1963_v48, %v2069_v24  ;;  %v1031_v8 = vmul.f32 %v1683_v57, %v999_v16  ;;  %v1002_v35 = vmul.f32 %v970_v58, %v970_v58  ;;  %v1032_v47 = vmul.f32 %v1690_v62, %v1000_v14  ;;  %v2216_v48 = vld [vmem:[#allocation14_spill] sm:$0xff]  ;;  %v2217_v57 = vld [vmem:[#allocation3_spill] sm:$0xff]  ;;  %v2219_v62 = vld [vmem:[#allocation4_spill] sm:$0xff] }
 0x166   : > { %v1059_v21 = vadd.f32 %v1028_v31, %v1027_v26  ;;  %v973_v17 = vsub.f32 %v2214_v27, %v2069_v24  ;;  %v1033_v15 = vmul.f32 %v2215_v53, %v1001_v38  ;;  %v974_v3 = vsub.f32 %v2216_v48, %v2069_v24  ;;  %v2223_v27 = vld [vmem:[#allocation7_spill] sm:$0xff] }
 0x167   : > { %v1003_v56 = vmul.f32 %v971_v46, %v971_v46  ;;  %v1004_v26 = vmul.f32 %v972_v29, %v972_v29  ;;  %v1034_v31 = vmul.f32 %v2217_v57, %v1002_v35  ;;  %v975_v13 = vsub.f32 %v2218_v39, %v2069_v24  ;;  %v2225_v57 = vld [vmem:[#allocation9_spill] sm:$0xff] }
 0x168   : > { %v1060_v44 = vadd.f32 %v1059_v21, %v1029_v40  ;;  %v1005_v60 = vmul.f32 %v973_v17, %v973_v17  ;;  %v2220_v21 = vld [vmem:[#allocation16_spill] sm:$0xff]  ;;  %v1006_v14 = vmul.f32 %v974_v3, %v974_v3  ;;  %v977_v38 = vsub.f32 %v2023_v36, %v2069_v24 }
 0x169   : > { %v1035_v16 = vmul.f32 %v2219_v62, %v1003_v56  ;;  %v976_v58 = vsub.f32 %v2220_v21, %v2069_v24  ;;  %v979_v53 = vsub.f32 %v1889_v51, %v2069_v24  ;;  %v980_v36 = vsub.f32 %v1879_v42, %v2069_v24 }
 0x16a   : > { %v1061_v10 = vadd.f32 %v1060_v44, %v1030_v18  ;;  %v2221_v18 = vld [vmem:[#allocation5_spill] sm:$0xff]  ;;  %v1038_v17 = vmul.f32 %v2223_v27, %v1006_v14  ;;  %v982_v51 = vsub.f32 %v1899_v59, %v2069_v24  ;;  %v983_v42 = vsub.f32 %v1927_v45, %v2069_v24 }
 0x16b   : > { %v1036_v44 = vmul.f32 %v2221_v18, %v1004_v26  ;;  %v1011_v39 = vmul.f32 %v979_v53, %v979_v53  ;;  %v985_v59 = vsub.f32 %v1947_v30, %v2069_v24  ;;  %v986_v45 = vsub.f32 %v1939_v0, %v2069_v24 }
 0x16c   : > { %v1062_v7 = vadd.f32 %v1061_v10, %v1031_v8  ;;  %v1007_v8 = vmul.f32 %v975_v13, %v975_v13  ;;  %v2222_v10 = vld [vmem:[#allocation6_spill] sm:$0xff]  ;;  %v988_v30 = vsub.f32 %v1959_v41, %v2069_v24  ;;  %v989_v0 = vsub.f32 %v1987_v34, %v2069_v24 }
 0x16d   : > { %v1037_v29 = vmul.f32 %v2222_v10, %v1005_v60  ;;  %v2226_v13 = vld [vmem:[#allocation10_spill] sm:$0xff]  ;;  %v1043_v14 = vmul.f32 %v1767_v61, %v1011_v39  ;;  %v1018_v27 = vmul.f32 %v986_v45, %v986_v45  ;;  %v991_v41 = vsub.f32 %v2007_v6, %v2069_v24 }
 0x16e   : > { %v1063_v49 = vadd.f32 %v1062_v7, %v1032_v47  ;;  %v978_v47 = vsub.f32 %v2017_v22, %v2069_v24  ;;  %v1008_v7 = vmul.f32 %v976_v58, %v976_v58  ;;  %v981_v22 = vsub.f32 %v1907_v1, %v2069_v24 }
 0x16f   : > { %v984_v1 = vsub.f32 %v1919_v11, %v2069_v24  ;;  %v987_v11 = vsub.f32 %v1967_v52, %v2069_v24  ;;  %v990_v52 = vsub.f32 %v1979_v23, %v2069_v24  ;;  %v992_v34 = vsub.f32 %v1999_v4, %v2069_v24 }
 0x170   : > { %v1064_v50 = vadd.f32 %v1063_v49, %v1033_v15  ;;  %v1009_v15 = vmul.f32 %v977_v38, %v977_v38  ;;  %v2224_v49 = vld [vmem:[#allocation8_spill] sm:$0xff]  ;;  %v1010_v26 = vmul.f32 %v978_v47, %v978_v47  ;;  %v1013_v58 = vmul.f32 %v981_v22, %v981_v22 }
 0x171   : > { %v1039_v48 = vmul.f32 %v2224_v49, %v1007_v8  ;;  %v1015_v8 = vmul.f32 %v983_v42, %v983_v42  ;;  %v1017_v47 = vmul.f32 %v985_v59, %v985_v59  ;;  %v993_v23 = vsub.f32 %v2027_v2, %v2069_v24  ;;  %v2228_v22 = vld [vmem:[#allocation12_spill] sm:$0xff] }
 0x172   : > { %v1065_v40 = vadd.f32 %v1064_v50, %v1034_v31  ;;  %v1040_v31 = vmul.f32 %v2225_v57, %v1008_v7  ;;  %v1041_v60 = vmul.f32 %v2226_v13, %v1009_v15  ;;  %v1020_v15 = vmul.f32 %v988_v30, %v988_v30 }
 0x173   : > { %v1023_v57 = vmul.f32 %v991_v41, %v991_v41  ;;  %v994_v6 = vsub.f32 %v2019_v33, %v2069_v24  ;;  %v1025_v13 = vmul.f32 %v993_v23, %v993_v23 }
 0x174   : > { %v1066_v46 = vadd.f32 %v1065_v40, %v1035_v16  ;;  %v1012_v16 = vmul.f32 %v980_v36, %v980_v36  ;;  %v1042_v40 = vmul.f32 %v1760_v55, %v1010_v26  ;;  %v1045_v55 = vmul.f32 %v1781_v12, %v1013_v58 }
 0x175   : > { %v1022_v36 = vmul.f32 %v990_v52, %v990_v52 }
 0x176   : > { %v1067_v35 = vadd.f32 %v1066_v46, %v1036_v44  ;;  %v1014_v44 = vmul.f32 %v982_v51, %v982_v51  ;;  %v1044_v46 = vmul.f32 %v1774_v5, %v1012_v16  ;;  %v1047_v5 = vmul.f32 %v1795_v25, %v1015_v8  ;;  %v2229_v51 = vld [vmem:[#allocation13_spill] sm:$0xff] }
 0x177   : > { %v1050_v25 = vmul.f32 %v1816_v43, %v1018_v27  ;;  %v2227_v43 = vld [vmem:[#allocation11_spill] sm:$0xff]  ;;  %v1054_v39 = vmul.f32 %v2228_v22, %v1022_v36 }
 0x178   : > { %v1068_v56 = vadd.f32 %v1067_v35, %v1037_v29  ;;  %v1016_v29 = vmul.f32 %v984_v1, %v984_v1  ;;  %v1046_v61 = vmul.f32 %v1788_v19, %v1014_v44  ;;  %v1049_v19 = vmul.f32 %v1809_v37, %v1017_v47 }
 0x179   : > { %v1052_v37 = vmul.f32 %v1830_v63, %v1020_v15  ;;  %v1055_v63 = vmul.f32 %v1849_v20, %v1023_v57 }
 0x17a   : > { %v1069_v3 = vadd.f32 %v1068_v56, %v1038_v17  ;;  %v1048_v12 = vmul.f32 %v1802_v32, %v1016_v29  ;;  %v1019_v56 = vmul.f32 %v987_v11, %v987_v11 }
 0x17c   : > { %v1070_v50 = vadd.f32 %v1069_v3, %v1039_v48  ;;  %v1021_v48 = vmul.f32 %v989_v0, %v989_v0  ;;  %v1051_v32 = vmul.f32 %v1823_v54, %v1019_v56  ;;  %v1024_v54 = vmul.f32 %v992_v34, %v992_v34 }
 0x17e   : > { %v1071_v62 = vadd.f32 %v1070_v50, %v1040_v31  ;;  %v1053_v31 = vmul.f32 %v2227_v43, %v1021_v48  ;;  %v1056_v2 = vmul.f32 %v2229_v51, %v1024_v54 }
 0x180   : > { %v1072_v21 = vadd.f32 %v1071_v62, %v1041_v60  ;;  %v1026_v62 = vmul.f32 %v994_v6, %v994_v6 }
 0x182   : > { %v1073_v18 = vadd.f32 %v1072_v21, %v1042_v40  ;;  %v1057_v40 = vmul.f32 %v1859_v28, %v1025_v13  ;;  %v1058_v42 = vmul.f32 %v1864_v9, %v1026_v62 }
 0x184   : > { %v1074_v38 = vadd.f32 %v1073_v18, %v1043_v14 }
 0x186   : > { %v1075_v10 = vadd.f32 %v1074_v38, %v1044_v46 }
 0x188   : > { %v1076_v35 = vadd.f32 %v1075_v10, %v1045_v55 }
 0x18a   : > { %v1077_v7 = vadd.f32 %v1076_v35, %v1046_v61 }
 0x18c   : > { %v1078_v17 = vadd.f32 %v1077_v7, %v1047_v5 }
 0x18e   : > { %v1079_v53 = vadd.f32 %v1078_v17, %v1048_v12 }
 0x190   : > { %v1080_v49 = vadd.f32 %v1079_v53, %v1049_v19 }
 0x192   : > { %v1081_v3 = vadd.f32 %v1080_v49, %v1050_v25 }
 0x194   : > { %v1082_v26 = vadd.f32 %v1081_v3, %v1051_v32 }
 0x196   : > { %v1083_v50 = vadd.f32 %v1082_v26, %v1052_v37 }
 0x198   : > { %v1084_v4 = vadd.f32 %v1083_v50, %v1053_v31 }
 0x19a   : > { %v1085_v60 = vadd.f32 %v1084_v4, %v1054_v39 }
 0x19c   : > { %v1086_v16 = vadd.f32 %v1085_v60, %v1055_v63 }
 0x19e   : > { %v1087_v21 = vadd.f32 %v1086_v16, %v1056_v2 }
 0x1a0   : > { %v1088_v58 = vadd.f32 %v1087_v21, %v1057_v40 }
 0x1a2   : > { %v1089_v33 = vadd.f32 %v1088_v58, %v1058_v42 }
 0x1a4   : > { %v1090_v14 = vrot.slane %v1089_v33, 4 }
 0x1a6   : > { %v1091_v18 = vadd.f32 %v1090_v14, %v1089_v33 }
 0x1a8   : > { %v1092_v1 = vrot.slane %v1091_v18, 2 }
 0x1aa   : > { %v1093_v44 = vadd.f32 %v1092_v1, %v1091_v18 }
 0x1ac   : > { %v1094_v20 = vrot.slane %v1093_v44, 1 }
 0x1ae   : > { %v1095_v46 = vadd.f32 %v1094_v20, %v1093_v44 }
 0x1b0   : > { %v1097_v28 = vsel %vm1096_vm4, %v2069_v24, %v1095_v46 }
 0x1b1   : > { %v1099_v9 = vsel %vm1098_vm2, %v1097_v28, 0.0 }
 0x1b2   : > { %1100 = vst [vmem:[%s238_s25] sm:$0xff] %v1099_v9 }
 0x1b3 PF: > { %s16_s18 = sadd.s32 1, %s1431_s18  }
 0x1b4   : > { %p13_p5 = scmp.ge.s32.totalorder %s16_s18, 4  }
 0x1b6   :  { %15 = sbr.rel (!%p13_p5) target bundleno = 1 (0x1), region = 78 }

</bundles_post_ra>
